<compile_context>
chip_gen: v7x
topology: tpu7x:2x2x1
jax: 0.10.0
libtpu: 0.0.40
codegen_flags: <defaults>
</compile_context>

<pallas_src>
Q_CLAMP = 127.0  # TODO(synk): CFG.Q is external config in the original code.

import jax
import jax.numpy as jnp
from jax.experimental import pallas as pl
from jax.experimental.pallas import tpu as pltpu

D_IN = 768
NN_SIZE_L1 = 1536
NN_SIZE_L2 = 1


def _model_kernel(x1_ref, x2_ref, w1_ref, b1_ref, w2a_ref, w2b_ref, b2_ref,
                  o_ref):
    w1 = w1_ref[...]
    b1 = b1_ref[...]
    # fc1 on both inputs: two MXU matmuls against the VMEM-resident w1 (no
    # per-tile concat copy), f32 accumulation, fused bias + clamp epilogue.
    h1 = jnp.clip(
        jnp.dot(x1_ref[...], w1, preferred_element_type=jnp.float32) + b1,
        0.0, Q_CLAMP)
    h2 = jnp.clip(
        jnp.dot(x2_ref[...], w1, preferred_element_type=jnp.float32) + b1,
        0.0, Q_CLAMP)
    # fc2 (out_features == 1) as a VPU multiply + XLU cross-lane reduce:
    #   out[r] = sum(h1[r] * w2[:L1] + h2[r] * w2[L1:]) + b2
    out = jnp.sum(h1 * w2a_ref[...] + h2 * w2b_ref[...], axis=-1)
    # Lane-dense (1, TB) store (unmasked vst) instead of a (TB, 1) column.
    o_ref[...] = (out[None, :] + b2_ref[...]).astype(o_ref.dtype)


def _round_up(x, m):
    return ((x + m - 1) // m) * m


def _choose_tile(B):
    """Batch tile size. Large tiles amortize per-grid-step overhead; for
    mid-size batches force exactly 2 tiles so v7x megacore shards them."""
    if B <= 256:
        return _round_up(B, 16)                      # single small tile
    if B <= 2048:
        return _round_up((B + 1) // 2, 128)          # exactly 2 even tiles
    return 1024                                      # many 1024-row tiles


def model_forward(x1, x2, w1, b1, w2, b2):
    """x1, x2: (B, 768); w1: (768, 1536); b1: (1536,);
    w2: (3072, 1); b2: (1,).  Returns (B, 1) float32."""
    B = x1.shape[0]

    # bf16 activations / fc1 weight (MXU-native; halves the dominant w1 DMA).
    x1 = x1.astype(jnp.bfloat16)
    x2 = x2.astype(jnp.bfloat16)
    w1 = w1.astype(jnp.bfloat16)

    b1_2d = b1.reshape(1, NN_SIZE_L1).astype(jnp.float32)
    # Split fc2 weight into the halves multiplying fc1(X1) / fc1(X2); keep f32
    # (tiny) and lay them out as broadcastable (1, 1536) rows for the VPU.
    w2a = w2[:NN_SIZE_L1, 0].reshape(1, NN_SIZE_L1).astype(jnp.float32)
    w2b = w2[NN_SIZE_L1:, 0].reshape(1, NN_SIZE_L1).astype(jnp.float32)
    b2_2d = b2.reshape(1, NN_SIZE_L2).astype(jnp.float32)

    TB = _choose_tile(B)
    padded_B = _round_up(B, TB)
    if padded_B != B:
        pad = padded_B - B
        x1 = jnp.pad(x1, ((0, pad), (0, 0)))
        x2 = jnp.pad(x2, ((0, pad), (0, 0)))
    nb = padded_B // TB

    # Weights / biases: constant block index -> VMEM-resident across the grid.
    const = lambda shape: pl.BlockSpec(shape, lambda i: tuple(0 for _ in shape))

    out = pl.pallas_call(
        _model_kernel,
        # Lane-dense output slab: one (1, TB) row per grid step.
        out_shape=jax.ShapeDtypeStruct((nb, TB), jnp.float32),
        grid_spec=pltpu.PrefetchScalarGridSpec(
            num_scalar_prefetch=0,
            grid=(nb,),
            in_specs=[
                pl.BlockSpec((TB, D_IN), lambda i: (i, 0)),   # x1 tile
                pl.BlockSpec((TB, D_IN), lambda i: (i, 0)),   # x2 tile
                const((D_IN, NN_SIZE_L1)),                    # w1 (bf16, resident)
                const((1, NN_SIZE_L1)),                       # b1
                const((1, NN_SIZE_L1)),                       # w2 half for X1
                const((1, NN_SIZE_L1)),                       # w2 half for X2
                const((1, NN_SIZE_L2)),                       # b2
            ],
            out_specs=pl.BlockSpec((1, TB), lambda i: (i, 0)),
        ),
        compiler_params=pltpu.CompilerParams(
            dimension_semantics=("parallel",),
            vmem_limit_bytes=48 << 20,
        ),
    )(x1, x2, w1, b1_2d, w2a, w2b, b2_2d)

    # (nb, TB) row-major flatten == batch order; drop padded rows.
    return out.reshape(padded_B, 1)[:B]


def _reference(x1, x2, w1, b1, w2, b2):
    # Same bf16 rounding of x / w1 as the kernel; math carried out in f32.
    hp = jax.lax.Precision.HIGHEST
    x1 = x1.astype(jnp.bfloat16).astype(jnp.float32)
    x2 = x2.astype(jnp.bfloat16).astype(jnp.float32)
    w1 = w1.astype(jnp.bfloat16).astype(jnp.float32)
    h1 = jnp.dot(x1, w1, precision=hp) + b1
    h2 = jnp.dot(x2, w1, precision=hp) + b1
    h = jnp.concatenate([h1, h2], axis=1)
    h = jnp.clip(h, 0.0, Q_CLAMP)
    return jnp.dot(h, w2, precision=hp) + b2


if __name__ == "__main__":
    key = jax.random.PRNGKey(0)
    k1, k2, k3, k4 = jax.random.split(key, 4)

    # Deterministic parameter init (uniform, like torch.nn.Linear default)
    lim1 = 1.0 / (D_IN ** 0.5)
    lim2 = 1.0 / ((NN_SIZE_L1 * 2) ** 0.5)
    w1 = jax.random.uniform(k1, (D_IN, NN_SIZE_L1), jnp.float32, -lim1, lim1)
    b1 = jax.random.uniform(k2, (NN_SIZE_L1,), jnp.float32, -lim1, lim1)
    w2 = jax.random.uniform(k3, (NN_SIZE_L1 * 2, NN_SIZE_L2), jnp.float32,
                            -lim2, lim2)
    b2 = jax.random.uniform(k4, (NN_SIZE_L2,), jnp.float32, -lim2, lim2)

    # Two shapes: small single-tile batch, and a batch that exercises padding
    # plus the two-tile parallel grid (v7x megacore path).
    for B in (8, 300):
        kx1, kx2 = jax.random.split(jax.random.fold_in(key, B))
        x1 = jax.random.normal(kx1, (B, D_IN), jnp.float32)
        x2 = jax.random.normal(kx2, (B, D_IN), jnp.float32)

        out = jax.block_until_ready(model_forward(x1, x2, w1, b1, w2, b2))
        ref = _reference(x1, x2, w1, b1, w2, b2)
        assert out.shape == (B, NN_SIZE_L2)
        max_err = float(jnp.max(jnp.abs(out - ref)))
        assert jnp.allclose(out, ref, atol=5e-3, rtol=5e-3), max_err

    print("KERNEL_OK")
</pallas_src>

<mosaic_0001>
module attributes {stable_mosaic.version = 11 : i64} {
  func.func @_model_kernel(%arg0: i32, %arg1: memref<16x768xbf16, #tpu.memory_space<vmem>>, %arg2: memref<16x768xbf16, #tpu.memory_space<vmem>>, %arg3: memref<768x1536xbf16, #tpu.memory_space<vmem>>, %arg4: memref<1x1536xf32, #tpu.memory_space<vmem>>, %arg5: memref<1x1536xf32, #tpu.memory_space<vmem>>, %arg6: memref<1x1536xf32, #tpu.memory_space<vmem>>, %arg7: memref<1x1xf32, #tpu.memory_space<vmem>>, %arg8: memref<1x16xf32, #tpu.memory_space<vmem>>) attributes {dimension_semantics = [#tpu.dimension_semantics<parallel>], iteration_bounds = array<i64: 1>, scalar_prefetch = 0 : i64, scratch_operands = 0 : i64, tpu.core_type = #tpu.core_type<tc>, window_params = [{transform_indices = @transform_0, window_bounds = array<i64: 16, 768>}, {transform_indices = @transform_1, window_bounds = array<i64: 16, 768>}, {pipeline_mode = #tpu.pipeline_mode<synchronous>, transform_indices = @transform_2, window_bounds = array<i64: 768, 1536>}, {pipeline_mode = #tpu.pipeline_mode<synchronous>, transform_indices = @transform_3, window_bounds = array<i64: 1, 1536>}, {pipeline_mode = #tpu.pipeline_mode<synchronous>, transform_indices = @transform_4, window_bounds = array<i64: 1, 1536>}, {pipeline_mode = #tpu.pipeline_mode<synchronous>, transform_indices = @transform_5, window_bounds = array<i64: 1, 1536>}, {pipeline_mode = #tpu.pipeline_mode<synchronous>, transform_indices = @transform_6, window_bounds = array<i64: 1, 1>}, {transform_indices = @transform_7, window_bounds = array<i64: 1, 16>}]} {
    %c0 = arith.constant 0 : index
    %c0_0 = arith.constant 0 : index
    %0 = vector.load %arg3[%c0, %c0_0] : memref<768x1536xbf16, #tpu.memory_space<vmem>>, vector<768x1536xbf16>
    %c0_1 = arith.constant 0 : index
    %c0_2 = arith.constant 0 : index
    %1 = vector.load %arg4[%c0_1, %c0_2] : memref<1x1536xf32, #tpu.memory_space<vmem>>, vector<1x1536xf32>
    %c0_3 = arith.constant 0 : index
    %c0_4 = arith.constant 0 : index
    %2 = vector.load %arg1[%c0_3, %c0_4] : memref<16x768xbf16, #tpu.memory_space<vmem>>, vector<16x768xbf16>
    %cst = arith.constant dense<0.000000e+00> : vector<16x1536xf32>
    %3 = tpu.matmul %2, %0, %cst {dimension_numbers = #tpu.dot_dimension_numbers<[1], [0], [0], [1], [0, 0, 1, 1], [], []>} : vector<16x768xbf16>, vector<768x1536xbf16>, vector<16x1536xf32> -> vector<16x1536xf32>
    %4 = vector.broadcast %1 : vector<1x1536xf32> to vector<16x1536xf32>
    %5 = arith.addf %3, %4 : vector<16x1536xf32>
    %cst_5 = arith.constant 0.000000e+00 : f32
    %cst_6 = arith.constant 1.270000e+02 : f32
    %6 = vector.broadcast %cst_5 : f32 to vector<16x1536xf32>
    %7 = arith.maximumf %6, %5 : vector<16x1536xf32>
    %8 = vector.broadcast %cst_6 : f32 to vector<16x1536xf32>
    %9 = arith.minimumf %8, %7 : vector<16x1536xf32>
    %c0_7 = arith.constant 0 : index
    %c0_8 = arith.constant 0 : index
    %10 = vector.load %arg2[%c0_7, %c0_8] : memref<16x768xbf16, #tpu.memory_space<vmem>>, vector<16x768xbf16>
    %cst_9 = arith.constant dense<0.000000e+00> : vector<16x1536xf32>
    %11 = tpu.matmul %10, %0, %cst_9 {dimension_numbers = #tpu.dot_dimension_numbers<[1], [0], [0], [1], [0, 0, 1, 1], [], []>} : vector<16x768xbf16>, vector<768x1536xbf16>, vector<16x1536xf32> -> vector<16x1536xf32>
    %12 = vector.broadcast %1 : vector<1x1536xf32> to vector<16x1536xf32>
    %13 = arith.addf %11, %12 : vector<16x1536xf32>
    %cst_10 = arith.constant 0.000000e+00 : f32
    %cst_11 = arith.constant 1.270000e+02 : f32
    %14 = vector.broadcast %cst_10 : f32 to vector<16x1536xf32>
    %15 = arith.maximumf %14, %13 : vector<16x1536xf32>
    %16 = vector.broadcast %cst_11 : f32 to vector<16x1536xf32>
    %17 = arith.minimumf %16, %15 : vector<16x1536xf32>
    %c0_12 = arith.constant 0 : index
    %c0_13 = arith.constant 0 : index
    %18 = vector.load %arg5[%c0_12, %c0_13] : memref<1x1536xf32, #tpu.memory_space<vmem>>, vector<1x1536xf32>
    %19 = vector.broadcast %18 : vector<1x1536xf32> to vector<16x1536xf32>
    %20 = arith.mulf %9, %19 : vector<16x1536xf32>
    %c0_14 = arith.constant 0 : index
    %c0_15 = arith.constant 0 : index
    %21 = vector.load %arg6[%c0_14, %c0_15] : memref<1x1536xf32, #tpu.memory_space<vmem>>, vector<1x1536xf32>
    %22 = vector.broadcast %21 : vector<1x1536xf32> to vector<16x1536xf32>
    %23 = arith.mulf %17, %22 : vector<16x1536xf32>
    %24 = arith.addf %20, %23 : vector<16x1536xf32>
    %cst_16 = arith.constant dense<0.000000e+00> : vector<16xf32>
    %25 = vector.multi_reduction <add>, %24, %cst_16 [1] : vector<16x1536xf32> to vector<16xf32>
    %26 = vector.shape_cast %25 : vector<16xf32> to vector<1x16xf32>
    %c0_17 = arith.constant 0 : index
    %c0_18 = arith.constant 0 : index
    %27 = vector.load %arg7[%c0_17, %c0_18] : memref<1x1xf32, #tpu.memory_space<vmem>>, vector<1x1xf32>
    %28 = vector.broadcast %27 : vector<1x1xf32> to vector<1x16xf32>
    %29 = arith.addf %26, %28 : vector<1x16xf32>
    %c0_19 = arith.constant 0 : index
    %c0_20 = arith.constant 0 : index
    %30 = vector.load %arg8[%c0_19, %c0_20] : memref<1x16xf32, #tpu.memory_space<vmem>>, vector<1x16xf32>
    tpu.vector_store %arg8[%c0_19, %c0_20], %29 {strides = array<i32>} : memref<1x16xf32, #tpu.memory_space<vmem>>, vector<1x16xf32>,
    return
  }
  func.func @transform_0(%arg0: i32) -> (i32, i32) {
    %c0_i32 = arith.constant 0 : i32
    %c0_i32_0 = arith.constant 0 : i32
    return %arg0, %c0_i32 : i32, i32
  }
  func.func @transform_1(%arg0: i32) -> (i32, i32) {
    %c0_i32 = arith.constant 0 : i32
    %c0_i32_0 = arith.constant 0 : i32
    return %arg0, %c0_i32 : i32, i32
  }
  func.func @transform_2(%arg0: i32) -> (i32, i32) {
    %c0_i32 = arith.constant 0 : i32
    %c0_i32_0 = arith.constant 0 : i32
    %c0_i32_1 = arith.constant 0 : i32
    return %c0_i32, %c0_i32_0 : i32, i32
  }
  func.func @transform_3(%arg0: i32) -> (i32, i32) {
    %c0_i32 = arith.constant 0 : i32
    %c0_i32_0 = arith.constant 0 : i32
    %c0_i32_1 = arith.constant 0 : i32
    return %c0_i32, %c0_i32_0 : i32, i32
  }
  func.func @transform_4(%arg0: i32) -> (i32, i32) {
    %c0_i32 = arith.constant 0 : i32
    %c0_i32_0 = arith.constant 0 : i32
    %c0_i32_1 = arith.constant 0 : i32
    return %c0_i32, %c0_i32_0 : i32, i32
  }
  func.func @transform_5(%arg0: i32) -> (i32, i32) {
    %c0_i32 = arith.constant 0 : i32
    %c0_i32_0 = arith.constant 0 : i32
    %c0_i32_1 = arith.constant 0 : i32
    return %c0_i32, %c0_i32_0 : i32, i32
  }
  func.func @transform_6(%arg0: i32) -> (i32, i32) {
    %c0_i32 = arith.constant 0 : i32
    %c0_i32_0 = arith.constant 0 : i32
    %c0_i32_1 = arith.constant 0 : i32
    return %c0_i32, %c0_i32_0 : i32, i32
  }
  func.func @transform_7(%arg0: i32) -> (i32, i32) {
    %c0_i32 = arith.constant 0 : i32
    %c0_i32_0 = arith.constant 0 : i32
    return %arg0, %c0_i32 : i32, i32
  }
}

</mosaic_0001>

<bundles_post_ra>
// kernel: tpu_custom_call.1
= control target key start
LH: loop header
LB: loop body
LE: loop exit
PB: predicated region body
PF: predicated region fallthrough
CT: control target
= control target key end

     0   :  { %s8420_s0 = inlined_call_operand.hbm [shape: bf16[16,768], index: 0, kind: input, shape index: {}]   ;;  %s8421_s1 = inlined_call_operand.hbm [shape: bf16[16,768], index: 1, kind: input, shape index: {}]   ;;  %s8422_s2 = inlined_call_operand.hbm [shape: bf16[768,1536], index: 2, kind: input, shape index: {}]   ;;  %s8423_s3 = inlined_call_operand.hbm [shape: f32[1,1536], index: 3, kind: input, shape index: {}]   ;;  %s8424_s4 = inlined_call_operand.hbm [shape: f32[1,1536], index: 4, kind: input, shape index: {}]   ;;  %s8425_s5 = inlined_call_operand.hbm [shape: f32[1,1536], index: 5, kind: input, shape index: {}]   ;;  %s8426_s6 = inlined_call_operand.<no memory space> [shape: f32[1,1], index: 6, kind: input, shape index: {}]   ;;  %s8427_s7 = inlined_call_operand.hbm [shape: f32[1,16], index: 7, kind: output, shape index: {}]  }
   0x1   :  { %v12_v0 = vstv %s8426_s6 }
   0x2   :  { %13 = vst [vmem:[#allocation2] sm:$0x1] %v12_v0 }
   0x3   :  { %14 = vsyncpa [#allocation4], 0 }
   0x4   :  { %15 = vsyncpa [#allocation7], 0 }
   0x5   :  { %16 = vsyncpa [#allocation10], 0 }
   0x6   :  { %17 = vsyncpa [#allocation13], 0 }
   0x7   :  { %18 = vsyncpa [#allocation5], 0  ;;  %s7997_s26 = smov [#allocation6]   ;;  %s7998_s28 = smov [#allocation9]  }
   0x8   :  { %s36_s27 = sshll.u32 %s7997_s26, 4  ;;  %s61_s29 = sshll.u32 %s7998_s28, 4  ;;  %s37_s27 = int_to_ptr.vmem [resolvable:$true] %s36_s27  ;;  %s62_s29 = int_to_ptr.vmem [resolvable:$true] %s61_s29 }
   0x9   :  { %s7833_s9 = scalar_lea.hbm %s8421_s1, 768 }
   0xa   :  { %p7834_p0 = scmp.ne.s32.totalorder %s8421_s1, %s7833_s9  ;;  %p7837_p1 = scmp.lt.u32.totalorder %s7833_s9, %s8421_s1 }
   0xc   :  { %p7839_p2 = pnand %p7837_p1, %p7834_p0 }
   0xe   :  { %7842 = shalt.err (!%p7839_p2)
}
   0xf   :  { %s7843_s13 = scalar_lea.vmem %s37_s27, 768  ;;  %p7848_p4 = scmp.lt.s32.totalorder %s37_s27, %s37_s27 }
  0x10   :  { %p7844_p3 = scmp.ne.s32.totalorder %s37_s27, %s7843_s13  ;;  %p7849_p5 = scmp.lt.s32.totalorder %s7843_s13, %s7843_s13 }
  0x12   :  { %p7850_p6 = por %p7849_p5, %p7848_p4 }
  0x14   :  { %p7851_p7 = pnand %p7850_p6, %p7844_p3 }
  0x16   :  { %7854 = shalt.err (!%p7851_p7)
}
  0x17   :  { %s7999_s14 = smov 384   ;;  %s8000_s15 = smov 24  }
  0x18   :  { %42 = dma.hbm_to_vmem [thread:$0]  %s8421_s1, 768, %s37_s27, [#allocation7], %s7999_s14, %s7999_s14, %s8000_s15  }
  0x19   :  { %s7855_s20 = scalar_lea.hbm %s8423_s3, 192 }
  0x1a   :  { %p7856_p8 = scmp.ne.s32.totalorder %s8423_s3, %s7855_s20  ;;  %p7859_p9 = scmp.lt.u32.totalorder %s7855_s20, %s8423_s3 }
  0x1c   :  { %p7861_p10 = pnand %p7859_p9, %p7856_p8 }
  0x1e   :  { %7864 = shalt.err (!%p7861_p10)
}
  0x1f   :  { %s7865_s25 = scalar_lea.vmem %s62_s29, 192  ;;  %p7870_p12 = scmp.lt.s32.totalorder %s62_s29, %s62_s29 }
  0x20   :  { %p7866_p11 = scmp.ne.s32.totalorder %s62_s29, %s7865_s25  ;;  %p7871_p13 = scmp.lt.s32.totalorder %s7865_s25, %s7865_s25 }
  0x22   :  { %p7872_p0 = por %p7871_p13, %p7870_p12 }
  0x24   :  { %p7873_p1 = pnand %p7872_p0, %p7866_p11 }
  0x26   :  { %7876 = shalt.err (!%p7873_p1)
}
  0x27   :  { %64 = dma.hbm_to_vmem [thread:$0]  %s8423_s3, 192, %s62_s29, [#allocation10]  }
  0x28   :  { %s8001_s27 = smov [#allocation3]   ;;  %s8002_s30 = smov [#allocation8]  }
  0x29   :  { %s24_s28 = sshll.u32 %s8001_s27, 4  ;;  %s48_s8 = sshll.u32 %s8002_s30, 4  ;;  %s25_s28 = int_to_ptr.vmem [resolvable:$true] %s24_s28  ;;  %s8079_s8 = int_to_ptr.vmem [resolvable:$true] %s48_s8 }
  0x2a   :  { %s7877_s11 = scalar_lea.hbm %s8420_s0, 768 }
  0x2b   :  { %p7878_p2 = scmp.ne.s32.totalorder %s8420_s0, %s7877_s11  ;;  %p7881_p3 = scmp.lt.u32.totalorder %s7877_s11, %s8420_s0 }
  0x2d   :  { %p7883_p4 = pnand %p7881_p3, %p7878_p2 }
  0x2f   :  { %7886 = shalt.err (!%p7883_p4)
}
  0x30   :  { %s7887_s3 = scalar_lea.vmem %s25_s28, 768  ;;  %p7892_p6 = scmp.lt.s32.totalorder %s25_s28, %s25_s28 }
  0x31   :  { %p7888_p5 = scmp.ne.s32.totalorder %s25_s28, %s7887_s3  ;;  %p7893_p7 = scmp.lt.s32.totalorder %s7887_s3, %s7887_s3 }
  0x33   :  { %p7894_p8 = por %p7893_p7, %p7892_p6 }
  0x35   :  { %p7895_p9 = pnand %p7894_p8, %p7888_p5 }
  0x37   :  { %7898 = shalt.err (!%p7895_p9)
}
  0x38   :  { %30 = dma.hbm_to_vmem [thread:$0]  %s8420_s0, 768, %s25_s28, [#allocation4], %s7999_s14, %s7999_s14, %s8000_s15  }
  0x39   :  { %s7899_s20 = scalar_lea.hbm %s8422_s2, 73728 }
  0x3a   :  { %p7900_p10 = scmp.ne.s32.totalorder %s8422_s2, %s7899_s20  ;;  %p7903_p11 = scmp.lt.u32.totalorder %s7899_s20, %s8422_s2 }
  0x3c   :  { %p7905_p12 = pnand %p7903_p11, %p7900_p10 }
  0x3e   :  { %7908 = shalt.err (!%p7905_p12)
}
  0x3f   :  { %s7909_s25 = scalar_lea.vmem %s8079_s8, 73728  ;;  %p7914_p0 = scmp.lt.s32.totalorder %s8079_s8, %s8079_s8 }
  0x40   :  { %p7910_p13 = scmp.ne.s32.totalorder %s8079_s8, %s7909_s25  ;;  %p7915_p1 = scmp.lt.s32.totalorder %s7909_s25, %s7909_s25 }
  0x42   :  { %p7916_p2 = por %p7915_p1, %p7914_p0 }
  0x44   :  { %p7917_p3 = pnand %p7916_p2, %p7910_p13 }
  0x46   :  { %7920 = shalt.err (!%p7917_p3)
}
  0x47   :  { %s8003_s0 = smov 768   ;;  %s8004_s14 = smov 48  }
  0x48   :  { %54 = dma.hbm_to_vmem [thread:$0]  %s8422_s2, 73728, %s8079_s8, [#allocation7], %s8003_s0, %s8003_s0, %s8004_s14  }
  0x49   :  { %s8005_s26 = smov [#allocation11]   ;;  %s8006_s28 = smov [#allocation12]  }
  0x4a   :  { %s71_s27 = sshll.u32 %s8005_s26, 4  ;;  %s81_s30 = sshll.u32 %s8006_s28, 4  ;;  %s72_s27 = int_to_ptr.vmem [resolvable:$true] %s71_s27  ;;  %s82_s30 = int_to_ptr.vmem [resolvable:$true] %s81_s30 }
  0x4b   :  { %s7921_s11 = scalar_lea.hbm %s8424_s4, 192 }
  0x4c   :  { %p7922_p4 = scmp.ne.s32.totalorder %s8424_s4, %s7921_s11  ;;  %p7925_p5 = scmp.lt.u32.totalorder %s7921_s11, %s8424_s4 }
  0x4e   :  { %p7927_p6 = pnand %p7925_p5, %p7922_p4 }
  0x50   :  { %7930 = shalt.err (!%p7927_p6)
}
  0x51   :  { %s7931_s2 = scalar_lea.vmem %s72_s27, 192  ;;  %p7936_p8 = scmp.lt.s32.totalorder %s72_s27, %s72_s27 }
  0x52   :  { %p7932_p7 = scmp.ne.s32.totalorder %s72_s27, %s7931_s2  ;;  %p7937_p9 = scmp.lt.s32.totalorder %s7931_s2, %s7931_s2 }
  0x54   :  { %p7938_p10 = por %p7937_p9, %p7936_p8 }
  0x56   :  { %p7939_p11 = pnand %p7938_p10, %p7932_p7 }
  0x58   :  { %7942 = shalt.err (!%p7939_p11)
}
  0x59   :  { %74 = dma.hbm_to_vmem [thread:$0]  %s8424_s4, 192, %s72_s27, [#allocation10]  }
  0x5a   :  { %s7943_s18 = scalar_lea.hbm %s8425_s5, 192 }
  0x5b   :  { %p7944_p12 = scmp.ne.s32.totalorder %s8425_s5, %s7943_s18  ;;  %p7947_p13 = scmp.lt.u32.totalorder %s7943_s18, %s8425_s5 }
  0x5d   :  { %p7949_p0 = pnand %p7947_p13, %p7944_p12 }
  0x5f   :  { %7952 = shalt.err (!%p7949_p0)
}
  0x60   :  { %s7953_s23 = scalar_lea.vmem %s82_s30, 192  ;;  %p7958_p2 = scmp.lt.s32.totalorder %s82_s30, %s82_s30 }
  0x61   :  { %p7954_p1 = scmp.ne.s32.totalorder %s82_s30, %s7953_s23  ;;  %p7959_p3 = scmp.lt.s32.totalorder %s7953_s23, %s7953_s23 }
  0x63   :  { %p7960_p4 = por %p7959_p3, %p7958_p2 }
  0x65   :  { %p7961_p5 = pnand %p7960_p4, %p7954_p1 }
  0x67   :  { %7964 = shalt.err (!%p7961_p5)
}
  0x68   :  { %84 = dma.hbm_to_vmem [thread:$0]  %s8425_s5, 192, %s82_s30, [#allocation13]  }
  0x69   :  { %7987 = dma.done.wait [#allocation4], 768  }
  0x6a   :  { %7988 = vsyncadd [#allocation4], 4294966528 }
  0x6b   :  { %7989 = dma.done.wait [#allocation7], 74496  }
  0x6c   :  { %7990 = vsyncadd [#allocation7], 4294892800 }
  0x6d   :  { %7991 = dma.done.wait [#allocation10], 384  }
  0x6e   :  { %7992 = vsyncadd [#allocation10], 4294966912 }
  0x6f   :  { %7993 = dma.done.wait [#allocation13], 192  }
  0x70   :  { %7994 = vsyncadd [#allocation13], 4294967104  ;;  %v6361_v1 = vld [vmem:[#allocation8 + $0x4] ss:$48 sps:$4 sm:$0xff]   ;;  %v6363_v2 = vld [vmem:[#allocation8 + $0xc] ss:$48 sps:$4 sm:$0xff]  }
  0x71   :  { %3661 = vmatprep.subr.bf16.mxu0 %v6361_v1  ;;  %v6365_v3 = vld [vmem:[#allocation8] ss:$48 sps:$4 sm:$0xff]   ;;  %v6366_v4 = vld [vmem:[#allocation8 + $0x8] ss:$48 sps:$4 sm:$0xff]   ;;  %3790 = vmatprep.subr.bf16.mxu1 %v6363_v2  ;;  %v6367_v5 = vld [vmem:[#allocation8 + $0x64] ss:$48 sps:$4 sm:$0xff]  }
  0x72   :  { %3662 = vmatpush1.bf16.msra.mxu0 %v6365_v3  ;;  %3791 = vmatpush1.bf16.msra.mxu1 %v6366_v4  ;;  %v6369_v6 = vld [vmem:[#allocation8 + $0x6c] ss:$48 sps:$4 sm:$0xff]   ;;  %v6371_v7 = vld [vmem:[#allocation8 + $0x60] ss:$48 sps:$4 sm:$0xff]   ;;  %v6372_v8 = vld [vmem:[#allocation8 + $0x68] ss:$48 sps:$4 sm:$0xff]  }
  0x73   :  { %3663 = vmatprep.subr.bf16.mxu0 %v6367_v5  ;;  %3792 = vmatprep.subr.bf16.mxu1 %v6369_v6  ;;  %v6373_v9 = vld [vmem:[#allocation8 + $0xc4] ss:$48 sps:$4 sm:$0xff]   ;;  %v6375_v10 = vld [vmem:[#allocation8 + $0xcc] ss:$48 sps:$4 sm:$0xff]   ;;  %v6377_v11 = vld [vmem:[#allocation8 + $0xc0] ss:$48 sps:$4 sm:$0xff]  }
  0x74   :  { %v6378_v12 = vld [vmem:[#allocation8 + $0xc8] ss:$48 sps:$4 sm:$0xff]   ;;  %v6379_v13 = vld [vmem:[#allocation8 + $0x124] ss:$48 sps:$4 sm:$0xff]   ;;  %v6381_v14 = vld [vmem:[#allocation8 + $0x12c] ss:$48 sps:$4 sm:$0xff]  }
  0x75   :  { %v6383_v15 = vld [vmem:[#allocation8 + $0x120] ss:$48 sps:$4 sm:$0xff]   ;;  %v6384_v16 = vld [vmem:[#allocation8 + $0x128] ss:$48 sps:$4 sm:$0xff]   ;;  %v6385_v17 = vld [vmem:[#allocation8 + $0x184] ss:$48 sps:$4 sm:$0xff]  }
  0x76   :  { %3664 = vmatpush1.bf16.msra.mxu0 %v6371_v7  ;;  %3793 = vmatpush1.bf16.msra.mxu1 %v6372_v8  ;;  %v6387_v18 = vld [vmem:[#allocation8 + $0x18c] ss:$48 sps:$4 sm:$0xff]   ;;  %v6389_v19 = vld [vmem:[#allocation8 + $0x180] ss:$48 sps:$4 sm:$0xff]   ;;  %v6390_v20 = vld [vmem:[#allocation8 + $0x188] ss:$48 sps:$4 sm:$0xff]  }
  0x77   :  { %3665 = vmatprep.subr.bf16.mxu0 %v6373_v9  ;;  %3794 = vmatprep.subr.bf16.mxu1 %v6375_v10  ;;  %v6391_v21 = vld [vmem:[#allocation8 + $0x1e4] ss:$48 sps:$4 sm:$0xff]   ;;  %v6393_v22 = vld [vmem:[#allocation8 + $0x1ec] ss:$48 sps:$4 sm:$0xff]   ;;  %v6395_v23 = vld [vmem:[#allocation8 + $0x1e0] ss:$48 sps:$4 sm:$0xff]  }
  0x78   :  { %v6396_v24 = vld [vmem:[#allocation8 + $0x1e8] ss:$48 sps:$4 sm:$0xff]   ;;  %v6397_v25 = vld [vmem:[#allocation8 + $0x244] ss:$48 sps:$4 sm:$0xff]   ;;  %v6399_v26 = vld [vmem:[#allocation8 + $0x24c] ss:$48 sps:$4 sm:$0xff]  }
  0x79   :  { %v6401_v27 = vld [vmem:[#allocation8 + $0x240] ss:$48 sps:$4 sm:$0xff]   ;;  %v6402_v28 = vld [vmem:[#allocation8 + $0x248] ss:$48 sps:$4 sm:$0xff]   ;;  %v6403_v29 = vld [vmem:[#allocation8 + $0x2a4] ss:$48 sps:$4 sm:$0xff]  }
  0x7a   :  { %3666 = vmatpush1.bf16.msra.mxu0 %v6377_v11  ;;  %3795 = vmatpush1.bf16.msra.mxu1 %v6378_v12  ;;  %v6405_v30 = vld [vmem:[#allocation8 + $0x2ac] ss:$48 sps:$4 sm:$0xff]   ;;  %v6407_v31 = vld [vmem:[#allocation8 + $0x2a0] ss:$48 sps:$4 sm:$0xff]   ;;  %v6408_v32 = vld [vmem:[#allocation8 + $0x2a8] ss:$48 sps:$4 sm:$0xff]  }
  0x7b   :  { %3667 = vmatprep.subr.bf16.mxu0 %v6379_v13  ;;  %3796 = vmatprep.subr.bf16.mxu1 %v6381_v14  ;;  %v6409_v33 = vld [vmem:[#allocation8 + $0x304] ss:$48 sps:$4 sm:$0xff]   ;;  %v6411_v34 = vld [vmem:[#allocation8 + $0x30c] ss:$48 sps:$4 sm:$0xff]   ;;  %v6413_v35 = vld [vmem:[#allocation8 + $0x300] ss:$48 sps:$4 sm:$0xff]  }
  0x7c   :  { %v6414_v36 = vld [vmem:[#allocation8 + $0x308] ss:$48 sps:$4 sm:$0xff]   ;;  %v6415_v37 = vld [vmem:[#allocation8 + $0x364] ss:$48 sps:$4 sm:$0xff]   ;;  %v6417_v38 = vld [vmem:[#allocation8 + $0x36c] ss:$48 sps:$4 sm:$0xff]  }
  0x7d   :  { %v6419_v39 = vld [vmem:[#allocation8 + $0x360] ss:$48 sps:$4 sm:$0xff]   ;;  %v6420_v40 = vld [vmem:[#allocation8 + $0x368] ss:$48 sps:$4 sm:$0xff]   ;;  %v6421_v41 = vld [vmem:[#allocation8 + $0x3c4] ss:$48 sps:$4 sm:$0xff]  }
  0x7e   :  { %3668 = vmatpush1.bf16.msra.mxu0 %v6383_v15  ;;  %3797 = vmatpush1.bf16.msra.mxu1 %v6384_v16  ;;  %v6423_v42 = vld [vmem:[#allocation8 + $0x3cc] ss:$48 sps:$4 sm:$0xff]   ;;  %v6425_v43 = vld [vmem:[#allocation8 + $0x3c0] ss:$48 sps:$4 sm:$0xff]   ;;  %v6426_v44 = vld [vmem:[#allocation8 + $0x3c8] ss:$48 sps:$4 sm:$0xff]  }
  0x7f   :  { %3669 = vmatprep.subr.bf16.mxu0 %v6385_v17  ;;  %3798 = vmatprep.subr.bf16.mxu1 %v6387_v18  ;;  %v6427_v45 = vld [vmem:[#allocation8 + $0x424] ss:$48 sps:$4 sm:$0xff]   ;;  %v6429_v46 = vld [vmem:[#allocation8 + $0x42c] ss:$48 sps:$4 sm:$0xff]   ;;  %v6431_v47 = vld [vmem:[#allocation8 + $0x420] ss:$48 sps:$4 sm:$0xff]  }
  0x80   :  { %v6457_v48 = vld [vmem:[#allocation3 + $0x4] ss:$24 sps:$4 sm:$0xff]   ;;  %v6432_v49 = vld [vmem:[#allocation8 + $0x428] ss:$48 sps:$4 sm:$0xff]   ;;  %v6437_v52 = vld [vmem:[#allocation8 + $0x480] ss:$48 sps:$4 sm:$0xff]  }
  0x81   :  { %v6433_v50 = vld [vmem:[#allocation8 + $0x484] ss:$48 sps:$4 sm:$0xff]   ;;  %v6435_v51 = vld [vmem:[#allocation8 + $0x48c] ss:$48 sps:$4 sm:$0xff]   ;;  %3693 = vmatprep.mubr.bf16.mxu0 %v6457_v48  ;;  %3822 = vmatprep.mubr.bf16.mxu1 %v6457_v48  ;;  %v6438_v53 = vld [vmem:[#allocation8 + $0x488] ss:$48 sps:$4 sm:$0xff]  }
  0x82   :  { %3670 = vmatpush1.bf16.msra.mxu0 %v6389_v19  ;;  %3799 = vmatpush1.bf16.msra.mxu1 %v6390_v20  ;;  %v6439_v54 = vld [vmem:[#allocation8 + $0x4e4] ss:$48 sps:$4 sm:$0xff]   ;;  %v6441_v55 = vld [vmem:[#allocation8 + $0x4ec] ss:$48 sps:$4 sm:$0xff]   ;;  %v6443_v56 = vld [vmem:[#allocation8 + $0x4e0] ss:$48 sps:$4 sm:$0xff]  }
  0x83   :  { %3671 = vmatprep.subr.bf16.mxu0 %v6391_v21  ;;  %3800 = vmatprep.subr.bf16.mxu1 %v6393_v22  ;;  %v6444_v57 = vld [vmem:[#allocation8 + $0x4e8] ss:$48 sps:$4 sm:$0xff]   ;;  %v6445_v58 = vld [vmem:[#allocation8 + $0x544] ss:$48 sps:$4 sm:$0xff]   ;;  %v6447_v59 = vld [vmem:[#allocation8 + $0x54c] ss:$48 sps:$4 sm:$0xff]  }
  0x84   :  { %v6449_v60 = vld [vmem:[#allocation8 + $0x540] ss:$48 sps:$4 sm:$0xff]   ;;  %v6450_v61 = vld [vmem:[#allocation8 + $0x548] ss:$48 sps:$4 sm:$0xff]   ;;  %v6451_v62 = vld [vmem:[#allocation8 + $0x5a4] ss:$48 sps:$4 sm:$0xff]  }
  0x85   :  { %v6453_v63 = vld [vmem:[#allocation8 + $0x5ac] ss:$48 sps:$4 sm:$0xff]   ;;  %v6455_v0 = vld [vmem:[#allocation8 + $0x5a0] ss:$48 sps:$4 sm:$0xff]   ;;  %v6456_v1 = vld [vmem:[#allocation8 + $0x5a8] ss:$48 sps:$4 sm:$0xff]  }
  0x86   :  { %3672 = vmatpush1.bf16.msra.mxu0 %v6395_v23  ;;  %3801 = vmatpush1.bf16.msra.mxu1 %v6396_v24  ;;  %v6461_v2 = vld [vmem:[#allocation8 + $0x604] ss:$48 sps:$4 sm:$0xff]   ;;  %v6464_v3 = vld [vmem:[#allocation8 + $0x60c] ss:$48 sps:$4 sm:$0xff]   ;;  %v6459_v4 = vld [vmem:[#allocation8 + $0x600] ss:$48 sps:$4 sm:$0xff]  }
  0x87   :  { %3673 = vmatprep.subr.bf16.mxu0 %v6397_v25  ;;  %3802 = vmatprep.subr.bf16.mxu1 %v6399_v26  ;;  %v6462_v5 = vld [vmem:[#allocation8 + $0x608] ss:$48 sps:$4 sm:$0xff]   ;;  %v6468_v7 = vld [vmem:[#allocation8 + $0x664] ss:$48 sps:$4 sm:$0xff]   ;;  %v6471_v8 = vld [vmem:[#allocation8 + $0x66c] ss:$48 sps:$4 sm:$0xff]  }
  0x88   :  { %v6465_v6 = vld [vmem:[#allocation3] ss:$24 sps:$4 sm:$0xff]   ;;  %v6474_v11 = vld [vmem:[#allocation8 + $0x6c4] ss:$48 sps:$4 sm:$0xff]   ;;  %v6477_v12 = vld [vmem:[#allocation8 + $0x6cc] ss:$48 sps:$4 sm:$0xff]  }
  0x89   :  { %v6466_v9 = vld [vmem:[#allocation8 + $0x660] ss:$48 sps:$4 sm:$0xff]   ;;  %v6469_v10 = vld [vmem:[#allocation8 + $0x668] ss:$48 sps:$4 sm:$0xff]   ;;  %v6480_v15 = vld [vmem:[#allocation8 + $0x724] ss:$48 sps:$4 sm:$0xff]  }
  0x8a   :  { %3674 = vmatpush1.bf16.msra.mxu0 %v6401_v27  ;;  %3803 = vmatpush1.bf16.msra.mxu1 %v6402_v28  ;;  %v6472_v13 = vld [vmem:[#allocation8 + $0x6c0] ss:$48 sps:$4 sm:$0xff]   ;;  %v6475_v14 = vld [vmem:[#allocation8 + $0x6c8] ss:$48 sps:$4 sm:$0xff]   ;;  %v6483_v16 = vld [vmem:[#allocation8 + $0x72c] ss:$48 sps:$4 sm:$0xff]  }
  0x8b   :  { %3675 = vmatprep.subr.bf16.mxu0 %v6403_v29  ;;  %3804 = vmatprep.subr.bf16.mxu1 %v6405_v30  ;;  %v6478_v17 = vld [vmem:[#allocation8 + $0x720] ss:$48 sps:$4 sm:$0xff]   ;;  %v6481_v18 = vld [vmem:[#allocation8 + $0x728] ss:$48 sps:$4 sm:$0xff]   ;;  %v6486_v19 = vld [vmem:[#allocation8 + $0x784] ss:$48 sps:$4 sm:$0xff]  }
  0x8c   :  { %v6489_v20 = vld [vmem:[#allocation8 + $0x78c] ss:$48 sps:$4 sm:$0xff]   ;;  %v6484_v21 = vld [vmem:[#allocation8 + $0x780] ss:$48 sps:$4 sm:$0xff]   ;;  %v6487_v22 = vld [vmem:[#allocation8 + $0x788] ss:$48 sps:$4 sm:$0xff]  }
  0x8d   :  { %v6492_v23 = vld [vmem:[#allocation8 + $0x7e4] ss:$48 sps:$4 sm:$0xff]   ;;  %v6495_v24 = vld [vmem:[#allocation8 + $0x7ec] ss:$48 sps:$4 sm:$0xff]   ;;  %v6490_v25 = vld [vmem:[#allocation8 + $0x7e0] ss:$48 sps:$4 sm:$0xff]  }
  0x8e   :  { %3676 = vmatpush1.bf16.msra.mxu0 %v6407_v31  ;;  %3805 = vmatpush1.bf16.msra.mxu1 %v6408_v32  ;;  %v6493_v26 = vld [vmem:[#allocation8 + $0x7e8] ss:$48 sps:$4 sm:$0xff]   ;;  %v6498_v27 = vld [vmem:[#allocation8 + $0x844] ss:$48 sps:$4 sm:$0xff]   ;;  %v6501_v28 = vld [vmem:[#allocation8 + $0x84c] ss:$48 sps:$4 sm:$0xff]  }
  0x8f   :  { %3677 = vmatprep.subr.bf16.mxu0 %v6409_v33  ;;  %3806 = vmatprep.subr.bf16.mxu1 %v6411_v34  ;;  %v6496_v29 = vld [vmem:[#allocation8 + $0x840] ss:$48 sps:$4 sm:$0xff]   ;;  %v6556_v30 = vld [vmem:[#allocation3 + $0xc] ss:$24 sps:$4 sm:$0xff]   ;;  %v6499_v31 = vld [vmem:[#allocation8 + $0x848] ss:$48 sps:$4 sm:$0xff]  }
  0x90   :  { %v6504_v32 = vld [vmem:[#allocation8 + $0x8a4] ss:$48 sps:$4 sm:$0xff]   ;;  %v6507_v33 = vld [vmem:[#allocation8 + $0x8ac] ss:$48 sps:$4 sm:$0xff]   ;;  %v6502_v34 = vld [vmem:[#allocation8 + $0x8a0] ss:$48 sps:$4 sm:$0xff]  }
  0x91   :  { %v6528_v48 = vld [vmem:[#allocation8 + $0xa24] ss:$48 sps:$4 sm:$0xff]   ;;  %s8008_s5 = smov [#allocation14]   ;;  %vm5592_vm0 = vcmask 130112   ;;  %vm5595_vm1 = vcmask 122880  }
  0x92   :  { %3678 = vmatpush1.bf16.msra.mxu0 %v6413_v35  ;;  %3807 = vmatpush1.bf16.msra.mxu1 %v6414_v36  ;;  %v6505_v35 = vld [vmem:[#allocation8 + $0x8a8] ss:$48 sps:$4 sm:$0xff]   ;;  %v6510_v36 = vld [vmem:[#allocation8 + $0x904] ss:$48 sps:$4 sm:$0xff]   ;;  %s5603_s25 = sshll.u32 %s8008_s5, 4  ;;  %s5604_s25 = int_to_ptr.vmem [resolvable:$true] %s5603_s25 }
  0x93   :  { %3679 = vmatprep.subr.bf16.mxu0 %v6415_v37  ;;  %3808 = vmatprep.subr.bf16.mxu1 %v6417_v38  ;;  %v6513_v37 = vld [vmem:[#allocation8 + $0x90c] ss:$48 sps:$4 sm:$0xff]   ;;  %v6508_v38 = vld [vmem:[#allocation8 + $0x900] ss:$48 sps:$4 sm:$0xff]   ;;  %s7965_s0 = scalar_lea.vmem %s5604_s25, 16  ;;  %s7969_s14 = scalar_lea.vmem %s5604_s25, 32 }
  0x94   :  { %p7966_p6 = scmp.ne.s32.totalorder %s5604_s25, %s7965_s0  ;;  %p7970_p7 = scmp.lt.s32.totalorder %s5604_s25, %s5604_s25 }
  0x95   :  { %p7971_p8 = scmp.lt.s32.totalorder %s7969_s14, %s7965_s0 }
  0x96   :  { %3680 = vmatpush1.bf16.msra.mxu0 %v6419_v39  ;;  %3809 = vmatpush1.bf16.msra.mxu1 %v6420_v40  ;;  %v6511_v39 = vld [vmem:[#allocation8 + $0x908] ss:$48 sps:$4 sm:$0xff]   ;;  %v6516_v40 = vld [vmem:[#allocation8 + $0x964] ss:$48 sps:$4 sm:$0xff]  }
  0x97   :  { %3681 = vmatprep.subr.bf16.mxu0 %v6421_v41  ;;  %3810 = vmatprep.subr.bf16.mxu1 %v6423_v42  ;;  %v6519_v41 = vld [vmem:[#allocation8 + $0x96c] ss:$48 sps:$4 sm:$0xff]   ;;  %v6514_v42 = vld [vmem:[#allocation8 + $0x960] ss:$48 sps:$4 sm:$0xff]   ;;  %p7972_p9 = por %p7971_p8, %p7970_p7 }
  0x99   :  { %p7973_p10 = pnand %p7972_p9, %p7966_p6 }
  0x9a   :  { %3682 = vmatpush1.bf16.msra.mxu0 %v6425_v43  ;;  %3811 = vmatpush1.bf16.msra.mxu1 %v6426_v44  ;;  %v6517_v43 = vld [vmem:[#allocation8 + $0x968] ss:$48 sps:$4 sm:$0xff]   ;;  %v6522_v44 = vld [vmem:[#allocation8 + $0x9c4] ss:$48 sps:$4 sm:$0xff]  }
  0x9b   :  { %3683 = vmatprep.subr.bf16.mxu0 %v6427_v45  ;;  %3812 = vmatprep.subr.bf16.mxu1 %v6429_v46  ;;  %v6525_v45 = vld [vmem:[#allocation8 + $0x9cc] ss:$48 sps:$4 sm:$0xff]   ;;  %v6520_v46 = vld [vmem:[#allocation8 + $0x9c0] ss:$48 sps:$4 sm:$0xff]  }
  0x9e   :  { %3684 = vmatpush1.bf16.msra.mxu0 %v6431_v47  ;;  %3813 = vmatpush1.bf16.msra.mxu1 %v6432_v49  ;;  %v6523_v47 = vld [vmem:[#allocation8 + $0x9c8] ss:$48 sps:$4 sm:$0xff]   ;;  %v6531_v49 = vld [vmem:[#allocation8 + $0xa2c] ss:$48 sps:$4 sm:$0xff]  }
  0x9f   :  { %3685 = vmatprep.subr.bf16.mxu0 %v6433_v50  ;;  %3814 = vmatprep.subr.bf16.mxu1 %v6435_v51  ;;  %v6526_v50 = vld [vmem:[#allocation8 + $0xa20] ss:$48 sps:$4 sm:$0xff]   ;;  %v6529_v51 = vld [vmem:[#allocation8 + $0xa28] ss:$48 sps:$4 sm:$0xff]  }
  0xa2   :  { %3686 = vmatpush1.bf16.msra.mxu0 %v6437_v52  ;;  %3815 = vmatpush1.bf16.msra.mxu1 %v6438_v53  ;;  %v6534_v52 = vld [vmem:[#allocation8 + $0xa84] ss:$48 sps:$4 sm:$0xff]   ;;  %v6537_v53 = vld [vmem:[#allocation8 + $0xa8c] ss:$48 sps:$4 sm:$0xff]  }
  0xa3   :  { %3687 = vmatprep.subr.bf16.mxu0 %v6439_v54  ;;  %3816 = vmatprep.subr.bf16.mxu1 %v6441_v55  ;;  %v6532_v54 = vld [vmem:[#allocation8 + $0xa80] ss:$48 sps:$4 sm:$0xff]   ;;  %v6535_v55 = vld [vmem:[#allocation8 + $0xa88] ss:$48 sps:$4 sm:$0xff]  }
  0xa6   :  { %3688 = vmatpush1.bf16.msra.mxu0 %v6443_v56  ;;  %3817 = vmatpush1.bf16.msra.mxu1 %v6444_v57  ;;  %v6540_v56 = vld [vmem:[#allocation8 + $0xae4] ss:$48 sps:$4 sm:$0xff]   ;;  %v6543_v57 = vld [vmem:[#allocation8 + $0xaec] ss:$48 sps:$4 sm:$0xff]  }
  0xa7   :  { %3689 = vmatprep.subr.bf16.mxu0 %v6445_v58  ;;  %3818 = vmatprep.subr.bf16.mxu1 %v6447_v59  ;;  %v6538_v58 = vld [vmem:[#allocation8 + $0xae0] ss:$48 sps:$4 sm:$0xff]   ;;  %v6541_v59 = vld [vmem:[#allocation8 + $0xae8] ss:$48 sps:$4 sm:$0xff]  }
  0xaa   :  { %3690 = vmatpush1.bf16.msra.mxu0 %v6449_v60  ;;  %3819 = vmatpush1.bf16.msra.mxu1 %v6450_v61  ;;  %v6546_v60 = vld [vmem:[#allocation8 + $0xb44] ss:$48 sps:$4 sm:$0xff]   ;;  %v6549_v61 = vld [vmem:[#allocation8 + $0xb4c] ss:$48 sps:$4 sm:$0xff]  }
  0xab   :  { %3691 = vmatprep.subr.bf16.mxu0 %v6451_v62  ;;  %3820 = vmatprep.subr.bf16.mxu1 %v6453_v63  ;;  %v6544_v62 = vld [vmem:[#allocation8 + $0xb40] ss:$48 sps:$4 sm:$0xff]   ;;  %v6547_v63 = vld [vmem:[#allocation8 + $0xb48] ss:$48 sps:$4 sm:$0xff]  }
  0xae   :  { %3692 = vmatpush1.bf16.msra.mxu0 %v6455_v0  ;;  %3821 = vmatpush1.bf16.msra.mxu1 %v6456_v1  ;;  %v6552_v0 = vld [vmem:[#allocation8 + $0xba4] ss:$48 sps:$4 sm:$0xff]   ;;  %v6555_v1 = vld [vmem:[#allocation8 + $0xbac] ss:$48 sps:$4 sm:$0xff]  }
  0xaf   :  { %3704 = vmatprep.subr.bf16.mxu0 %v6461_v2  ;;  %3833 = vmatprep.subr.bf16.mxu1 %v6464_v3  ;;  %v6550_v2 = vld [vmem:[#allocation8 + $0xba0] ss:$48 sps:$4 sm:$0xff]   ;;  %v6553_v3 = vld [vmem:[#allocation8 + $0xba8] ss:$48 sps:$4 sm:$0xff]  }
  0xb1   :  { %3694 = vmatmul.mubr.bf16.vlgmr.msra.gmra.mrb[0].mxu0 %v6465_v6  ;;  %3823 = vmatmul.mubr.bf16.vlgmr.msra.gmra.mrb[0].mxu1 %v6465_v6  ;;  %v6558_v6 = vld [vmem:[#allocation8 + $0xc00] ss:$48 sps:$4 sm:$0xff]  }
  0xb2   :  { %3705 = vmatpush1.bf16.msra.mxu0 %v6459_v4  ;;  %3834 = vmatpush1.bf16.msra.mxu1 %v6462_v5  ;;  %v6560_v4 = vld [vmem:[#allocation8 + $0xc04] ss:$48 sps:$4 sm:$0xff]   ;;  %v6563_v5 = vld [vmem:[#allocation8 + $0xc0c] ss:$48 sps:$4 sm:$0xff]  }
  0xb3   :  { %3706 = vmatprep.subr.bf16.mxu0 %v6468_v7  ;;  %3835 = vmatprep.subr.bf16.mxu1 %v6471_v8  ;;  %v6561_v7 = vld [vmem:[#allocation8 + $0xc08] ss:$48 sps:$4 sm:$0xff]  }
  0xb4   :  { %3736 = vmatprep.mubr.bf16.mxu0 %v6556_v30  ;;  %3865 = vmatprep.mubr.bf16.mxu1 %v6556_v30  ;;  %v6564_v8 = vld [vmem:[#allocation3 + $0x8] ss:$24 sps:$4 sm:$0xff]   ;;  %v6597_v30 = vld [vmem:[#allocation8 + $0xe44] ss:$48 sps:$4 sm:$0xff]  }
  0xb6   :  { %3707 = vmatpush1.bf16.msra.mxu0 %v6466_v9  ;;  %3836 = vmatpush1.bf16.msra.mxu1 %v6469_v10  ;;  %v6567_v9 = vld [vmem:[#allocation8 + $0xc64] ss:$48 sps:$4 sm:$0xff]   ;;  %v6570_v10 = vld [vmem:[#allocation8 + $0xc6c] ss:$48 sps:$4 sm:$0xff]  }
  0xb7   :  { %3708 = vmatprep.subr.bf16.mxu0 %v6474_v11  ;;  %3837 = vmatprep.subr.bf16.mxu1 %v6477_v12  ;;  %v6565_v11 = vld [vmem:[#allocation8 + $0xc60] ss:$48 sps:$4 sm:$0xff]   ;;  %v6568_v12 = vld [vmem:[#allocation8 + $0xc68] ss:$48 sps:$4 sm:$0xff]  }
  0xba   :  { %3709 = vmatpush1.bf16.msra.mxu0 %v6472_v13  ;;  %3838 = vmatpush1.bf16.msra.mxu1 %v6475_v14  ;;  %v6655_v13 = vld [vmem:[#allocation3 + $0x14] ss:$24 sps:$4 sm:$0xff]  }
  0xbb   :  { %3710 = vmatprep.subr.bf16.mxu0 %v6480_v15  ;;  %3839 = vmatprep.subr.bf16.mxu1 %v6483_v16  ;;  %v6573_v14 = vld [vmem:[#allocation8 + $0xcc4] ss:$48 sps:$4 sm:$0xff]   ;;  %v6576_v15 = vld [vmem:[#allocation8 + $0xccc] ss:$48 sps:$4 sm:$0xff]   ;;  %v6571_v16 = vld [vmem:[#allocation8 + $0xcc0] ss:$48 sps:$4 sm:$0xff]  }
  0xbe   :  { %3711 = vmatpush1.bf16.msra.mxu0 %v6478_v17  ;;  %3840 = vmatpush1.bf16.msra.mxu1 %v6481_v18  ;;  %v6574_v17 = vld [vmem:[#allocation8 + $0xcc8] ss:$48 sps:$4 sm:$0xff]   ;;  %v6579_v18 = vld [vmem:[#allocation8 + $0xd24] ss:$48 sps:$4 sm:$0xff]  }
  0xbf   :  { %3712 = vmatprep.subr.bf16.mxu0 %v6486_v19  ;;  %3841 = vmatprep.subr.bf16.mxu1 %v6489_v20  ;;  %v6582_v19 = vld [vmem:[#allocation8 + $0xd2c] ss:$48 sps:$4 sm:$0xff]   ;;  %v6577_v20 = vld [vmem:[#allocation8 + $0xd20] ss:$48 sps:$4 sm:$0xff]  }
  0xc2   :  { %3713 = vmatpush1.bf16.msra.mxu0 %v6484_v21  ;;  %3842 = vmatpush1.bf16.msra.mxu1 %v6487_v22  ;;  %v6580_v21 = vld [vmem:[#allocation8 + $0xd28] ss:$48 sps:$4 sm:$0xff]   ;;  %v6585_v22 = vld [vmem:[#allocation8 + $0xd84] ss:$48 sps:$4 sm:$0xff]  }
  0xc3   :  { %3714 = vmatprep.subr.bf16.mxu0 %v6492_v23  ;;  %3843 = vmatprep.subr.bf16.mxu1 %v6495_v24  ;;  %v6588_v23 = vld [vmem:[#allocation8 + $0xd8c] ss:$48 sps:$4 sm:$0xff]   ;;  %v6583_v24 = vld [vmem:[#allocation8 + $0xd80] ss:$48 sps:$4 sm:$0xff]  }
  0xc6   :  { %3715 = vmatpush1.bf16.msra.mxu0 %v6490_v25  ;;  %3844 = vmatpush1.bf16.msra.mxu1 %v6493_v26  ;;  %v6586_v25 = vld [vmem:[#allocation8 + $0xd88] ss:$48 sps:$4 sm:$0xff]   ;;  %v6591_v26 = vld [vmem:[#allocation8 + $0xde4] ss:$48 sps:$4 sm:$0xff]  }
  0xc7   :  { %3716 = vmatprep.subr.bf16.mxu0 %v6498_v27  ;;  %3845 = vmatprep.subr.bf16.mxu1 %v6501_v28  ;;  %v6594_v27 = vld [vmem:[#allocation8 + $0xdec] ss:$48 sps:$4 sm:$0xff]   ;;  %v6589_v28 = vld [vmem:[#allocation8 + $0xde0] ss:$48 sps:$4 sm:$0xff]  }
  0xca   :  { %3717 = vmatpush1.bf16.msra.mxu0 %v6496_v29  ;;  %3846 = vmatpush1.bf16.msra.mxu1 %v6499_v31  ;;  %v6592_v29 = vld [vmem:[#allocation8 + $0xde8] ss:$48 sps:$4 sm:$0xff]   ;;  %v6600_v31 = vld [vmem:[#allocation8 + $0xe4c] ss:$48 sps:$4 sm:$0xff]  }
  0xcb   :  { %3718 = vmatprep.subr.bf16.mxu0 %v6504_v32  ;;  %3847 = vmatprep.subr.bf16.mxu1 %v6507_v33  ;;  %v6595_v32 = vld [vmem:[#allocation8 + $0xe40] ss:$48 sps:$4 sm:$0xff]   ;;  %v6598_v33 = vld [vmem:[#allocation8 + $0xe48] ss:$48 sps:$4 sm:$0xff]  }
  0xce   :  { %3719 = vmatpush1.bf16.msra.mxu0 %v6502_v34  ;;  %3848 = vmatpush1.bf16.msra.mxu1 %v6505_v35  ;;  %v6603_v34 = vld [vmem:[#allocation8 + $0xea4] ss:$48 sps:$4 sm:$0xff]   ;;  %v6606_v35 = vld [vmem:[#allocation8 + $0xeac] ss:$48 sps:$4 sm:$0xff]  }
  0xcf   :  { %3720 = vmatprep.subr.bf16.mxu0 %v6510_v36  ;;  %3849 = vmatprep.subr.bf16.mxu1 %v6513_v37  ;;  %v6601_v36 = vld [vmem:[#allocation8 + $0xea0] ss:$48 sps:$4 sm:$0xff]   ;;  %v6604_v37 = vld [vmem:[#allocation8 + $0xea8] ss:$48 sps:$4 sm:$0xff]  }
  0xd2   :  { %3721 = vmatpush1.bf16.msra.mxu0 %v6508_v38  ;;  %3850 = vmatpush1.bf16.msra.mxu1 %v6511_v39  ;;  %v6609_v38 = vld [vmem:[#allocation8 + $0xf04] ss:$48 sps:$4 sm:$0xff]   ;;  %v6612_v39 = vld [vmem:[#allocation8 + $0xf0c] ss:$48 sps:$4 sm:$0xff]  }
  0xd3   :  { %3722 = vmatprep.subr.bf16.mxu0 %v6516_v40  ;;  %3851 = vmatprep.subr.bf16.mxu1 %v6519_v41  ;;  %v6607_v40 = vld [vmem:[#allocation8 + $0xf00] ss:$48 sps:$4 sm:$0xff]   ;;  %v6610_v41 = vld [vmem:[#allocation8 + $0xf08] ss:$48 sps:$4 sm:$0xff]  }
  0xd6   :  { %3723 = vmatpush1.bf16.msra.mxu0 %v6514_v42  ;;  %3852 = vmatpush1.bf16.msra.mxu1 %v6517_v43  ;;  %v6615_v42 = vld [vmem:[#allocation8 + $0xf64] ss:$48 sps:$4 sm:$0xff]   ;;  %v6618_v43 = vld [vmem:[#allocation8 + $0xf6c] ss:$48 sps:$4 sm:$0xff]  }
  0xd7   :  { %3724 = vmatprep.subr.bf16.mxu0 %v6522_v44  ;;  %3853 = vmatprep.subr.bf16.mxu1 %v6525_v45  ;;  %v6613_v44 = vld [vmem:[#allocation8 + $0xf60] ss:$48 sps:$4 sm:$0xff]   ;;  %v6616_v45 = vld [vmem:[#allocation8 + $0xf68] ss:$48 sps:$4 sm:$0xff]  }
  0xda   :  { %3725 = vmatpush1.bf16.msra.mxu0 %v6520_v46  ;;  %3854 = vmatpush1.bf16.msra.mxu1 %v6523_v47  ;;  %v6621_v46 = vld [vmem:[#allocation8 + $0xfc4] ss:$48 sps:$4 sm:$0xff]   ;;  %v6624_v47 = vld [vmem:[#allocation8 + $0xfcc] ss:$48 sps:$4 sm:$0xff]  }
  0xdb   :  { %3726 = vmatprep.subr.bf16.mxu0 %v6528_v48  ;;  %3855 = vmatprep.subr.bf16.mxu1 %v6531_v49  ;;  %v6619_v48 = vld [vmem:[#allocation8 + $0xfc0] ss:$48 sps:$4 sm:$0xff]   ;;  %v6622_v49 = vld [vmem:[#allocation8 + $0xfc8] ss:$48 sps:$4 sm:$0xff]  }
  0xde   :  { %3727 = vmatpush1.bf16.msra.mxu0 %v6526_v50  ;;  %3856 = vmatpush1.bf16.msra.mxu1 %v6529_v51  ;;  %v6627_v50 = vld [vmem:[#allocation8 + $0x1024] ss:$48 sps:$4 sm:$0xff]   ;;  %v6630_v51 = vld [vmem:[#allocation8 + $0x102c] ss:$48 sps:$4 sm:$0xff]  }
  0xdf   :  { %3728 = vmatprep.subr.bf16.mxu0 %v6534_v52  ;;  %3857 = vmatprep.subr.bf16.mxu1 %v6537_v53  ;;  %v6625_v52 = vld [vmem:[#allocation8 + $0x1020] ss:$48 sps:$4 sm:$0xff]   ;;  %v6628_v53 = vld [vmem:[#allocation8 + $0x1028] ss:$48 sps:$4 sm:$0xff]  }
  0xe2   :  { %3729 = vmatpush1.bf16.msra.mxu0 %v6532_v54  ;;  %3858 = vmatpush1.bf16.msra.mxu1 %v6535_v55  ;;  %v6633_v54 = vld [vmem:[#allocation8 + $0x1084] ss:$48 sps:$4 sm:$0xff]   ;;  %v6636_v55 = vld [vmem:[#allocation8 + $0x108c] ss:$48 sps:$4 sm:$0xff]  }
  0xe3   :  { %3730 = vmatprep.subr.bf16.mxu0 %v6540_v56  ;;  %3859 = vmatprep.subr.bf16.mxu1 %v6543_v57  ;;  %v6631_v56 = vld [vmem:[#allocation8 + $0x1080] ss:$48 sps:$4 sm:$0xff]   ;;  %v6634_v57 = vld [vmem:[#allocation8 + $0x1088] ss:$48 sps:$4 sm:$0xff]  }
  0xe6   :  { %3731 = vmatpush1.bf16.msra.mxu0 %v6538_v58  ;;  %3860 = vmatpush1.bf16.msra.mxu1 %v6541_v59  ;;  %v6639_v58 = vld [vmem:[#allocation8 + $0x10e4] ss:$48 sps:$4 sm:$0xff]   ;;  %v6642_v59 = vld [vmem:[#allocation8 + $0x10ec] ss:$48 sps:$4 sm:$0xff]  }
  0xe7   :  { %3732 = vmatprep.subr.bf16.mxu0 %v6546_v60  ;;  %3861 = vmatprep.subr.bf16.mxu1 %v6549_v61  ;;  %v6637_v60 = vld [vmem:[#allocation8 + $0x10e0] ss:$48 sps:$4 sm:$0xff]   ;;  %v6640_v61 = vld [vmem:[#allocation8 + $0x10e8] ss:$48 sps:$4 sm:$0xff]  }
  0xea   :  { %3733 = vmatpush1.bf16.msra.mxu0 %v6544_v62  ;;  %3862 = vmatpush1.bf16.msra.mxu1 %v6547_v63  ;;  %v6645_v62 = vld [vmem:[#allocation8 + $0x1144] ss:$48 sps:$4 sm:$0xff]   ;;  %v6648_v63 = vld [vmem:[#allocation8 + $0x114c] ss:$48 sps:$4 sm:$0xff]  }
  0xeb   :  { %3734 = vmatprep.subr.bf16.mxu0 %v6552_v0  ;;  %3863 = vmatprep.subr.bf16.mxu1 %v6555_v1  ;;  %v6643_v0 = vld [vmem:[#allocation8 + $0x1140] ss:$48 sps:$4 sm:$0xff]   ;;  %v6646_v1 = vld [vmem:[#allocation8 + $0x1148] ss:$48 sps:$4 sm:$0xff]  }
  0xee   :  { %3735 = vmatpush1.bf16.msra.mxu0 %v6550_v2  ;;  %3864 = vmatpush1.bf16.msra.mxu1 %v6553_v3  ;;  %v6651_v2 = vld [vmem:[#allocation8 + $0x11a4] ss:$48 sps:$4 sm:$0xff]   ;;  %v6654_v3 = vld [vmem:[#allocation8 + $0x11ac] ss:$48 sps:$4 sm:$0xff]  }
  0xef   :  { %3747 = vmatprep.subr.bf16.mxu0 %v6560_v4  ;;  %3876 = vmatprep.subr.bf16.mxu1 %v6563_v5  ;;  %v6649_v4 = vld [vmem:[#allocation8 + $0x11a0] ss:$48 sps:$4 sm:$0xff]   ;;  %v6652_v5 = vld [vmem:[#allocation8 + $0x11a8] ss:$48 sps:$4 sm:$0xff]  }
  0xf1   :  { %3737 = vmatmul.mubr.bf16.vlgmr.msra.gmra.mrb[0].mxu0 %v6564_v8  ;;  %3866 = vmatmul.mubr.bf16.vlgmr.msra.gmra.mrb[0].mxu1 %v6564_v8  ;;  %v6657_v8 = vld [vmem:[#allocation3 + $0x10] ss:$24 sps:$4 sm:$0xff]  }
  0xf2   :  { %3748 = vmatpush1.bf16.msra.mxu0 %v6558_v6  ;;  %3877 = vmatpush1.bf16.msra.mxu1 %v6561_v7  ;;  %v6660_v6 = vld [vmem:[#allocation8 + $0x14] ss:$48 sps:$4 sm:$0xff]   ;;  %v6663_v7 = vld [vmem:[#allocation8 + $0x1c] ss:$48 sps:$4 sm:$0xff]  }
  0xf3   :  { %3749 = vmatprep.subr.bf16.mxu0 %v6567_v9  ;;  %3878 = vmatprep.subr.bf16.mxu1 %v6570_v10  ;;  %v6658_v9 = vld [vmem:[#allocation8 + $0x10] ss:$48 sps:$4 sm:$0xff]   ;;  %v6661_v10 = vld [vmem:[#allocation8 + $0x18] ss:$48 sps:$4 sm:$0xff]  }
  0xf4   :  { %3779 = vmatprep.mubr.bf16.mxu0 %v6655_v13  ;;  %3908 = vmatprep.mubr.bf16.mxu1 %v6655_v13  ;;  %v6664_v13 = vld [vmem:[#allocation8 + $0x70] ss:$48 sps:$4 sm:$0xff]  }
  0xf6   :  { %3750 = vmatpush1.bf16.msra.mxu0 %v6565_v11  ;;  %3879 = vmatpush1.bf16.msra.mxu1 %v6568_v12  ;;  %v6666_v11 = vld [vmem:[#allocation8 + $0x74] ss:$48 sps:$4 sm:$0xff]   ;;  %v6669_v12 = vld [vmem:[#allocation8 + $0x7c] ss:$48 sps:$4 sm:$0xff]  }
  0xf7   :  { %3751 = vmatprep.subr.bf16.mxu0 %v6573_v14  ;;  %3880 = vmatprep.subr.bf16.mxu1 %v6576_v15  ;;  %v6667_v14 = vld [vmem:[#allocation8 + $0x78] ss:$48 sps:$4 sm:$0xff]   ;;  %v6672_v15 = vld [vmem:[#allocation8 + $0xd4] ss:$48 sps:$4 sm:$0xff]  }
  0xfa   :  { %3752 = vmatpush1.bf16.msra.mxu0 %v6571_v16  ;;  %3881 = vmatpush1.bf16.msra.mxu1 %v6574_v17  ;;  %v6675_v16 = vld [vmem:[#allocation8 + $0xdc] ss:$48 sps:$4 sm:$0xff]  }
  0xfb   :  { %3753 = vmatprep.subr.bf16.mxu0 %v6579_v18  ;;  %3882 = vmatprep.subr.bf16.mxu1 %v6582_v19  ;;  %v7243_v17 = vld [vmem:[#allocation3 + $0x4] ss:$24 sps:$4 sm:$0xff]   ;;  %v6670_v18 = vld [vmem:[#allocation8 + $0xd0] ss:$48 sps:$4 sm:$0xff]   ;;  %v6673_v19 = vld [vmem:[#allocation8 + $0xd8] ss:$48 sps:$4 sm:$0xff]  }
  0xfe   :  { %3754 = vmatpush1.bf16.msra.mxu0 %v6577_v20  ;;  %3883 = vmatpush1.bf16.msra.mxu1 %v6580_v21  ;;  %v6678_v20 = vld [vmem:[#allocation8 + $0x134] ss:$48 sps:$4 sm:$0xff]   ;;  %v6681_v21 = vld [vmem:[#allocation8 + $0x13c] ss:$48 sps:$4 sm:$0xff]  }
  0xff   :  { %3755 = vmatprep.subr.bf16.mxu0 %v6585_v22  ;;  %3884 = vmatprep.subr.bf16.mxu1 %v6588_v23  ;;  %v6676_v22 = vld [vmem:[#allocation8 + $0x130] ss:$48 sps:$4 sm:$0xff]   ;;  %v6679_v23 = vld [vmem:[#allocation8 + $0x138] ss:$48 sps:$4 sm:$0xff]  }
 0x102   :  { %3756 = vmatpush1.bf16.msra.mxu0 %v6583_v24  ;;  %3885 = vmatpush1.bf16.msra.mxu1 %v6586_v25  ;;  %v6684_v24 = vld [vmem:[#allocation8 + $0x194] ss:$48 sps:$4 sm:$0xff]   ;;  %v6687_v25 = vld [vmem:[#allocation8 + $0x19c] ss:$48 sps:$4 sm:$0xff]  }
 0x103   :  { %3757 = vmatprep.subr.bf16.mxu0 %v6591_v26  ;;  %3886 = vmatprep.subr.bf16.mxu1 %v6594_v27  ;;  %v6682_v26 = vld [vmem:[#allocation8 + $0x190] ss:$48 sps:$4 sm:$0xff]   ;;  %v6685_v27 = vld [vmem:[#allocation8 + $0x198] ss:$48 sps:$4 sm:$0xff]  }
 0x106   :  { %3758 = vmatpush1.bf16.msra.mxu0 %v6589_v28  ;;  %3887 = vmatpush1.bf16.msra.mxu1 %v6592_v29  ;;  %v6690_v28 = vld [vmem:[#allocation8 + $0x1f4] ss:$48 sps:$4 sm:$0xff]   ;;  %v6693_v29 = vld [vmem:[#allocation8 + $0x1fc] ss:$48 sps:$4 sm:$0xff]  }
 0x107   :  { %3759 = vmatprep.subr.bf16.mxu0 %v6597_v30  ;;  %3888 = vmatprep.subr.bf16.mxu1 %v6600_v31  ;;  %v6688_v30 = vld [vmem:[#allocation8 + $0x1f0] ss:$48 sps:$4 sm:$0xff]   ;;  %v6691_v31 = vld [vmem:[#allocation8 + $0x1f8] ss:$48 sps:$4 sm:$0xff]  }
 0x10a   :  { %3760 = vmatpush1.bf16.msra.mxu0 %v6595_v32  ;;  %3889 = vmatpush1.bf16.msra.mxu1 %v6598_v33  ;;  %v6696_v32 = vld [vmem:[#allocation8 + $0x254] ss:$48 sps:$4 sm:$0xff]   ;;  %v6699_v33 = vld [vmem:[#allocation8 + $0x25c] ss:$48 sps:$4 sm:$0xff]  }
 0x10b   :  { %3761 = vmatprep.subr.bf16.mxu0 %v6603_v34  ;;  %3890 = vmatprep.subr.bf16.mxu1 %v6606_v35  ;;  %v6694_v34 = vld [vmem:[#allocation8 + $0x250] ss:$48 sps:$4 sm:$0xff]   ;;  %v6697_v35 = vld [vmem:[#allocation8 + $0x258] ss:$48 sps:$4 sm:$0xff]  }
 0x10e   :  { %3762 = vmatpush1.bf16.msra.mxu0 %v6601_v36  ;;  %3891 = vmatpush1.bf16.msra.mxu1 %v6604_v37  ;;  %v6702_v36 = vld [vmem:[#allocation8 + $0x2b4] ss:$48 sps:$4 sm:$0xff]   ;;  %v6705_v37 = vld [vmem:[#allocation8 + $0x2bc] ss:$48 sps:$4 sm:$0xff]  }
 0x10f   :  { %3763 = vmatprep.subr.bf16.mxu0 %v6609_v38  ;;  %3892 = vmatprep.subr.bf16.mxu1 %v6612_v39  ;;  %v6700_v38 = vld [vmem:[#allocation8 + $0x2b0] ss:$48 sps:$4 sm:$0xff]   ;;  %v6703_v39 = vld [vmem:[#allocation8 + $0x2b8] ss:$48 sps:$4 sm:$0xff]  }
 0x112   :  { %3764 = vmatpush1.bf16.msra.mxu0 %v6607_v40  ;;  %3893 = vmatpush1.bf16.msra.mxu1 %v6610_v41  ;;  %v6708_v40 = vld [vmem:[#allocation8 + $0x314] ss:$48 sps:$4 sm:$0xff]   ;;  %v6711_v41 = vld [vmem:[#allocation8 + $0x31c] ss:$48 sps:$4 sm:$0xff]  }
 0x113   :  { %3765 = vmatprep.subr.bf16.mxu0 %v6615_v42  ;;  %3894 = vmatprep.subr.bf16.mxu1 %v6618_v43  ;;  %v6706_v42 = vld [vmem:[#allocation8 + $0x310] ss:$48 sps:$4 sm:$0xff]   ;;  %v6709_v43 = vld [vmem:[#allocation8 + $0x318] ss:$48 sps:$4 sm:$0xff]  }
 0x116   :  { %3766 = vmatpush1.bf16.msra.mxu0 %v6613_v44  ;;  %3895 = vmatpush1.bf16.msra.mxu1 %v6616_v45  ;;  %v6714_v44 = vld [vmem:[#allocation8 + $0x374] ss:$48 sps:$4 sm:$0xff]   ;;  %v6717_v45 = vld [vmem:[#allocation8 + $0x37c] ss:$48 sps:$4 sm:$0xff]  }
 0x117   :  { %3767 = vmatprep.subr.bf16.mxu0 %v6621_v46  ;;  %3896 = vmatprep.subr.bf16.mxu1 %v6624_v47  ;;  %v6712_v46 = vld [vmem:[#allocation8 + $0x370] ss:$48 sps:$4 sm:$0xff]   ;;  %v6715_v47 = vld [vmem:[#allocation8 + $0x378] ss:$48 sps:$4 sm:$0xff]  }
 0x11a   :  { %3768 = vmatpush1.bf16.msra.mxu0 %v6619_v48  ;;  %3897 = vmatpush1.bf16.msra.mxu1 %v6622_v49  ;;  %v6720_v48 = vld [vmem:[#allocation8 + $0x3d4] ss:$48 sps:$4 sm:$0xff]   ;;  %v6723_v49 = vld [vmem:[#allocation8 + $0x3dc] ss:$48 sps:$4 sm:$0xff]  }
 0x11b   :  { %3769 = vmatprep.subr.bf16.mxu0 %v6627_v50  ;;  %3898 = vmatprep.subr.bf16.mxu1 %v6630_v51  ;;  %v6718_v50 = vld [vmem:[#allocation8 + $0x3d0] ss:$48 sps:$4 sm:$0xff]   ;;  %v6721_v51 = vld [vmem:[#allocation8 + $0x3d8] ss:$48 sps:$4 sm:$0xff]  }
 0x11e   :  { %3770 = vmatpush1.bf16.msra.mxu0 %v6625_v52  ;;  %3899 = vmatpush1.bf16.msra.mxu1 %v6628_v53  ;;  %v6726_v52 = vld [vmem:[#allocation8 + $0x434] ss:$48 sps:$4 sm:$0xff]   ;;  %v6729_v53 = vld [vmem:[#allocation8 + $0x43c] ss:$48 sps:$4 sm:$0xff]  }
 0x11f   :  { %3771 = vmatprep.subr.bf16.mxu0 %v6633_v54  ;;  %3900 = vmatprep.subr.bf16.mxu1 %v6636_v55  ;;  %v6724_v54 = vld [vmem:[#allocation8 + $0x430] ss:$48 sps:$4 sm:$0xff]   ;;  %v6727_v55 = vld [vmem:[#allocation8 + $0x438] ss:$48 sps:$4 sm:$0xff]  }
 0x122   :  { %3772 = vmatpush1.bf16.msra.mxu0 %v6631_v56  ;;  %3901 = vmatpush1.bf16.msra.mxu1 %v6634_v57  ;;  %v6732_v56 = vld [vmem:[#allocation8 + $0x494] ss:$48 sps:$4 sm:$0xff]   ;;  %v6735_v57 = vld [vmem:[#allocation8 + $0x49c] ss:$48 sps:$4 sm:$0xff]  }
 0x123   :  { %3773 = vmatprep.subr.bf16.mxu0 %v6639_v58  ;;  %3902 = vmatprep.subr.bf16.mxu1 %v6642_v59  ;;  %v6730_v58 = vld [vmem:[#allocation8 + $0x490] ss:$48 sps:$4 sm:$0xff]   ;;  %v6733_v59 = vld [vmem:[#allocation8 + $0x498] ss:$48 sps:$4 sm:$0xff]  }
 0x126   :  { %3774 = vmatpush1.bf16.msra.mxu0 %v6637_v60  ;;  %3903 = vmatpush1.bf16.msra.mxu1 %v6640_v61  ;;  %v6738_v60 = vld [vmem:[#allocation8 + $0x4f4] ss:$48 sps:$4 sm:$0xff]   ;;  %v6741_v61 = vld [vmem:[#allocation8 + $0x4fc] ss:$48 sps:$4 sm:$0xff]  }
 0x127   :  { %3775 = vmatprep.subr.bf16.mxu0 %v6645_v62  ;;  %3904 = vmatprep.subr.bf16.mxu1 %v6648_v63  ;;  %v6736_v62 = vld [vmem:[#allocation8 + $0x4f0] ss:$48 sps:$4 sm:$0xff]   ;;  %v6739_v63 = vld [vmem:[#allocation8 + $0x4f8] ss:$48 sps:$4 sm:$0xff]  }
 0x12a   :  { %3776 = vmatpush1.bf16.msra.mxu0 %v6643_v0  ;;  %3905 = vmatpush1.bf16.msra.mxu1 %v6646_v1  ;;  %v6744_v0 = vld [vmem:[#allocation8 + $0x554] ss:$48 sps:$4 sm:$0xff]   ;;  %v6747_v1 = vld [vmem:[#allocation8 + $0x55c] ss:$48 sps:$4 sm:$0xff]  }
 0x12b   :  { %3777 = vmatprep.subr.bf16.mxu0 %v6651_v2  ;;  %3906 = vmatprep.subr.bf16.mxu1 %v6654_v3  ;;  %v6742_v2 = vld [vmem:[#allocation8 + $0x550] ss:$48 sps:$4 sm:$0xff]   ;;  %v6745_v3 = vld [vmem:[#allocation8 + $0x558] ss:$48 sps:$4 sm:$0xff]  }
 0x12e   :  { %3778 = vmatpush1.bf16.msra.mxu0 %v6649_v4  ;;  %3907 = vmatpush1.bf16.msra.mxu1 %v6652_v5  ;;  %v6750_v4 = vld [vmem:[#allocation8 + $0x5b4] ss:$48 sps:$4 sm:$0xff]   ;;  %v6753_v5 = vld [vmem:[#allocation8 + $0x5bc] ss:$48 sps:$4 sm:$0xff]  }
 0x12f   :  { %3919 = vmatprep.subr.bf16.mxu0 %v6660_v6  ;;  %4048 = vmatprep.subr.bf16.mxu1 %v6663_v7  ;;  %v6748_v6 = vld [vmem:[#allocation8 + $0x5b0] ss:$48 sps:$4 sm:$0xff]   ;;  %v6751_v7 = vld [vmem:[#allocation8 + $0x5b8] ss:$48 sps:$4 sm:$0xff]  }
 0x131   :  { %3780 = vmatmul.mubr.bf16.vlgmr.msra.gmra.mrb[0].mxu0 %v6657_v8  ;;  %3909 = vmatmul.mubr.bf16.vlgmr.msra.gmra.mrb[0].mxu1 %v6657_v8  ;;  %v6756_v8 = vld [vmem:[#allocation8 + $0x614] ss:$48 sps:$4 sm:$0xff]  }
 0x132   :  { %3920 = vmatpush1.bf16.msra.mxu0 %v6658_v9  ;;  %4049 = vmatpush1.bf16.msra.mxu1 %v6661_v10  ;;  %v6759_v9 = vld [vmem:[#allocation8 + $0x61c] ss:$48 sps:$4 sm:$0xff]   ;;  %v6754_v10 = vld [vmem:[#allocation8 + $0x610] ss:$48 sps:$4 sm:$0xff]  }
 0x133   :  { %3921 = vmatprep.subr.bf16.mxu0 %v6666_v11  ;;  %4050 = vmatprep.subr.bf16.mxu1 %v6669_v12  ;;  %v6757_v11 = vld [vmem:[#allocation8 + $0x618] ss:$48 sps:$4 sm:$0xff]   ;;  %v6762_v12 = vld [vmem:[#allocation8 + $0x674] ss:$48 sps:$4 sm:$0xff]  }
 0x134   :  { %3951 = vmatprep.mubr.bf16.mxu0 %v7243_v17  ;;  %4080 = vmatprep.mubr.bf16.mxu1 %v7243_v17  ;;  %v6768_v17 = vld [vmem:[#allocation8 + $0x6d4] ss:$48 sps:$4 sm:$0xff]  }
 0x136   :  { %3922 = vmatpush1.bf16.msra.mxu0 %v6664_v13  ;;  %4051 = vmatpush1.bf16.msra.mxu1 %v6667_v14  ;;  %v6765_v13 = vld [vmem:[#allocation8 + $0x67c] ss:$48 sps:$4 sm:$0xff]   ;;  %v7244_v14 = vld [vmem:[#allocation3] ss:$24 sps:$4 sm:$0xff]  }
 0x137   :  { %3923 = vmatprep.subr.bf16.mxu0 %v6672_v15  ;;  %4052 = vmatprep.subr.bf16.mxu1 %v6675_v16  ;;  %v6760_v15 = vld [vmem:[#allocation8 + $0x670] ss:$48 sps:$4 sm:$0xff]   ;;  %v6763_v16 = vld [vmem:[#allocation8 + $0x678] ss:$48 sps:$4 sm:$0xff]  }
 0x13a   :  { %3924 = vmatpush1.bf16.msra.mxu0 %v6670_v18  ;;  %4053 = vmatpush1.bf16.msra.mxu1 %v6673_v19  ;;  %v6771_v18 = vld [vmem:[#allocation8 + $0x6dc] ss:$48 sps:$4 sm:$0xff]  }
 0x13b   :  { %3925 = vmatprep.subr.bf16.mxu0 %v6678_v20  ;;  %4054 = vmatprep.subr.bf16.mxu1 %v6681_v21  ;;  %v7245_v19 = vld [vmem:[#allocation3 + $0xc] ss:$24 sps:$4 sm:$0xff]   ;;  %v6766_v20 = vld [vmem:[#allocation8 + $0x6d0] ss:$48 sps:$4 sm:$0xff]   ;;  %v6769_v21 = vld [vmem:[#allocation8 + $0x6d8] ss:$48 sps:$4 sm:$0xff]  }
 0x13e   :  { %3926 = vmatpush1.bf16.msra.mxu0 %v6676_v22  ;;  %4055 = vmatpush1.bf16.msra.mxu1 %v6679_v23  ;;  %v6774_v22 = vld [vmem:[#allocation8 + $0x734] ss:$48 sps:$4 sm:$0xff]   ;;  %v6777_v23 = vld [vmem:[#allocation8 + $0x73c] ss:$48 sps:$4 sm:$0xff]  }
 0x13f   :  { %3927 = vmatprep.subr.bf16.mxu0 %v6684_v24  ;;  %4056 = vmatprep.subr.bf16.mxu1 %v6687_v25  ;;  %v6772_v24 = vld [vmem:[#allocation8 + $0x730] ss:$48 sps:$4 sm:$0xff]   ;;  %v6775_v25 = vld [vmem:[#allocation8 + $0x738] ss:$48 sps:$4 sm:$0xff]  }
 0x142   :  { %3928 = vmatpush1.bf16.msra.mxu0 %v6682_v26  ;;  %4057 = vmatpush1.bf16.msra.mxu1 %v6685_v27  ;;  %v6780_v26 = vld [vmem:[#allocation8 + $0x794] ss:$48 sps:$4 sm:$0xff]   ;;  %v6783_v27 = vld [vmem:[#allocation8 + $0x79c] ss:$48 sps:$4 sm:$0xff]  }
 0x143   :  { %3929 = vmatprep.subr.bf16.mxu0 %v6690_v28  ;;  %4058 = vmatprep.subr.bf16.mxu1 %v6693_v29  ;;  %v6778_v28 = vld [vmem:[#allocation8 + $0x790] ss:$48 sps:$4 sm:$0xff]   ;;  %v6781_v29 = vld [vmem:[#allocation8 + $0x798] ss:$48 sps:$4 sm:$0xff]  }
 0x146   :  { %3930 = vmatpush1.bf16.msra.mxu0 %v6688_v30  ;;  %4059 = vmatpush1.bf16.msra.mxu1 %v6691_v31  ;;  %v6786_v30 = vld [vmem:[#allocation8 + $0x7f4] ss:$48 sps:$4 sm:$0xff]   ;;  %v6789_v31 = vld [vmem:[#allocation8 + $0x7fc] ss:$48 sps:$4 sm:$0xff]  }
 0x147   :  { %3931 = vmatprep.subr.bf16.mxu0 %v6696_v32  ;;  %4060 = vmatprep.subr.bf16.mxu1 %v6699_v33  ;;  %v6784_v32 = vld [vmem:[#allocation8 + $0x7f0] ss:$48 sps:$4 sm:$0xff]   ;;  %v6787_v33 = vld [vmem:[#allocation8 + $0x7f8] ss:$48 sps:$4 sm:$0xff]  }
 0x14a   :  { %3932 = vmatpush1.bf16.msra.mxu0 %v6694_v34  ;;  %4061 = vmatpush1.bf16.msra.mxu1 %v6697_v35  ;;  %v6792_v34 = vld [vmem:[#allocation8 + $0x854] ss:$48 sps:$4 sm:$0xff]   ;;  %v6795_v35 = vld [vmem:[#allocation8 + $0x85c] ss:$48 sps:$4 sm:$0xff]  }
 0x14b   :  { %3933 = vmatprep.subr.bf16.mxu0 %v6702_v36  ;;  %4062 = vmatprep.subr.bf16.mxu1 %v6705_v37  ;;  %v6790_v36 = vld [vmem:[#allocation8 + $0x850] ss:$48 sps:$4 sm:$0xff]   ;;  %v6793_v37 = vld [vmem:[#allocation8 + $0x858] ss:$48 sps:$4 sm:$0xff]  }
 0x14e   :  { %3934 = vmatpush1.bf16.msra.mxu0 %v6700_v38  ;;  %4063 = vmatpush1.bf16.msra.mxu1 %v6703_v39  ;;  %v6798_v38 = vld [vmem:[#allocation8 + $0x8b4] ss:$48 sps:$4 sm:$0xff]   ;;  %v6801_v39 = vld [vmem:[#allocation8 + $0x8bc] ss:$48 sps:$4 sm:$0xff]  }
 0x14f   :  { %3935 = vmatprep.subr.bf16.mxu0 %v6708_v40  ;;  %4064 = vmatprep.subr.bf16.mxu1 %v6711_v41  ;;  %v6796_v40 = vld [vmem:[#allocation8 + $0x8b0] ss:$48 sps:$4 sm:$0xff]   ;;  %v6799_v41 = vld [vmem:[#allocation8 + $0x8b8] ss:$48 sps:$4 sm:$0xff]  }
 0x152   :  { %3936 = vmatpush1.bf16.msra.mxu0 %v6706_v42  ;;  %4065 = vmatpush1.bf16.msra.mxu1 %v6709_v43  ;;  %v6804_v42 = vld [vmem:[#allocation8 + $0x914] ss:$48 sps:$4 sm:$0xff]   ;;  %v6807_v43 = vld [vmem:[#allocation8 + $0x91c] ss:$48 sps:$4 sm:$0xff]  }
 0x153   :  { %3937 = vmatprep.subr.bf16.mxu0 %v6714_v44  ;;  %4066 = vmatprep.subr.bf16.mxu1 %v6717_v45  ;;  %v6802_v44 = vld [vmem:[#allocation8 + $0x910] ss:$48 sps:$4 sm:$0xff]   ;;  %v6805_v45 = vld [vmem:[#allocation8 + $0x918] ss:$48 sps:$4 sm:$0xff]  }
 0x156   :  { %3938 = vmatpush1.bf16.msra.mxu0 %v6712_v46  ;;  %4067 = vmatpush1.bf16.msra.mxu1 %v6715_v47  ;;  %v6810_v46 = vld [vmem:[#allocation8 + $0x974] ss:$48 sps:$4 sm:$0xff]   ;;  %v6813_v47 = vld [vmem:[#allocation8 + $0x97c] ss:$48 sps:$4 sm:$0xff]  }
 0x157   :  { %3939 = vmatprep.subr.bf16.mxu0 %v6720_v48  ;;  %4068 = vmatprep.subr.bf16.mxu1 %v6723_v49  ;;  %v6808_v48 = vld [vmem:[#allocation8 + $0x970] ss:$48 sps:$4 sm:$0xff]   ;;  %v6811_v49 = vld [vmem:[#allocation8 + $0x978] ss:$48 sps:$4 sm:$0xff]  }
 0x15a   :  { %3940 = vmatpush1.bf16.msra.mxu0 %v6718_v50  ;;  %4069 = vmatpush1.bf16.msra.mxu1 %v6721_v51  ;;  %v6816_v50 = vld [vmem:[#allocation8 + $0x9d4] ss:$48 sps:$4 sm:$0xff]   ;;  %v6819_v51 = vld [vmem:[#allocation8 + $0x9dc] ss:$48 sps:$4 sm:$0xff]  }
 0x15b   :  { %3941 = vmatprep.subr.bf16.mxu0 %v6726_v52  ;;  %4070 = vmatprep.subr.bf16.mxu1 %v6729_v53  ;;  %v6814_v52 = vld [vmem:[#allocation8 + $0x9d0] ss:$48 sps:$4 sm:$0xff]   ;;  %v6817_v53 = vld [vmem:[#allocation8 + $0x9d8] ss:$48 sps:$4 sm:$0xff]  }
 0x15e   :  { %3942 = vmatpush1.bf16.msra.mxu0 %v6724_v54  ;;  %4071 = vmatpush1.bf16.msra.mxu1 %v6727_v55  ;;  %v6822_v54 = vld [vmem:[#allocation8 + $0xa34] ss:$48 sps:$4 sm:$0xff]   ;;  %v6825_v55 = vld [vmem:[#allocation8 + $0xa3c] ss:$48 sps:$4 sm:$0xff]  }
 0x15f   :  { %3943 = vmatprep.subr.bf16.mxu0 %v6732_v56  ;;  %4072 = vmatprep.subr.bf16.mxu1 %v6735_v57  ;;  %v6820_v56 = vld [vmem:[#allocation8 + $0xa30] ss:$48 sps:$4 sm:$0xff]   ;;  %v6823_v57 = vld [vmem:[#allocation8 + $0xa38] ss:$48 sps:$4 sm:$0xff]  }
 0x162   :  { %3944 = vmatpush1.bf16.msra.mxu0 %v6730_v58  ;;  %4073 = vmatpush1.bf16.msra.mxu1 %v6733_v59  ;;  %v6828_v58 = vld [vmem:[#allocation8 + $0xa94] ss:$48 sps:$4 sm:$0xff]   ;;  %v6831_v59 = vld [vmem:[#allocation8 + $0xa9c] ss:$48 sps:$4 sm:$0xff]  }
 0x163   :  { %3945 = vmatprep.subr.bf16.mxu0 %v6738_v60  ;;  %4074 = vmatprep.subr.bf16.mxu1 %v6741_v61  ;;  %v6826_v60 = vld [vmem:[#allocation8 + $0xa90] ss:$48 sps:$4 sm:$0xff]   ;;  %v6829_v61 = vld [vmem:[#allocation8 + $0xa98] ss:$48 sps:$4 sm:$0xff]  }
 0x166   :  { %3946 = vmatpush1.bf16.msra.mxu0 %v6736_v62  ;;  %4075 = vmatpush1.bf16.msra.mxu1 %v6739_v63  ;;  %v6834_v62 = vld [vmem:[#allocation8 + $0xaf4] ss:$48 sps:$4 sm:$0xff]   ;;  %v6837_v63 = vld [vmem:[#allocation8 + $0xafc] ss:$48 sps:$4 sm:$0xff]  }
 0x167   :  { %3947 = vmatprep.subr.bf16.mxu0 %v6744_v0  ;;  %4076 = vmatprep.subr.bf16.mxu1 %v6747_v1  ;;  %v6832_v0 = vld [vmem:[#allocation8 + $0xaf0] ss:$48 sps:$4 sm:$0xff]   ;;  %v6835_v1 = vld [vmem:[#allocation8 + $0xaf8] ss:$48 sps:$4 sm:$0xff]  }
 0x16a   :  { %3948 = vmatpush1.bf16.msra.mxu0 %v6742_v2  ;;  %4077 = vmatpush1.bf16.msra.mxu1 %v6745_v3  ;;  %v6840_v2 = vld [vmem:[#allocation8 + $0xb54] ss:$48 sps:$4 sm:$0xff]   ;;  %v6843_v3 = vld [vmem:[#allocation8 + $0xb5c] ss:$48 sps:$4 sm:$0xff]  }
 0x16b   :  { %3949 = vmatprep.subr.bf16.mxu0 %v6750_v4  ;;  %4078 = vmatprep.subr.bf16.mxu1 %v6753_v5  ;;  %v6838_v4 = vld [vmem:[#allocation8 + $0xb50] ss:$48 sps:$4 sm:$0xff]   ;;  %v6841_v5 = vld [vmem:[#allocation8 + $0xb58] ss:$48 sps:$4 sm:$0xff]  }
 0x16e   :  { %3950 = vmatpush1.bf16.msra.mxu0 %v6748_v6  ;;  %4079 = vmatpush1.bf16.msra.mxu1 %v6751_v7  ;;  %v6846_v6 = vld [vmem:[#allocation8 + $0xbb4] ss:$48 sps:$4 sm:$0xff]   ;;  %v6849_v7 = vld [vmem:[#allocation8 + $0xbbc] ss:$48 sps:$4 sm:$0xff]  }
 0x16f   :  { %3962 = vmatprep.subr.bf16.mxu0 %v6756_v8  ;;  %4091 = vmatprep.subr.bf16.mxu1 %v6759_v9  ;;  %v6844_v8 = vld [vmem:[#allocation8 + $0xbb0] ss:$48 sps:$4 sm:$0xff]   ;;  %v6847_v9 = vld [vmem:[#allocation8 + $0xbb8] ss:$48 sps:$4 sm:$0xff]  }
 0x171   :  { %3952 = vmatmul.mubr.bf16.vlgmr.msra.gmra.mrb[4].mxu0 %v7244_v14  ;;  %4081 = vmatmul.mubr.bf16.vlgmr.msra.gmra.mrb[4].mxu1 %v7244_v14  ;;  %v6858_v14 = vld [vmem:[#allocation8 + $0xc74] ss:$48 sps:$4 sm:$0xff]  }
 0x172   :  { %3963 = vmatpush1.bf16.msra.mxu0 %v6754_v10  ;;  %4092 = vmatpush1.bf16.msra.mxu1 %v6757_v11  ;;  %v6852_v10 = vld [vmem:[#allocation8 + $0xc14] ss:$48 sps:$4 sm:$0xff]   ;;  %v6855_v11 = vld [vmem:[#allocation8 + $0xc1c] ss:$48 sps:$4 sm:$0xff]  }
 0x173   :  { %3964 = vmatprep.subr.bf16.mxu0 %v6762_v12  ;;  %4093 = vmatprep.subr.bf16.mxu1 %v6765_v13  ;;  %v6850_v12 = vld [vmem:[#allocation8 + $0xc10] ss:$48 sps:$4 sm:$0xff]   ;;  %v6853_v13 = vld [vmem:[#allocation8 + $0xc18] ss:$48 sps:$4 sm:$0xff]  }
 0x174   :  { %3994 = vmatprep.mubr.bf16.mxu0 %v7245_v19  ;;  %4123 = vmatprep.mubr.bf16.mxu1 %v7245_v19  ;;  %v6864_v19 = vld [vmem:[#allocation8 + $0xcd4] ss:$48 sps:$4 sm:$0xff]  }
 0x176   :  { %3965 = vmatpush1.bf16.msra.mxu0 %v6760_v15  ;;  %4094 = vmatpush1.bf16.msra.mxu1 %v6763_v16  ;;  %v6861_v15 = vld [vmem:[#allocation8 + $0xc7c] ss:$48 sps:$4 sm:$0xff]   ;;  %v8137_v16 = vld [vmem:[#allocation3 + $0x8] ss:$24 sps:$4 sm:$0xff]  }
 0x177   :  { %3966 = vmatprep.subr.bf16.mxu0 %v6768_v17  ;;  %4095 = vmatprep.subr.bf16.mxu1 %v6771_v18  ;;  %v6856_v17 = vld [vmem:[#allocation8 + $0xc70] ss:$48 sps:$4 sm:$0xff]   ;;  %v6859_v18 = vld [vmem:[#allocation8 + $0xc78] ss:$48 sps:$4 sm:$0xff]  }
 0x17a   :  { %3967 = vmatpush1.bf16.msra.mxu0 %v6766_v20  ;;  %4096 = vmatpush1.bf16.msra.mxu1 %v6769_v21  ;;  %v6867_v20 = vld [vmem:[#allocation8 + $0xcdc] ss:$48 sps:$4 sm:$0xff]  }
 0x17b   :  { %3968 = vmatprep.subr.bf16.mxu0 %v6774_v22  ;;  %4097 = vmatprep.subr.bf16.mxu1 %v6777_v23  ;;  %v8141_v21 = vld [vmem:[#allocation3 + $0x14] ss:$24 sps:$4 sm:$0xff]   ;;  %v6862_v22 = vld [vmem:[#allocation8 + $0xcd0] ss:$48 sps:$4 sm:$0xff]   ;;  %v6865_v23 = vld [vmem:[#allocation8 + $0xcd8] ss:$48 sps:$4 sm:$0xff]  }
 0x17e   :  { %3969 = vmatpush1.bf16.msra.mxu0 %v6772_v24  ;;  %4098 = vmatpush1.bf16.msra.mxu1 %v6775_v25  ;;  %v6870_v24 = vld [vmem:[#allocation8 + $0xd34] ss:$48 sps:$4 sm:$0xff]   ;;  %v6873_v25 = vld [vmem:[#allocation8 + $0xd3c] ss:$48 sps:$4 sm:$0xff]  }
 0x17f   :  { %3970 = vmatprep.subr.bf16.mxu0 %v6780_v26  ;;  %4099 = vmatprep.subr.bf16.mxu1 %v6783_v27  ;;  %v6868_v26 = vld [vmem:[#allocation8 + $0xd30] ss:$48 sps:$4 sm:$0xff]   ;;  %v6871_v27 = vld [vmem:[#allocation8 + $0xd38] ss:$48 sps:$4 sm:$0xff]  }
 0x182   :  { %3971 = vmatpush1.bf16.msra.mxu0 %v6778_v28  ;;  %4100 = vmatpush1.bf16.msra.mxu1 %v6781_v29  ;;  %v6876_v28 = vld [vmem:[#allocation8 + $0xd94] ss:$48 sps:$4 sm:$0xff]   ;;  %v6879_v29 = vld [vmem:[#allocation8 + $0xd9c] ss:$48 sps:$4 sm:$0xff]  }
 0x183   :  { %3972 = vmatprep.subr.bf16.mxu0 %v6786_v30  ;;  %4101 = vmatprep.subr.bf16.mxu1 %v6789_v31  ;;  %v6874_v30 = vld [vmem:[#allocation8 + $0xd90] ss:$48 sps:$4 sm:$0xff]   ;;  %v6877_v31 = vld [vmem:[#allocation8 + $0xd98] ss:$48 sps:$4 sm:$0xff]  }
 0x186   :  { %3973 = vmatpush1.bf16.msra.mxu0 %v6784_v32  ;;  %4102 = vmatpush1.bf16.msra.mxu1 %v6787_v33  ;;  %v6882_v32 = vld [vmem:[#allocation8 + $0xdf4] ss:$48 sps:$4 sm:$0xff]   ;;  %v6885_v33 = vld [vmem:[#allocation8 + $0xdfc] ss:$48 sps:$4 sm:$0xff]  }
 0x187   :  { %3974 = vmatprep.subr.bf16.mxu0 %v6792_v34  ;;  %4103 = vmatprep.subr.bf16.mxu1 %v6795_v35  ;;  %v6880_v34 = vld [vmem:[#allocation8 + $0xdf0] ss:$48 sps:$4 sm:$0xff]   ;;  %v6883_v35 = vld [vmem:[#allocation8 + $0xdf8] ss:$48 sps:$4 sm:$0xff]  }
 0x18a   :  { %3975 = vmatpush1.bf16.msra.mxu0 %v6790_v36  ;;  %4104 = vmatpush1.bf16.msra.mxu1 %v6793_v37  ;;  %v6888_v36 = vld [vmem:[#allocation8 + $0xe54] ss:$48 sps:$4 sm:$0xff]   ;;  %v6891_v37 = vld [vmem:[#allocation8 + $0xe5c] ss:$48 sps:$4 sm:$0xff]  }
 0x18b   :  { %3976 = vmatprep.subr.bf16.mxu0 %v6798_v38  ;;  %4105 = vmatprep.subr.bf16.mxu1 %v6801_v39  ;;  %v6886_v38 = vld [vmem:[#allocation8 + $0xe50] ss:$48 sps:$4 sm:$0xff]   ;;  %v6889_v39 = vld [vmem:[#allocation8 + $0xe58] ss:$48 sps:$4 sm:$0xff]  }
 0x18e   :  { %3977 = vmatpush1.bf16.msra.mxu0 %v6796_v40  ;;  %4106 = vmatpush1.bf16.msra.mxu1 %v6799_v41  ;;  %v6894_v40 = vld [vmem:[#allocation8 + $0xeb4] ss:$48 sps:$4 sm:$0xff]   ;;  %v6897_v41 = vld [vmem:[#allocation8 + $0xebc] ss:$48 sps:$4 sm:$0xff]  }
 0x18f   :  { %3978 = vmatprep.subr.bf16.mxu0 %v6804_v42  ;;  %4107 = vmatprep.subr.bf16.mxu1 %v6807_v43  ;;  %v6892_v42 = vld [vmem:[#allocation8 + $0xeb0] ss:$48 sps:$4 sm:$0xff]   ;;  %v6895_v43 = vld [vmem:[#allocation8 + $0xeb8] ss:$48 sps:$4 sm:$0xff]  }
 0x192   :  { %3979 = vmatpush1.bf16.msra.mxu0 %v6802_v44  ;;  %4108 = vmatpush1.bf16.msra.mxu1 %v6805_v45  ;;  %v6900_v44 = vld [vmem:[#allocation8 + $0xf14] ss:$48 sps:$4 sm:$0xff]   ;;  %v6903_v45 = vld [vmem:[#allocation8 + $0xf1c] ss:$48 sps:$4 sm:$0xff]  }
 0x193   :  { %3980 = vmatprep.subr.bf16.mxu0 %v6810_v46  ;;  %4109 = vmatprep.subr.bf16.mxu1 %v6813_v47  ;;  %v6898_v46 = vld [vmem:[#allocation8 + $0xf10] ss:$48 sps:$4 sm:$0xff]   ;;  %v6901_v47 = vld [vmem:[#allocation8 + $0xf18] ss:$48 sps:$4 sm:$0xff]  }
 0x196   :  { %3981 = vmatpush1.bf16.msra.mxu0 %v6808_v48  ;;  %4110 = vmatpush1.bf16.msra.mxu1 %v6811_v49  ;;  %v6906_v48 = vld [vmem:[#allocation8 + $0xf74] ss:$48 sps:$4 sm:$0xff]   ;;  %v6909_v49 = vld [vmem:[#allocation8 + $0xf7c] ss:$48 sps:$4 sm:$0xff]  }
 0x197   :  { %3982 = vmatprep.subr.bf16.mxu0 %v6816_v50  ;;  %4111 = vmatprep.subr.bf16.mxu1 %v6819_v51  ;;  %v6904_v50 = vld [vmem:[#allocation8 + $0xf70] ss:$48 sps:$4 sm:$0xff]   ;;  %v6907_v51 = vld [vmem:[#allocation8 + $0xf78] ss:$48 sps:$4 sm:$0xff]  }
 0x19a   :  { %3983 = vmatpush1.bf16.msra.mxu0 %v6814_v52  ;;  %4112 = vmatpush1.bf16.msra.mxu1 %v6817_v53  ;;  %v6912_v52 = vld [vmem:[#allocation8 + $0xfd4] ss:$48 sps:$4 sm:$0xff]   ;;  %v6915_v53 = vld [vmem:[#allocation8 + $0xfdc] ss:$48 sps:$4 sm:$0xff]  }
 0x19b   :  { %3984 = vmatprep.subr.bf16.mxu0 %v6822_v54  ;;  %4113 = vmatprep.subr.bf16.mxu1 %v6825_v55  ;;  %v6910_v54 = vld [vmem:[#allocation8 + $0xfd0] ss:$48 sps:$4 sm:$0xff]   ;;  %v6913_v55 = vld [vmem:[#allocation8 + $0xfd8] ss:$48 sps:$4 sm:$0xff]  }
 0x19e   :  { %3985 = vmatpush1.bf16.msra.mxu0 %v6820_v56  ;;  %4114 = vmatpush1.bf16.msra.mxu1 %v6823_v57  ;;  %v6918_v56 = vld [vmem:[#allocation8 + $0x1034] ss:$48 sps:$4 sm:$0xff]   ;;  %v6921_v57 = vld [vmem:[#allocation8 + $0x103c] ss:$48 sps:$4 sm:$0xff]  }
 0x19f   :  { %3986 = vmatprep.subr.bf16.mxu0 %v6828_v58  ;;  %4115 = vmatprep.subr.bf16.mxu1 %v6831_v59  ;;  %v6916_v58 = vld [vmem:[#allocation8 + $0x1030] ss:$48 sps:$4 sm:$0xff]   ;;  %v6919_v59 = vld [vmem:[#allocation8 + $0x1038] ss:$48 sps:$4 sm:$0xff]  }
 0x1a2   :  { %3987 = vmatpush1.bf16.msra.mxu0 %v6826_v60  ;;  %4116 = vmatpush1.bf16.msra.mxu1 %v6829_v61  ;;  %v6924_v60 = vld [vmem:[#allocation8 + $0x1094] ss:$48 sps:$4 sm:$0xff]   ;;  %v6927_v61 = vld [vmem:[#allocation8 + $0x109c] ss:$48 sps:$4 sm:$0xff]  }
 0x1a3   :  { %3988 = vmatprep.subr.bf16.mxu0 %v6834_v62  ;;  %4117 = vmatprep.subr.bf16.mxu1 %v6837_v63  ;;  %v6922_v62 = vld [vmem:[#allocation8 + $0x1090] ss:$48 sps:$4 sm:$0xff]   ;;  %v6925_v63 = vld [vmem:[#allocation8 + $0x1098] ss:$48 sps:$4 sm:$0xff]  }
 0x1a6   :  { %3989 = vmatpush1.bf16.msra.mxu0 %v6832_v0  ;;  %4118 = vmatpush1.bf16.msra.mxu1 %v6835_v1  ;;  %v6930_v0 = vld [vmem:[#allocation8 + $0x10f4] ss:$48 sps:$4 sm:$0xff]   ;;  %v6933_v1 = vld [vmem:[#allocation8 + $0x10fc] ss:$48 sps:$4 sm:$0xff]  }
 0x1a7   :  { %3990 = vmatprep.subr.bf16.mxu0 %v6840_v2  ;;  %4119 = vmatprep.subr.bf16.mxu1 %v6843_v3  ;;  %v6928_v2 = vld [vmem:[#allocation8 + $0x10f0] ss:$48 sps:$4 sm:$0xff]   ;;  %v6931_v3 = vld [vmem:[#allocation8 + $0x10f8] ss:$48 sps:$4 sm:$0xff]  }
 0x1aa   :  { %3991 = vmatpush1.bf16.msra.mxu0 %v6838_v4  ;;  %4120 = vmatpush1.bf16.msra.mxu1 %v6841_v5  ;;  %v6936_v4 = vld [vmem:[#allocation8 + $0x1154] ss:$48 sps:$4 sm:$0xff]   ;;  %v6939_v5 = vld [vmem:[#allocation8 + $0x115c] ss:$48 sps:$4 sm:$0xff]  }
 0x1ab   :  { %3992 = vmatprep.subr.bf16.mxu0 %v6846_v6  ;;  %4121 = vmatprep.subr.bf16.mxu1 %v6849_v7  ;;  %v6934_v6 = vld [vmem:[#allocation8 + $0x1150] ss:$48 sps:$4 sm:$0xff]   ;;  %v6937_v7 = vld [vmem:[#allocation8 + $0x1158] ss:$48 sps:$4 sm:$0xff]  }
 0x1ae   :  { %3993 = vmatpush1.bf16.msra.mxu0 %v6844_v8  ;;  %4122 = vmatpush1.bf16.msra.mxu1 %v6847_v9  ;;  %v6942_v8 = vld [vmem:[#allocation8 + $0x11b4] ss:$48 sps:$4 sm:$0xff]   ;;  %v6945_v9 = vld [vmem:[#allocation8 + $0x11bc] ss:$48 sps:$4 sm:$0xff]  }
 0x1af   :  { %4005 = vmatprep.subr.bf16.mxu0 %v6852_v10  ;;  %4134 = vmatprep.subr.bf16.mxu1 %v6855_v11  ;;  %v6940_v10 = vld [vmem:[#allocation8 + $0x11b0] ss:$48 sps:$4 sm:$0xff]   ;;  %v6943_v11 = vld [vmem:[#allocation8 + $0x11b8] ss:$48 sps:$4 sm:$0xff]  }
 0x1b1   :  { %3995 = vmatmul.mubr.bf16.vlgmr.msra.gmra.mrb[4].mxu0 %v8137_v16  ;;  %4124 = vmatmul.mubr.bf16.vlgmr.msra.gmra.mrb[4].mxu1 %v8137_v16 }
 0x1b2   :  { %4006 = vmatpush1.bf16.msra.mxu0 %v6850_v12  ;;  %4135 = vmatpush1.bf16.msra.mxu1 %v6853_v13  ;;  %v6948_v12 = vld [vmem:[#allocation8 + $0x24] ss:$48 sps:$4 sm:$0xff]   ;;  %v6951_v13 = vld [vmem:[#allocation8 + $0x2c] ss:$48 sps:$4 sm:$0xff]  }
 0x1b3   :  { %4007 = vmatprep.subr.bf16.mxu0 %v6858_v14  ;;  %4136 = vmatprep.subr.bf16.mxu1 %v6861_v15  ;;  %v6946_v14 = vld [vmem:[#allocation8 + $0x20] ss:$48 sps:$4 sm:$0xff]   ;;  %v6949_v15 = vld [vmem:[#allocation8 + $0x28] ss:$48 sps:$4 sm:$0xff]  }
 0x1b4   :  { %4037 = vmatprep.mubr.bf16.mxu0 %v8141_v21  ;;  %4166 = vmatprep.mubr.bf16.mxu1 %v8141_v21 }
 0x1b6   :  { %4008 = vmatpush1.bf16.msra.mxu0 %v6856_v17  ;;  %4137 = vmatpush1.bf16.msra.mxu1 %v6859_v18  ;;  %v6954_v17 = vld [vmem:[#allocation8 + $0x84] ss:$48 sps:$4 sm:$0xff]   ;;  %v6957_v18 = vld [vmem:[#allocation8 + $0x8c] ss:$48 sps:$4 sm:$0xff]  }
 0x1b7   :  { %4009 = vmatprep.subr.bf16.mxu0 %v6864_v19  ;;  %4138 = vmatprep.subr.bf16.mxu1 %v6867_v20  ;;  %v8145_v19 = vld [vmem:[#allocation3 + $0x10] ss:$24 sps:$4 sm:$0xff]  }
 0x1b8   :  { %v6952_v20 = vld [vmem:[#allocation8 + $0x80] ss:$48 sps:$4 sm:$0xff]  }
 0x1ba   :  { %4010 = vmatpush1.bf16.msra.mxu0 %v6862_v22  ;;  %4139 = vmatpush1.bf16.msra.mxu1 %v6865_v23  ;;  %v6955_v22 = vld [vmem:[#allocation8 + $0x88] ss:$48 sps:$4 sm:$0xff]   ;;  %v6960_v23 = vld [vmem:[#allocation8 + $0xe4] ss:$48 sps:$4 sm:$0xff]  }
 0x1bb   :  { %4011 = vmatprep.subr.bf16.mxu0 %v6870_v24  ;;  %4140 = vmatprep.subr.bf16.mxu1 %v6873_v25  ;;  %v6963_v24 = vld [vmem:[#allocation8 + $0xec] ss:$48 sps:$4 sm:$0xff]  }
 0x1bc   :  { %v7249_v25 = vld [vmem:[#allocation3 + $0x4] ss:$24 sps:$4 sm:$0xff]  }
 0x1be   :  { %4012 = vmatpush1.bf16.msra.mxu0 %v6868_v26  ;;  %4141 = vmatpush1.bf16.msra.mxu1 %v6871_v27  ;;  %v6958_v26 = vld [vmem:[#allocation8 + $0xe0] ss:$48 sps:$4 sm:$0xff]   ;;  %v6961_v27 = vld [vmem:[#allocation8 + $0xe8] ss:$48 sps:$4 sm:$0xff]  }
 0x1bf   :  { %4013 = vmatprep.subr.bf16.mxu0 %v6876_v28  ;;  %4142 = vmatprep.subr.bf16.mxu1 %v6879_v29  ;;  %v6966_v28 = vld [vmem:[#allocation8 + $0x144] ss:$48 sps:$4 sm:$0xff]   ;;  %v6969_v29 = vld [vmem:[#allocation8 + $0x14c] ss:$48 sps:$4 sm:$0xff]  }
 0x1c2   :  { %4014 = vmatpush1.bf16.msra.mxu0 %v6874_v30  ;;  %4143 = vmatpush1.bf16.msra.mxu1 %v6877_v31  ;;  %v6964_v30 = vld [vmem:[#allocation8 + $0x140] ss:$48 sps:$4 sm:$0xff]   ;;  %v6967_v31 = vld [vmem:[#allocation8 + $0x148] ss:$48 sps:$4 sm:$0xff]  }
 0x1c3   :  { %4015 = vmatprep.subr.bf16.mxu0 %v6882_v32  ;;  %4144 = vmatprep.subr.bf16.mxu1 %v6885_v33  ;;  %v6972_v32 = vld [vmem:[#allocation8 + $0x1a4] ss:$48 sps:$4 sm:$0xff]   ;;  %v6975_v33 = vld [vmem:[#allocation8 + $0x1ac] ss:$48 sps:$4 sm:$0xff]  }
 0x1c6   :  { %4016 = vmatpush1.bf16.msra.mxu0 %v6880_v34  ;;  %4145 = vmatpush1.bf16.msra.mxu1 %v6883_v35  ;;  %v6970_v34 = vld [vmem:[#allocation8 + $0x1a0] ss:$48 sps:$4 sm:$0xff]   ;;  %v6973_v35 = vld [vmem:[#allocation8 + $0x1a8] ss:$48 sps:$4 sm:$0xff]  }
 0x1c7   :  { %4017 = vmatprep.subr.bf16.mxu0 %v6888_v36  ;;  %4146 = vmatprep.subr.bf16.mxu1 %v6891_v37  ;;  %v6978_v36 = vld [vmem:[#allocation8 + $0x204] ss:$48 sps:$4 sm:$0xff]   ;;  %v6981_v37 = vld [vmem:[#allocation8 + $0x20c] ss:$48 sps:$4 sm:$0xff]  }
 0x1ca   :  { %4018 = vmatpush1.bf16.msra.mxu0 %v6886_v38  ;;  %4147 = vmatpush1.bf16.msra.mxu1 %v6889_v39  ;;  %v6976_v38 = vld [vmem:[#allocation8 + $0x200] ss:$48 sps:$4 sm:$0xff]   ;;  %v6979_v39 = vld [vmem:[#allocation8 + $0x208] ss:$48 sps:$4 sm:$0xff]  }
 0x1cb   :  { %4019 = vmatprep.subr.bf16.mxu0 %v6894_v40  ;;  %4148 = vmatprep.subr.bf16.mxu1 %v6897_v41  ;;  %v6984_v40 = vld [vmem:[#allocation8 + $0x264] ss:$48 sps:$4 sm:$0xff]   ;;  %v6987_v41 = vld [vmem:[#allocation8 + $0x26c] ss:$48 sps:$4 sm:$0xff]  }
 0x1ce   :  { %4020 = vmatpush1.bf16.msra.mxu0 %v6892_v42  ;;  %4149 = vmatpush1.bf16.msra.mxu1 %v6895_v43 }
 0x1cf   :  { %4021 = vmatprep.subr.bf16.mxu0 %v6900_v44  ;;  %4150 = vmatprep.subr.bf16.mxu1 %v6903_v45 }
 0x1d2   :  { %4022 = vmatpush1.bf16.msra.mxu0 %v6898_v46  ;;  %4151 = vmatpush1.bf16.msra.mxu1 %v6901_v47 }
 0x1d3   :  { %4023 = vmatprep.subr.bf16.mxu0 %v6906_v48  ;;  %4152 = vmatprep.subr.bf16.mxu1 %v6909_v49  ;;  %v6982_v48 = vld [vmem:[#allocation8 + $0x260] ss:$48 sps:$4 sm:$0xff]   ;;  %v6985_v49 = vld [vmem:[#allocation8 + $0x268] ss:$48 sps:$4 sm:$0xff]  }
 0x1d6   :  { %4024 = vmatpush1.bf16.msra.mxu0 %v6904_v50  ;;  %4153 = vmatpush1.bf16.msra.mxu1 %v6907_v51 }
 0x1d7   :  { %4025 = vmatprep.subr.bf16.mxu0 %v6912_v52  ;;  %4154 = vmatprep.subr.bf16.mxu1 %v6915_v53  ;;  %v6990_v52 = vld [vmem:[#allocation8 + $0x2c4] ss:$48 sps:$4 sm:$0xff]   ;;  %v6993_v53 = vld [vmem:[#allocation8 + $0x2cc] ss:$48 sps:$4 sm:$0xff]  }
 0x1da   :  { %4026 = vmatpush1.bf16.msra.mxu0 %v6910_v54  ;;  %4155 = vmatpush1.bf16.msra.mxu1 %v6913_v55  ;;  %v6988_v54 = vld [vmem:[#allocation8 + $0x2c0] ss:$48 sps:$4 sm:$0xff]   ;;  %v6991_v55 = vld [vmem:[#allocation8 + $0x2c8] ss:$48 sps:$4 sm:$0xff]  }
 0x1db   :  { %4027 = vmatprep.subr.bf16.mxu0 %v6918_v56  ;;  %4156 = vmatprep.subr.bf16.mxu1 %v6921_v57  ;;  %v6996_v56 = vld [vmem:[#allocation8 + $0x324] ss:$48 sps:$4 sm:$0xff]   ;;  %v6999_v57 = vld [vmem:[#allocation8 + $0x32c] ss:$48 sps:$4 sm:$0xff]  }
 0x1de   :  { %4028 = vmatpush1.bf16.msra.mxu0 %v6916_v58  ;;  %4157 = vmatpush1.bf16.msra.mxu1 %v6919_v59  ;;  %v6994_v58 = vld [vmem:[#allocation8 + $0x320] ss:$48 sps:$4 sm:$0xff]   ;;  %v6997_v59 = vld [vmem:[#allocation8 + $0x328] ss:$48 sps:$4 sm:$0xff]  }
 0x1df   :  { %4029 = vmatprep.subr.bf16.mxu0 %v6924_v60  ;;  %4158 = vmatprep.subr.bf16.mxu1 %v6927_v61  ;;  %v7002_v60 = vld [vmem:[#allocation8 + $0x384] ss:$48 sps:$4 sm:$0xff]   ;;  %v7005_v61 = vld [vmem:[#allocation8 + $0x38c] ss:$48 sps:$4 sm:$0xff]  }
 0x1e2   :  { %4030 = vmatpush1.bf16.msra.mxu0 %v6922_v62  ;;  %4159 = vmatpush1.bf16.msra.mxu1 %v6925_v63  ;;  %v7000_v62 = vld [vmem:[#allocation8 + $0x380] ss:$48 sps:$4 sm:$0xff]   ;;  %v7003_v63 = vld [vmem:[#allocation8 + $0x388] ss:$48 sps:$4 sm:$0xff]  }
 0x1e3   :  { %4031 = vmatprep.subr.bf16.mxu0 %v6930_v0  ;;  %4160 = vmatprep.subr.bf16.mxu1 %v6933_v1  ;;  %v7008_v0 = vld [vmem:[#allocation8 + $0x3e4] ss:$48 sps:$4 sm:$0xff]   ;;  %v7011_v1 = vld [vmem:[#allocation8 + $0x3ec] ss:$48 sps:$4 sm:$0xff]  }
 0x1e6   :  { %4032 = vmatpush1.bf16.msra.mxu0 %v6928_v2  ;;  %4161 = vmatpush1.bf16.msra.mxu1 %v6931_v3  ;;  %v7006_v2 = vld [vmem:[#allocation8 + $0x3e0] ss:$48 sps:$4 sm:$0xff]   ;;  %v7009_v3 = vld [vmem:[#allocation8 + $0x3e8] ss:$48 sps:$4 sm:$0xff]  }
 0x1e7   :  { %4033 = vmatprep.subr.bf16.mxu0 %v6936_v4  ;;  %4162 = vmatprep.subr.bf16.mxu1 %v6939_v5  ;;  %v7014_v4 = vld [vmem:[#allocation8 + $0x444] ss:$48 sps:$4 sm:$0xff]   ;;  %v7017_v5 = vld [vmem:[#allocation8 + $0x44c] ss:$48 sps:$4 sm:$0xff]  }
 0x1ea   :  { %4034 = vmatpush1.bf16.msra.mxu0 %v6934_v6  ;;  %4163 = vmatpush1.bf16.msra.mxu1 %v6937_v7  ;;  %v7012_v6 = vld [vmem:[#allocation8 + $0x440] ss:$48 sps:$4 sm:$0xff]   ;;  %v7015_v7 = vld [vmem:[#allocation8 + $0x448] ss:$48 sps:$4 sm:$0xff]  }
 0x1eb   :  { %4035 = vmatprep.subr.bf16.mxu0 %v6942_v8  ;;  %4164 = vmatprep.subr.bf16.mxu1 %v6945_v9  ;;  %v7020_v8 = vld [vmem:[#allocation8 + $0x4a4] ss:$48 sps:$4 sm:$0xff]   ;;  %v7023_v9 = vld [vmem:[#allocation8 + $0x4ac] ss:$48 sps:$4 sm:$0xff]  }
 0x1ee   :  { %4036 = vmatpush1.bf16.msra.mxu0 %v6940_v10  ;;  %4165 = vmatpush1.bf16.msra.mxu1 %v6943_v11  ;;  %v7018_v10 = vld [vmem:[#allocation8 + $0x4a0] ss:$48 sps:$4 sm:$0xff]   ;;  %v7021_v11 = vld [vmem:[#allocation8 + $0x4a8] ss:$48 sps:$4 sm:$0xff]  }
 0x1ef   :  { %4177 = vmatprep.subr.bf16.mxu0 %v6948_v12  ;;  %4306 = vmatprep.subr.bf16.mxu1 %v6951_v13  ;;  %v7026_v12 = vld [vmem:[#allocation8 + $0x504] ss:$48 sps:$4 sm:$0xff]   ;;  %v7029_v13 = vld [vmem:[#allocation8 + $0x50c] ss:$48 sps:$4 sm:$0xff]  }
 0x1f1   :  { %4038 = vmatmul.mubr.bf16.vlgmr.msra.gmra.mrb[4].mxu0 %v8145_v19  ;;  %4167 = vmatmul.mubr.bf16.vlgmr.msra.gmra.mrb[4].mxu1 %v8145_v19 }
 0x1f2   :  { %4178 = vmatpush1.bf16.msra.mxu0 %v6946_v14  ;;  %4307 = vmatpush1.bf16.msra.mxu1 %v6949_v15  ;;  %v7024_v14 = vld [vmem:[#allocation8 + $0x500] ss:$48 sps:$4 sm:$0xff]   ;;  %v7027_v15 = vld [vmem:[#allocation8 + $0x508] ss:$48 sps:$4 sm:$0xff]  }
 0x1f3   :  { %4179 = vmatprep.subr.bf16.mxu0 %v6954_v17  ;;  %4308 = vmatprep.subr.bf16.mxu1 %v6957_v18  ;;  %v7032_v17 = vld [vmem:[#allocation8 + $0x564] ss:$48 sps:$4 sm:$0xff]   ;;  %v7035_v18 = vld [vmem:[#allocation8 + $0x56c] ss:$48 sps:$4 sm:$0xff]  }
 0x1f4   :  { %4209 = vmatprep.mubr.bf16.mxu0 %v7249_v25  ;;  %4338 = vmatprep.mubr.bf16.mxu1 %v7249_v25  ;;  %v7036_v25 = vld [vmem:[#allocation8 + $0x5c0] ss:$48 sps:$4 sm:$0xff]  }
 0x1f6   :  { %4180 = vmatpush1.bf16.msra.mxu0 %v6952_v20  ;;  %4309 = vmatpush1.bf16.msra.mxu1 %v6955_v22  ;;  %v7030_v20 = vld [vmem:[#allocation8 + $0x560] ss:$48 sps:$4 sm:$0xff]   ;;  %v7033_v22 = vld [vmem:[#allocation8 + $0x568] ss:$48 sps:$4 sm:$0xff]  }
 0x1f7   :  { %4181 = vmatprep.subr.bf16.mxu0 %v6960_v23  ;;  %4310 = vmatprep.subr.bf16.mxu1 %v6963_v24  ;;  %v7038_v23 = vld [vmem:[#allocation8 + $0x5c4] ss:$48 sps:$4 sm:$0xff]   ;;  %v7041_v24 = vld [vmem:[#allocation8 + $0x5cc] ss:$48 sps:$4 sm:$0xff]  }
 0x1fa   :  { %4182 = vmatpush1.bf16.msra.mxu0 %v6958_v26  ;;  %4311 = vmatpush1.bf16.msra.mxu1 %v6961_v27  ;;  %v7039_v26 = vld [vmem:[#allocation8 + $0x5c8] ss:$48 sps:$4 sm:$0xff]   ;;  %v7044_v27 = vld [vmem:[#allocation8 + $0x624] ss:$48 sps:$4 sm:$0xff]  }
 0x1fb   :  { %4183 = vmatprep.subr.bf16.mxu0 %v6966_v28  ;;  %4312 = vmatprep.subr.bf16.mxu1 %v6969_v29  ;;  %v7047_v28 = vld [vmem:[#allocation8 + $0x62c] ss:$48 sps:$4 sm:$0xff]   ;;  %v7042_v29 = vld [vmem:[#allocation8 + $0x620] ss:$48 sps:$4 sm:$0xff]  }
 0x1fe   :  { %4184 = vmatpush1.bf16.msra.mxu0 %v6964_v30  ;;  %4313 = vmatpush1.bf16.msra.mxu1 %v6967_v31  ;;  %v7045_v30 = vld [vmem:[#allocation8 + $0x628] ss:$48 sps:$4 sm:$0xff]   ;;  %v7050_v31 = vld [vmem:[#allocation8 + $0x684] ss:$48 sps:$4 sm:$0xff]  }
 0x1ff   :  { %4185 = vmatprep.subr.bf16.mxu0 %v6972_v32  ;;  %4314 = vmatprep.subr.bf16.mxu1 %v6975_v33  ;;  %v7053_v32 = vld [vmem:[#allocation8 + $0x68c] ss:$48 sps:$4 sm:$0xff]   ;;  %v7250_v33 = vld [vmem:[#allocation3] ss:$24 sps:$4 sm:$0xff]  }
 0x202   :  { %4186 = vmatpush1.bf16.msra.mxu0 %v6970_v34  ;;  %4315 = vmatpush1.bf16.msra.mxu1 %v6973_v35  ;;  %v7048_v34 = vld [vmem:[#allocation8 + $0x680] ss:$48 sps:$4 sm:$0xff]   ;;  %v7051_v35 = vld [vmem:[#allocation8 + $0x688] ss:$48 sps:$4 sm:$0xff]  }
 0x203   :  { %4187 = vmatprep.subr.bf16.mxu0 %v6978_v36  ;;  %4316 = vmatprep.subr.bf16.mxu1 %v6981_v37  ;;  %v7056_v36 = vld [vmem:[#allocation8 + $0x6e4] ss:$48 sps:$4 sm:$0xff]   ;;  %v7059_v37 = vld [vmem:[#allocation8 + $0x6ec] ss:$48 sps:$4 sm:$0xff]  }
 0x204   :  { %v8149_v42 = vpop.f32.mrb[0].mxu0  ;;  %v8151_v43 = vpop.f32.mrb[0].mxu1 }
 0x205   :  { %v8153_v44 = vpop.f32.mrb[1].mxu0  ;;  %v8155_v45 = vpop.f32.mrb[1].mxu1 }
 0x206   :  { %v8157_v46 = vpop.f32.mrb[2].mxu0  ;;  %v8159_v47 = vpop.f32.mrb[2].mxu1  ;;  %4188 = vmatpush1.bf16.msra.mxu0 %v6976_v38  ;;  %4317 = vmatpush1.bf16.msra.mxu1 %v6979_v39  ;;  %v7251_v38 = vld [vmem:[#allocation3 + $0xc] ss:$24 sps:$4 sm:$0xff]   ;;  %v7054_v39 = vld [vmem:[#allocation8 + $0x6e0] ss:$48 sps:$4 sm:$0xff]  }
 0x207   :  { %v8161_v50 = vpop.f32.mrb[3].mxu0  ;;  %v8163_v51 = vpop.f32.mrb[3].mxu1  ;;  %4189 = vmatprep.subr.bf16.mxu0 %v6984_v40  ;;  %4318 = vmatprep.subr.bf16.mxu1 %v6987_v41  ;;  %v7057_v40 = vld [vmem:[#allocation8 + $0x6e8] ss:$48 sps:$4 sm:$0xff]   ;;  %v7062_v41 = vld [vmem:[#allocation8 + $0x744] ss:$48 sps:$4 sm:$0xff]  }
 0x20a   :  { %4190 = vmatpush1.bf16.msra.mxu0 %v6982_v48  ;;  %4319 = vmatpush1.bf16.msra.mxu1 %v6985_v49  ;;  %v7065_v48 = vld [vmem:[#allocation8 + $0x74c] ss:$48 sps:$4 sm:$0xff]   ;;  %v7060_v49 = vld [vmem:[#allocation8 + $0x740] ss:$48 sps:$4 sm:$0xff]  }
 0x20b   :  { %4191 = vmatprep.subr.bf16.mxu0 %v6990_v52  ;;  %4320 = vmatprep.subr.bf16.mxu1 %v6993_v53  ;;  %v7063_v52 = vld [vmem:[#allocation8 + $0x748] ss:$48 sps:$4 sm:$0xff]   ;;  %v7068_v53 = vld [vmem:[#allocation8 + $0x7a4] ss:$48 sps:$4 sm:$0xff]  }
 0x20e   :  { %4192 = vmatpush1.bf16.msra.mxu0 %v6988_v54  ;;  %4321 = vmatpush1.bf16.msra.mxu1 %v6991_v55  ;;  %v7071_v54 = vld [vmem:[#allocation8 + $0x7ac] ss:$48 sps:$4 sm:$0xff]   ;;  %v7066_v55 = vld [vmem:[#allocation8 + $0x7a0] ss:$48 sps:$4 sm:$0xff]  }
 0x20f   :  { %4193 = vmatprep.subr.bf16.mxu0 %v6996_v56  ;;  %4322 = vmatprep.subr.bf16.mxu1 %v6999_v57  ;;  %v7069_v56 = vld [vmem:[#allocation8 + $0x7a8] ss:$48 sps:$4 sm:$0xff]   ;;  %v7074_v57 = vld [vmem:[#allocation8 + $0x804] ss:$48 sps:$4 sm:$0xff]  }
 0x212   :  { %4194 = vmatpush1.bf16.msra.mxu0 %v6994_v58  ;;  %4323 = vmatpush1.bf16.msra.mxu1 %v6997_v59  ;;  %v7077_v58 = vld [vmem:[#allocation8 + $0x80c] ss:$48 sps:$4 sm:$0xff]   ;;  %v7072_v59 = vld [vmem:[#allocation8 + $0x800] ss:$48 sps:$4 sm:$0xff]  }
 0x213   :  { %4195 = vmatprep.subr.bf16.mxu0 %v7002_v60  ;;  %4324 = vmatprep.subr.bf16.mxu1 %v7005_v61  ;;  %v7075_v60 = vld [vmem:[#allocation8 + $0x808] ss:$48 sps:$4 sm:$0xff]   ;;  %v7080_v61 = vld [vmem:[#allocation8 + $0x864] ss:$48 sps:$4 sm:$0xff]  }
 0x216   :  { %4196 = vmatpush1.bf16.msra.mxu0 %v7000_v62  ;;  %4325 = vmatpush1.bf16.msra.mxu1 %v7003_v63  ;;  %v7083_v62 = vld [vmem:[#allocation8 + $0x86c] ss:$48 sps:$4 sm:$0xff]   ;;  %v7078_v63 = vld [vmem:[#allocation8 + $0x860] ss:$48 sps:$4 sm:$0xff]  }
 0x217   :  { %4197 = vmatprep.subr.bf16.mxu0 %v7008_v0  ;;  %4326 = vmatprep.subr.bf16.mxu1 %v7011_v1  ;;  %v7081_v0 = vld [vmem:[#allocation8 + $0x868] ss:$48 sps:$4 sm:$0xff]   ;;  %v7086_v1 = vld [vmem:[#allocation8 + $0x8c4] ss:$48 sps:$4 sm:$0xff]  }
 0x21a   :  { %4198 = vmatpush1.bf16.msra.mxu0 %v7006_v2  ;;  %4327 = vmatpush1.bf16.msra.mxu1 %v7009_v3  ;;  %v7089_v2 = vld [vmem:[#allocation8 + $0x8cc] ss:$48 sps:$4 sm:$0xff]   ;;  %v7084_v3 = vld [vmem:[#allocation8 + $0x8c0] ss:$48 sps:$4 sm:$0xff]  }
 0x21b   :  { %4199 = vmatprep.subr.bf16.mxu0 %v7014_v4  ;;  %4328 = vmatprep.subr.bf16.mxu1 %v7017_v5  ;;  %v7087_v4 = vld [vmem:[#allocation8 + $0x8c8] ss:$48 sps:$4 sm:$0xff]   ;;  %v7092_v5 = vld [vmem:[#allocation8 + $0x924] ss:$48 sps:$4 sm:$0xff]  }
 0x21e   :  { %4200 = vmatpush1.bf16.msra.mxu0 %v7012_v6  ;;  %4329 = vmatpush1.bf16.msra.mxu1 %v7015_v7  ;;  %v7095_v6 = vld [vmem:[#allocation8 + $0x92c] ss:$48 sps:$4 sm:$0xff]   ;;  %v7090_v7 = vld [vmem:[#allocation8 + $0x920] ss:$48 sps:$4 sm:$0xff]  }
 0x21f   :  { %4201 = vmatprep.subr.bf16.mxu0 %v7020_v8  ;;  %4330 = vmatprep.subr.bf16.mxu1 %v7023_v9  ;;  %v7093_v8 = vld [vmem:[#allocation8 + $0x928] ss:$48 sps:$4 sm:$0xff]   ;;  %v7098_v9 = vld [vmem:[#allocation8 + $0x984] ss:$48 sps:$4 sm:$0xff]  }
 0x222   :  { %4202 = vmatpush1.bf16.msra.mxu0 %v7018_v10  ;;  %4331 = vmatpush1.bf16.msra.mxu1 %v7021_v11  ;;  %v7101_v10 = vld [vmem:[#allocation8 + $0x98c] ss:$48 sps:$4 sm:$0xff]   ;;  %v7096_v11 = vld [vmem:[#allocation8 + $0x980] ss:$48 sps:$4 sm:$0xff]  }
 0x223   :  { %4203 = vmatprep.subr.bf16.mxu0 %v7026_v12  ;;  %4332 = vmatprep.subr.bf16.mxu1 %v7029_v13  ;;  %v7099_v12 = vld [vmem:[#allocation8 + $0x988] ss:$48 sps:$4 sm:$0xff]   ;;  %v7104_v13 = vld [vmem:[#allocation8 + $0x9e4] ss:$48 sps:$4 sm:$0xff]  }
 0x226   :  { %4204 = vmatpush1.bf16.msra.mxu0 %v7024_v14  ;;  %4333 = vmatpush1.bf16.msra.mxu1 %v7027_v15  ;;  %v7107_v14 = vld [vmem:[#allocation8 + $0x9ec] ss:$48 sps:$4 sm:$0xff]   ;;  %v7102_v15 = vld [vmem:[#allocation8 + $0x9e0] ss:$48 sps:$4 sm:$0xff]  }
 0x227   :  { %4205 = vmatprep.subr.bf16.mxu0 %v7032_v17  ;;  %4334 = vmatprep.subr.bf16.mxu1 %v7035_v18  ;;  %v7105_v17 = vld [vmem:[#allocation8 + $0x9e8] ss:$48 sps:$4 sm:$0xff]   ;;  %v7110_v18 = vld [vmem:[#allocation8 + $0xa44] ss:$48 sps:$4 sm:$0xff]  }
 0x22a   :  { %4206 = vmatpush1.bf16.msra.mxu0 %v7030_v20  ;;  %4335 = vmatpush1.bf16.msra.mxu1 %v7033_v22  ;;  %v7113_v20 = vld [vmem:[#allocation8 + $0xa4c] ss:$48 sps:$4 sm:$0xff]   ;;  %v7108_v22 = vld [vmem:[#allocation8 + $0xa40] ss:$48 sps:$4 sm:$0xff]  }
 0x22b   :  { %4207 = vmatprep.subr.bf16.mxu0 %v7038_v23  ;;  %4336 = vmatprep.subr.bf16.mxu1 %v7041_v24  ;;  %v7111_v23 = vld [vmem:[#allocation8 + $0xa48] ss:$48 sps:$4 sm:$0xff]   ;;  %v7116_v24 = vld [vmem:[#allocation8 + $0xaa4] ss:$48 sps:$4 sm:$0xff]  }
 0x22e   :  { %4208 = vmatpush1.bf16.msra.mxu0 %v7036_v25  ;;  %4337 = vmatpush1.bf16.msra.mxu1 %v7039_v26  ;;  %v7119_v25 = vld [vmem:[#allocation8 + $0xaac] ss:$48 sps:$4 sm:$0xff]   ;;  %v7114_v26 = vld [vmem:[#allocation8 + $0xaa0] ss:$48 sps:$4 sm:$0xff]  }
 0x22f   :  { %4220 = vmatprep.subr.bf16.mxu0 %v7044_v27  ;;  %4349 = vmatprep.subr.bf16.mxu1 %v7047_v28  ;;  %v7117_v27 = vld [vmem:[#allocation8 + $0xaa8] ss:$48 sps:$4 sm:$0xff]   ;;  %v7122_v28 = vld [vmem:[#allocation8 + $0xb04] ss:$48 sps:$4 sm:$0xff]  }
 0x231   :  { %4210 = vmatmul.mubr.bf16.vlgmr.msra.gmra.mrb[8].mxu0 %v7250_v33  ;;  %4339 = vmatmul.mubr.bf16.vlgmr.msra.gmra.mrb[8].mxu1 %v7250_v33  ;;  %v7131_v33 = vld [vmem:[#allocation8 + $0xb6c] ss:$48 sps:$4 sm:$0xff]  }
 0x232   :  { %4221 = vmatpush1.bf16.msra.mxu0 %v7042_v29  ;;  %4350 = vmatpush1.bf16.msra.mxu1 %v7045_v30  ;;  %v7125_v29 = vld [vmem:[#allocation8 + $0xb0c] ss:$48 sps:$4 sm:$0xff]   ;;  %v7120_v30 = vld [vmem:[#allocation8 + $0xb00] ss:$48 sps:$4 sm:$0xff]  }
 0x233   :  { %4222 = vmatprep.subr.bf16.mxu0 %v7050_v31  ;;  %4351 = vmatprep.subr.bf16.mxu1 %v7053_v32  ;;  %v7123_v31 = vld [vmem:[#allocation8 + $0xb08] ss:$48 sps:$4 sm:$0xff]   ;;  %v7128_v32 = vld [vmem:[#allocation8 + $0xb64] ss:$48 sps:$4 sm:$0xff]  }
 0x234   :  { %4252 = vmatprep.mubr.bf16.mxu0 %v7251_v38  ;;  %4381 = vmatprep.mubr.bf16.mxu1 %v7251_v38  ;;  %v7132_v38 = vld [vmem:[#allocation8 + $0xbc0] ss:$48 sps:$4 sm:$0xff]  }
 0x236   :  { %4223 = vmatpush1.bf16.msra.mxu0 %v7048_v34  ;;  %4352 = vmatpush1.bf16.msra.mxu1 %v7051_v35  ;;  %v7126_v34 = vld [vmem:[#allocation8 + $0xb60] ss:$48 sps:$4 sm:$0xff]   ;;  %v7129_v35 = vld [vmem:[#allocation8 + $0xb68] ss:$48 sps:$4 sm:$0xff]  }
 0x237   :  { %4224 = vmatprep.subr.bf16.mxu0 %v7056_v36  ;;  %4353 = vmatprep.subr.bf16.mxu1 %v7059_v37  ;;  %v7134_v36 = vld [vmem:[#allocation8 + $0xbc4] ss:$48 sps:$4 sm:$0xff]   ;;  %v7137_v37 = vld [vmem:[#allocation8 + $0xbcc] ss:$48 sps:$4 sm:$0xff]  }
 0x23a   :  { %4225 = vmatpush1.bf16.msra.mxu0 %v7054_v39  ;;  %4354 = vmatpush1.bf16.msra.mxu1 %v7057_v40  ;;  %v7135_v39 = vld [vmem:[#allocation8 + $0xbc8] ss:$48 sps:$4 sm:$0xff]   ;;  %v7140_v40 = vld [vmem:[#allocation8 + $0xc24] ss:$48 sps:$4 sm:$0xff]  }
 0x23b   :  { %4226 = vmatprep.subr.bf16.mxu0 %v7062_v41  ;;  %4355 = vmatprep.subr.bf16.mxu1 %v7065_v48  ;;  %v7143_v41 = vld [vmem:[#allocation8 + $0xc2c] ss:$48 sps:$4 sm:$0xff]   ;;  %v7138_v48 = vld [vmem:[#allocation8 + $0xc20] ss:$48 sps:$4 sm:$0xff]  }
 0x23e   :  { %4227 = vmatpush1.bf16.msra.mxu0 %v7060_v49  ;;  %4356 = vmatpush1.bf16.msra.mxu1 %v7063_v52  ;;  %v7141_v49 = vld [vmem:[#allocation8 + $0xc28] ss:$48 sps:$4 sm:$0xff]   ;;  %v7146_v52 = vld [vmem:[#allocation8 + $0xc84] ss:$48 sps:$4 sm:$0xff]  }
 0x23f   :  { %4228 = vmatprep.subr.bf16.mxu0 %v7068_v53  ;;  %4357 = vmatprep.subr.bf16.mxu1 %v7071_v54  ;;  %v7149_v53 = vld [vmem:[#allocation8 + $0xc8c] ss:$48 sps:$4 sm:$0xff]   ;;  %v7144_v54 = vld [vmem:[#allocation8 + $0xc80] ss:$48 sps:$4 sm:$0xff]  }
 0x242   :  { %4229 = vmatpush1.bf16.msra.mxu0 %v7066_v55  ;;  %4358 = vmatpush1.bf16.msra.mxu1 %v7069_v56  ;;  %v7147_v55 = vld [vmem:[#allocation8 + $0xc88] ss:$48 sps:$4 sm:$0xff]   ;;  %v7152_v56 = vld [vmem:[#allocation8 + $0xce4] ss:$48 sps:$4 sm:$0xff]  }
 0x243   :  { %4230 = vmatprep.subr.bf16.mxu0 %v7074_v57  ;;  %4359 = vmatprep.subr.bf16.mxu1 %v7077_v58  ;;  %v7155_v57 = vld [vmem:[#allocation8 + $0xcec] ss:$48 sps:$4 sm:$0xff]   ;;  %v7150_v58 = vld [vmem:[#allocation8 + $0xce0] ss:$48 sps:$4 sm:$0xff]  }
 0x246   :  { %4231 = vmatpush1.bf16.msra.mxu0 %v7072_v59  ;;  %4360 = vmatpush1.bf16.msra.mxu1 %v7075_v60  ;;  %v7153_v59 = vld [vmem:[#allocation8 + $0xce8] ss:$48 sps:$4 sm:$0xff]   ;;  %v7158_v60 = vld [vmem:[#allocation8 + $0xd44] ss:$48 sps:$4 sm:$0xff]  }
 0x247   :  { %4232 = vmatprep.subr.bf16.mxu0 %v7080_v61  ;;  %4361 = vmatprep.subr.bf16.mxu1 %v7083_v62  ;;  %v7156_v61 = vld [vmem:[#allocation8 + $0xd40] ss:$48 sps:$4 sm:$0xff]   ;;  %v7159_v62 = vld [vmem:[#allocation8 + $0xd48] ss:$48 sps:$4 sm:$0xff]  }
 0x24a   :  { %4233 = vmatpush1.bf16.msra.mxu0 %v7078_v63  ;;  %4362 = vmatpush1.bf16.msra.mxu1 %v7081_v0  ;;  %v7164_v63 = vld [vmem:[#allocation8 + $0xda4] ss:$48 sps:$4 sm:$0xff]   ;;  %v7167_v0 = vld [vmem:[#allocation8 + $0xdac] ss:$48 sps:$4 sm:$0xff]  }
 0x24b   :  { %4234 = vmatprep.subr.bf16.mxu0 %v7086_v1  ;;  %4363 = vmatprep.subr.bf16.mxu1 %v7089_v2  ;;  %v7162_v1 = vld [vmem:[#allocation8 + $0xda0] ss:$48 sps:$4 sm:$0xff]   ;;  %v7170_v2 = vld [vmem:[#allocation8 + $0xe04] ss:$48 sps:$4 sm:$0xff]  }
 0x24e   :  { %4235 = vmatpush1.bf16.msra.mxu0 %v7084_v3  ;;  %4364 = vmatpush1.bf16.msra.mxu1 %v7087_v4  ;;  %v7173_v3 = vld [vmem:[#allocation8 + $0xe0c] ss:$48 sps:$4 sm:$0xff]   ;;  %v7168_v4 = vld [vmem:[#allocation8 + $0xe00] ss:$48 sps:$4 sm:$0xff]  }
 0x24f   :  { %4236 = vmatprep.subr.bf16.mxu0 %v7092_v5  ;;  %4365 = vmatprep.subr.bf16.mxu1 %v7095_v6  ;;  %v7171_v5 = vld [vmem:[#allocation8 + $0xe08] ss:$48 sps:$4 sm:$0xff]   ;;  %v7176_v6 = vld [vmem:[#allocation8 + $0xe64] ss:$48 sps:$4 sm:$0xff]  }
 0x252   :  { %4237 = vmatpush1.bf16.msra.mxu0 %v7090_v7  ;;  %4366 = vmatpush1.bf16.msra.mxu1 %v7093_v8  ;;  %v7179_v7 = vld [vmem:[#allocation8 + $0xe6c] ss:$48 sps:$4 sm:$0xff]   ;;  %v7174_v8 = vld [vmem:[#allocation8 + $0xe60] ss:$48 sps:$4 sm:$0xff]  }
 0x253   :  { %4238 = vmatprep.subr.bf16.mxu0 %v7098_v9  ;;  %4367 = vmatprep.subr.bf16.mxu1 %v7101_v10  ;;  %v7177_v9 = vld [vmem:[#allocation8 + $0xe68] ss:$48 sps:$4 sm:$0xff]   ;;  %v7182_v10 = vld [vmem:[#allocation8 + $0xec4] ss:$48 sps:$4 sm:$0xff]  }
 0x256   :  { %4239 = vmatpush1.bf16.msra.mxu0 %v7096_v11  ;;  %4368 = vmatpush1.bf16.msra.mxu1 %v7099_v12  ;;  %v7185_v11 = vld [vmem:[#allocation8 + $0xecc] ss:$48 sps:$4 sm:$0xff]   ;;  %v7180_v12 = vld [vmem:[#allocation8 + $0xec0] ss:$48 sps:$4 sm:$0xff]  }
 0x257   :  { %4240 = vmatprep.subr.bf16.mxu0 %v7104_v13  ;;  %4369 = vmatprep.subr.bf16.mxu1 %v7107_v14  ;;  %v7183_v13 = vld [vmem:[#allocation8 + $0xec8] ss:$48 sps:$4 sm:$0xff]   ;;  %v7188_v14 = vld [vmem:[#allocation8 + $0xf24] ss:$48 sps:$4 sm:$0xff]  }
 0x25a   :  { %4241 = vmatpush1.bf16.msra.mxu0 %v7102_v15  ;;  %4370 = vmatpush1.bf16.msra.mxu1 %v7105_v17  ;;  %v7191_v15 = vld [vmem:[#allocation8 + $0xf2c] ss:$48 sps:$4 sm:$0xff]   ;;  %v7186_v17 = vld [vmem:[#allocation8 + $0xf20] ss:$48 sps:$4 sm:$0xff]  }
 0x25b   :  { %4242 = vmatprep.subr.bf16.mxu0 %v7110_v18  ;;  %4371 = vmatprep.subr.bf16.mxu1 %v7113_v20  ;;  %v7189_v18 = vld [vmem:[#allocation8 + $0xf28] ss:$48 sps:$4 sm:$0xff]   ;;  %v7194_v20 = vld [vmem:[#allocation8 + $0xf84] ss:$48 sps:$4 sm:$0xff]  }
 0x25e   :  { %4243 = vmatpush1.bf16.msra.mxu0 %v7108_v22  ;;  %4372 = vmatpush1.bf16.msra.mxu1 %v7111_v23  ;;  %v7197_v22 = vld [vmem:[#allocation8 + $0xf8c] ss:$48 sps:$4 sm:$0xff]   ;;  %v7192_v23 = vld [vmem:[#allocation8 + $0xf80] ss:$48 sps:$4 sm:$0xff]  }
 0x25f   :  { %4244 = vmatprep.subr.bf16.mxu0 %v7116_v24  ;;  %4373 = vmatprep.subr.bf16.mxu1 %v7119_v25  ;;  %v7195_v24 = vld [vmem:[#allocation8 + $0xf88] ss:$48 sps:$4 sm:$0xff]   ;;  %v7200_v25 = vld [vmem:[#allocation8 + $0xfe4] ss:$48 sps:$4 sm:$0xff]  }
 0x262   :  { %4245 = vmatpush1.bf16.msra.mxu0 %v7114_v26  ;;  %4374 = vmatpush1.bf16.msra.mxu1 %v7117_v27  ;;  %v7203_v26 = vld [vmem:[#allocation8 + $0xfec] ss:$48 sps:$4 sm:$0xff]   ;;  %v7198_v27 = vld [vmem:[#allocation8 + $0xfe0] ss:$48 sps:$4 sm:$0xff]  }
 0x263   :  { %4246 = vmatprep.subr.bf16.mxu0 %v7122_v28  ;;  %4375 = vmatprep.subr.bf16.mxu1 %v7125_v29  ;;  %v7201_v28 = vld [vmem:[#allocation8 + $0xfe8] ss:$48 sps:$4 sm:$0xff]   ;;  %v7206_v29 = vld [vmem:[#allocation8 + $0x1044] ss:$48 sps:$4 sm:$0xff]  }
 0x266   :  { %4247 = vmatpush1.bf16.msra.mxu0 %v7120_v30  ;;  %4376 = vmatpush1.bf16.msra.mxu1 %v7123_v31  ;;  %v7209_v30 = vld [vmem:[#allocation8 + $0x104c] ss:$48 sps:$4 sm:$0xff]   ;;  %v7204_v31 = vld [vmem:[#allocation8 + $0x1040] ss:$48 sps:$4 sm:$0xff]  }
 0x267   :  { %4248 = vmatprep.subr.bf16.mxu0 %v7128_v32  ;;  %4377 = vmatprep.subr.bf16.mxu1 %v7131_v33  ;;  %v7207_v32 = vld [vmem:[#allocation8 + $0x1048] ss:$48 sps:$4 sm:$0xff]   ;;  %v7212_v33 = vld [vmem:[#allocation8 + $0x10a4] ss:$48 sps:$4 sm:$0xff]  }
 0x26a   :  { %4249 = vmatpush1.bf16.msra.mxu0 %v7126_v34  ;;  %4378 = vmatpush1.bf16.msra.mxu1 %v7129_v35  ;;  %v7215_v34 = vld [vmem:[#allocation8 + $0x10ac] ss:$48 sps:$4 sm:$0xff]   ;;  %v7210_v35 = vld [vmem:[#allocation8 + $0x10a0] ss:$48 sps:$4 sm:$0xff]  }
 0x26b   :  { %4250 = vmatprep.subr.bf16.mxu0 %v7134_v36  ;;  %4379 = vmatprep.subr.bf16.mxu1 %v7137_v37  ;;  %v7213_v36 = vld [vmem:[#allocation8 + $0x10a8] ss:$48 sps:$4 sm:$0xff]   ;;  %v7218_v37 = vld [vmem:[#allocation8 + $0x1104] ss:$48 sps:$4 sm:$0xff]  }
 0x26e   :  { %4251 = vmatpush1.bf16.msra.mxu0 %v7132_v38  ;;  %4380 = vmatpush1.bf16.msra.mxu1 %v7135_v39  ;;  %v7221_v38 = vld [vmem:[#allocation8 + $0x110c] ss:$48 sps:$4 sm:$0xff]   ;;  %v7216_v39 = vld [vmem:[#allocation8 + $0x1100] ss:$48 sps:$4 sm:$0xff]  }
 0x26f   :  { %4263 = vmatprep.subr.bf16.mxu0 %v7140_v40  ;;  %4392 = vmatprep.subr.bf16.mxu1 %v7143_v41  ;;  %v7219_v40 = vld [vmem:[#allocation8 + $0x1108] ss:$48 sps:$4 sm:$0xff]   ;;  %v7224_v41 = vld [vmem:[#allocation8 + $0x1164] ss:$48 sps:$4 sm:$0xff]  }
 0x271   :  { %4253 = vmatmul.mubr.bf16.vlgmr.msra.gmra.mrb[8].mxu0 %v8137_v16  ;;  %4382 = vmatmul.mubr.bf16.vlgmr.msra.gmra.mrb[8].mxu1 %v8137_v16  ;;  %v7161_v16 = vld [vmem:[#allocation8 + $0xd4c] ss:$48 sps:$4 sm:$0xff]  }
 0x272   :  { %4264 = vmatpush1.bf16.msra.mxu0 %v7138_v48  ;;  %4393 = vmatpush1.bf16.msra.mxu1 %v7141_v49  ;;  %v7227_v48 = vld [vmem:[#allocation8 + $0x116c] ss:$48 sps:$4 sm:$0xff]   ;;  %v7222_v49 = vld [vmem:[#allocation8 + $0x1160] ss:$48 sps:$4 sm:$0xff]  }
 0x273   :  { %4265 = vmatprep.subr.bf16.mxu0 %v7146_v52  ;;  %4394 = vmatprep.subr.bf16.mxu1 %v7149_v53  ;;  %v7225_v52 = vld [vmem:[#allocation8 + $0x1168] ss:$48 sps:$4 sm:$0xff]   ;;  %v7230_v53 = vld [vmem:[#allocation8 + $0x11c4] ss:$48 sps:$4 sm:$0xff]  }
 0x274   :  { %4295 = vmatprep.mubr.bf16.mxu0 %v8141_v21  ;;  %4424 = vmatprep.mubr.bf16.mxu1 %v8141_v21  ;;  %v7165_v21 = vld [vmem:[#allocation8 + $0xda8] ss:$48 sps:$4 sm:$0xff]  }
 0x276   :  { %4266 = vmatpush1.bf16.msra.mxu0 %v7144_v54  ;;  %4395 = vmatpush1.bf16.msra.mxu1 %v7147_v55  ;;  %v7233_v54 = vld [vmem:[#allocation8 + $0x11cc] ss:$48 sps:$4 sm:$0xff]   ;;  %v7228_v55 = vld [vmem:[#allocation8 + $0x11c0] ss:$48 sps:$4 sm:$0xff]  }
 0x277   :  { %4267 = vmatprep.subr.bf16.mxu0 %v7152_v56  ;;  %4396 = vmatprep.subr.bf16.mxu1 %v7155_v57  ;;  %v7231_v56 = vld [vmem:[#allocation8 + $0x11c8] ss:$48 sps:$4 sm:$0xff]   ;;  %v7252_v57 = vld [vmem:[#allocation8 + $0x4] ss:$48 sps:$4 sm:$0xff]  }
 0x27a   :  { %4268 = vmatpush1.bf16.msra.mxu0 %v7150_v58  ;;  %4397 = vmatpush1.bf16.msra.mxu1 %v7153_v59  ;;  %v7253_v58 = vld [vmem:[#allocation8 + $0xc] ss:$48 sps:$4 sm:$0xff]  }
 0x27b   :  { %4269 = vmatprep.subr.bf16.mxu0 %v7158_v60  ;;  %4398 = vmatprep.subr.bf16.mxu1 %v7161_v16  ;;  %v8169_v59 = vld [vmem:[#allocation6 + $0x4] ss:$24 sps:$4 sm:$0xff]   ;;  %v7254_v60 = vld [vmem:[#allocation8] ss:$48 sps:$4 sm:$0xff]   ;;  %v7255_v16 = vld [vmem:[#allocation8 + $0x8] ss:$48 sps:$4 sm:$0xff]  }
 0x27e   :  { %4270 = vmatpush1.bf16.msra.mxu0 %v7156_v61  ;;  %4399 = vmatpush1.bf16.msra.mxu1 %v7159_v62  ;;  %v7256_v61 = vld [vmem:[#allocation8 + $0x64] ss:$48 sps:$4 sm:$0xff]   ;;  %v7257_v62 = vld [vmem:[#allocation8 + $0x6c] ss:$48 sps:$4 sm:$0xff]  }
 0x27f   :  { %4271 = vmatprep.subr.bf16.mxu0 %v7164_v63  ;;  %4400 = vmatprep.subr.bf16.mxu1 %v7167_v0  ;;  %v7258_v63 = vld [vmem:[#allocation8 + $0x60] ss:$48 sps:$4 sm:$0xff]   ;;  %v7259_v0 = vld [vmem:[#allocation8 + $0x68] ss:$48 sps:$4 sm:$0xff]  }
 0x282   :  { %4272 = vmatpush1.bf16.msra.mxu0 %v7162_v1  ;;  %4401 = vmatpush1.bf16.msra.mxu1 %v7165_v21  ;;  %v7260_v1 = vld [vmem:[#allocation8 + $0xc4] ss:$48 sps:$4 sm:$0xff]   ;;  %v7261_v21 = vld [vmem:[#allocation8 + $0xcc] ss:$48 sps:$4 sm:$0xff]  }
 0x283   :  { %4273 = vmatprep.subr.bf16.mxu0 %v7170_v2  ;;  %4402 = vmatprep.subr.bf16.mxu1 %v7173_v3  ;;  %v7263_v2 = vld [vmem:[#allocation8 + $0xc8] ss:$48 sps:$4 sm:$0xff]   ;;  %v7264_v3 = vld [vmem:[#allocation8 + $0x124] ss:$48 sps:$4 sm:$0xff]  }
 0x286   :  { %4274 = vmatpush1.bf16.msra.mxu0 %v7168_v4  ;;  %4403 = vmatpush1.bf16.msra.mxu1 %v7171_v5  ;;  %v7265_v4 = vld [vmem:[#allocation8 + $0x12c] ss:$48 sps:$4 sm:$0xff]   ;;  %v7266_v5 = vld [vmem:[#allocation8 + $0x120] ss:$48 sps:$4 sm:$0xff]  }
 0x287   :  { %4275 = vmatprep.subr.bf16.mxu0 %v7176_v6  ;;  %4404 = vmatprep.subr.bf16.mxu1 %v7179_v7  ;;  %v7267_v6 = vld [vmem:[#allocation8 + $0x128] ss:$48 sps:$4 sm:$0xff]   ;;  %v7268_v7 = vld [vmem:[#allocation8 + $0x184] ss:$48 sps:$4 sm:$0xff]  }
 0x28a   :  { %4276 = vmatpush1.bf16.msra.mxu0 %v7174_v8  ;;  %4405 = vmatpush1.bf16.msra.mxu1 %v7177_v9  ;;  %v7269_v8 = vld [vmem:[#allocation8 + $0x18c] ss:$48 sps:$4 sm:$0xff]   ;;  %v7270_v9 = vld [vmem:[#allocation8 + $0x180] ss:$48 sps:$4 sm:$0xff]  }
 0x28b   :  { %4277 = vmatprep.subr.bf16.mxu0 %v7182_v10  ;;  %4406 = vmatprep.subr.bf16.mxu1 %v7185_v11  ;;  %v7271_v10 = vld [vmem:[#allocation8 + $0x188] ss:$48 sps:$4 sm:$0xff]   ;;  %v7272_v11 = vld [vmem:[#allocation8 + $0x1e4] ss:$48 sps:$4 sm:$0xff]  }
 0x28e   :  { %4278 = vmatpush1.bf16.msra.mxu0 %v7180_v12  ;;  %4407 = vmatpush1.bf16.msra.mxu1 %v7183_v13  ;;  %v7273_v12 = vld [vmem:[#allocation8 + $0x1ec] ss:$48 sps:$4 sm:$0xff]  }
 0x28f   :  { %4279 = vmatprep.subr.bf16.mxu0 %v7188_v14  ;;  %4408 = vmatprep.subr.bf16.mxu1 %v7191_v15 }
 0x292   :  { %4280 = vmatpush1.bf16.msra.mxu0 %v7186_v17  ;;  %4409 = vmatpush1.bf16.msra.mxu1 %v7189_v18 }
 0x293   :  { %4281 = vmatprep.subr.bf16.mxu0 %v7194_v20  ;;  %4410 = vmatprep.subr.bf16.mxu1 %v7197_v22  ;;  %v7274_v22 = vld [vmem:[#allocation8 + $0x1e0] ss:$48 sps:$4 sm:$0xff]  }
 0x296   :  { %4282 = vmatpush1.bf16.msra.mxu0 %v7192_v23  ;;  %4411 = vmatpush1.bf16.msra.mxu1 %v7195_v24  ;;  %v7275_v23 = vld [vmem:[#allocation8 + $0x1e8] ss:$48 sps:$4 sm:$0xff]  }
 0x297   :  { %4283 = vmatprep.subr.bf16.mxu0 %v7200_v25  ;;  %4412 = vmatprep.subr.bf16.mxu1 %v7203_v26  ;;  %v7276_v26 = vld [vmem:[#allocation8 + $0x244] ss:$48 sps:$4 sm:$0xff]  }
 0x29a   :  { %4284 = vmatpush1.bf16.msra.mxu0 %v7198_v27  ;;  %4413 = vmatpush1.bf16.msra.mxu1 %v7201_v28  ;;  %v7277_v27 = vld [vmem:[#allocation8 + $0x24c] ss:$48 sps:$4 sm:$0xff]   ;;  %v7278_v28 = vld [vmem:[#allocation8 + $0x240] ss:$48 sps:$4 sm:$0xff]  }
 0x29b   :  { %4285 = vmatprep.subr.bf16.mxu0 %v7206_v29  ;;  %4414 = vmatprep.subr.bf16.mxu1 %v7209_v30  ;;  %v7279_v29 = vld [vmem:[#allocation8 + $0x248] ss:$48 sps:$4 sm:$0xff]   ;;  %v7280_v30 = vld [vmem:[#allocation8 + $0x2a4] ss:$48 sps:$4 sm:$0xff]  }
 0x29e   :  { %4286 = vmatpush1.bf16.msra.mxu0 %v7204_v31  ;;  %4415 = vmatpush1.bf16.msra.mxu1 %v7207_v32  ;;  %v7281_v31 = vld [vmem:[#allocation8 + $0x2ac] ss:$48 sps:$4 sm:$0xff]   ;;  %v7282_v32 = vld [vmem:[#allocation8 + $0x2a0] ss:$48 sps:$4 sm:$0xff]  }
 0x29f   :  { %4287 = vmatprep.subr.bf16.mxu0 %v7212_v33  ;;  %4416 = vmatprep.subr.bf16.mxu1 %v7215_v34  ;;  %v7283_v33 = vld [vmem:[#allocation8 + $0x2a8] ss:$48 sps:$4 sm:$0xff]   ;;  %v7284_v34 = vld [vmem:[#allocation8 + $0x304] ss:$48 sps:$4 sm:$0xff]  }
 0x2a2   :  { %4288 = vmatpush1.bf16.msra.mxu0 %v7210_v35  ;;  %4417 = vmatpush1.bf16.msra.mxu1 %v7213_v36  ;;  %v7285_v35 = vld [vmem:[#allocation8 + $0x30c] ss:$48 sps:$4 sm:$0xff]   ;;  %v7286_v36 = vld [vmem:[#allocation8 + $0x300] ss:$48 sps:$4 sm:$0xff]  }
 0x2a3   :  { %4289 = vmatprep.subr.bf16.mxu0 %v7218_v37  ;;  %4418 = vmatprep.subr.bf16.mxu1 %v7221_v38  ;;  %v7287_v37 = vld [vmem:[#allocation8 + $0x308] ss:$48 sps:$4 sm:$0xff]   ;;  %v7288_v38 = vld [vmem:[#allocation8 + $0x364] ss:$48 sps:$4 sm:$0xff]  }
 0x2a6   :  { %4290 = vmatpush1.bf16.msra.mxu0 %v7216_v39  ;;  %4419 = vmatpush1.bf16.msra.mxu1 %v7219_v40  ;;  %v7289_v39 = vld [vmem:[#allocation8 + $0x36c] ss:$48 sps:$4 sm:$0xff]   ;;  %v7290_v40 = vld [vmem:[#allocation8 + $0x360] ss:$48 sps:$4 sm:$0xff]  }
 0x2a7   :  { %4291 = vmatprep.subr.bf16.mxu0 %v7224_v41  ;;  %4420 = vmatprep.subr.bf16.mxu1 %v7227_v48  ;;  %v7291_v41 = vld [vmem:[#allocation8 + $0x368] ss:$48 sps:$4 sm:$0xff]   ;;  %v7292_v48 = vld [vmem:[#allocation8 + $0x3c4] ss:$48 sps:$4 sm:$0xff]  }
 0x2aa   :  { %4292 = vmatpush1.bf16.msra.mxu0 %v7222_v49  ;;  %4421 = vmatpush1.bf16.msra.mxu1 %v7225_v52  ;;  %v7293_v49 = vld [vmem:[#allocation8 + $0x3cc] ss:$48 sps:$4 sm:$0xff]   ;;  %v7294_v52 = vld [vmem:[#allocation8 + $0x3c0] ss:$48 sps:$4 sm:$0xff]  }
 0x2ab   :  { %4293 = vmatprep.subr.bf16.mxu0 %v7230_v53  ;;  %4422 = vmatprep.subr.bf16.mxu1 %v7233_v54  ;;  %v7295_v53 = vld [vmem:[#allocation8 + $0x3c8] ss:$48 sps:$4 sm:$0xff]   ;;  %v7296_v54 = vld [vmem:[#allocation8 + $0x424] ss:$48 sps:$4 sm:$0xff]  }
 0x2ae   :  { %4294 = vmatpush1.bf16.msra.mxu0 %v7228_v55  ;;  %4423 = vmatpush1.bf16.msra.mxu1 %v7231_v56  ;;  %v7297_v55 = vld [vmem:[#allocation8 + $0x42c] ss:$48 sps:$4 sm:$0xff]   ;;  %v7298_v56 = vld [vmem:[#allocation8 + $0x420] ss:$48 sps:$4 sm:$0xff]  }
 0x2af   :  { %4519 = vmatprep.subr.bf16.mxu0 %v7252_v57  ;;  %4648 = vmatprep.subr.bf16.mxu1 %v7253_v58  ;;  %v7299_v57 = vld [vmem:[#allocation8 + $0x428] ss:$48 sps:$4 sm:$0xff]   ;;  %v7300_v58 = vld [vmem:[#allocation8 + $0x484] ss:$48 sps:$4 sm:$0xff]  }
 0x2b1   :  { %4296 = vmatmul.mubr.bf16.vlgmr.msra.gmra.mrb[8].mxu0 %v8145_v19  ;;  %4425 = vmatmul.mubr.bf16.vlgmr.msra.gmra.mrb[8].mxu1 %v8145_v19  ;;  %v7262_v19 = vld [vmem:[#allocation8 + $0xc0] ss:$48 sps:$4 sm:$0xff]  }
 0x2b2   :  { %4520 = vmatpush1.bf16.msra.mxu0 %v7254_v60  ;;  %4649 = vmatpush1.bf16.msra.mxu1 %v7255_v16  ;;  %v7301_v60 = vld [vmem:[#allocation8 + $0x48c] ss:$48 sps:$4 sm:$0xff]   ;;  %v7302_v16 = vld [vmem:[#allocation8 + $0x480] ss:$48 sps:$4 sm:$0xff]  }
 0x2b3   :  { %4521 = vmatprep.subr.bf16.mxu0 %v7256_v61  ;;  %4650 = vmatprep.subr.bf16.mxu1 %v7257_v62  ;;  %v7303_v61 = vld [vmem:[#allocation8 + $0x488] ss:$48 sps:$4 sm:$0xff]   ;;  %v7304_v62 = vld [vmem:[#allocation8 + $0x4e4] ss:$48 sps:$4 sm:$0xff]  }
 0x2b4   :  { %4551 = vmatprep.mubr.bf16.mxu0 %v8169_v59  ;;  %4680 = vmatprep.mubr.bf16.mxu1 %v8169_v59 }
 0x2b6   :  { %4522 = vmatpush1.bf16.msra.mxu0 %v7258_v63  ;;  %4651 = vmatpush1.bf16.msra.mxu1 %v7259_v0  ;;  %v7305_v63 = vld [vmem:[#allocation8 + $0x4ec] ss:$48 sps:$4 sm:$0xff]   ;;  %v7306_v0 = vld [vmem:[#allocation8 + $0x4e0] ss:$48 sps:$4 sm:$0xff]  }
 0x2b7   :  { %4523 = vmatprep.subr.bf16.mxu0 %v7260_v1  ;;  %4652 = vmatprep.subr.bf16.mxu1 %v7261_v21  ;;  %v7307_v1 = vld [vmem:[#allocation8 + $0x4e8] ss:$48 sps:$4 sm:$0xff]   ;;  %v7308_v21 = vld [vmem:[#allocation8 + $0x544] ss:$48 sps:$4 sm:$0xff]  }
 0x2ba   :  { %4524 = vmatpush1.bf16.msra.mxu0 %v7262_v19  ;;  %4653 = vmatpush1.bf16.msra.mxu1 %v7263_v2  ;;  %v7309_v19 = vld [vmem:[#allocation8 + $0x54c] ss:$48 sps:$4 sm:$0xff]   ;;  %v7310_v2 = vld [vmem:[#allocation8 + $0x540] ss:$48 sps:$4 sm:$0xff]  }
 0x2bb   :  { %4525 = vmatprep.subr.bf16.mxu0 %v7264_v3  ;;  %4654 = vmatprep.subr.bf16.mxu1 %v7265_v4  ;;  %v7311_v3 = vld [vmem:[#allocation8 + $0x548] ss:$48 sps:$4 sm:$0xff]   ;;  %v7312_v4 = vld [vmem:[#allocation8 + $0x5a4] ss:$48 sps:$4 sm:$0xff]  }
 0x2be   :  { %4526 = vmatpush1.bf16.msra.mxu0 %v7266_v5  ;;  %4655 = vmatpush1.bf16.msra.mxu1 %v7267_v6  ;;  %v7313_v5 = vld [vmem:[#allocation8 + $0x5ac] ss:$48 sps:$4 sm:$0xff]   ;;  %v8191_v6 = vld [vmem:[#allocation6] ss:$24 sps:$4 sm:$0xff]  }
 0x2bf   :  { %4527 = vmatprep.subr.bf16.mxu0 %v7268_v7  ;;  %4656 = vmatprep.subr.bf16.mxu1 %v7269_v8  ;;  %v7314_v7 = vld [vmem:[#allocation8 + $0x5a0] ss:$48 sps:$4 sm:$0xff]   ;;  %v7315_v8 = vld [vmem:[#allocation8 + $0x5a8] ss:$48 sps:$4 sm:$0xff]  }
 0x2c2   :  { %4528 = vmatpush1.bf16.msra.mxu0 %v7270_v9  ;;  %4657 = vmatpush1.bf16.msra.mxu1 %v7271_v10  ;;  %v7316_v9 = vld [vmem:[#allocation8 + $0x604] ss:$48 sps:$4 sm:$0xff]   ;;  %v7317_v10 = vld [vmem:[#allocation8 + $0x60c] ss:$48 sps:$4 sm:$0xff]  }
 0x2c3   :  { %4529 = vmatprep.subr.bf16.mxu0 %v7272_v11  ;;  %4658 = vmatprep.subr.bf16.mxu1 %v7273_v12  ;;  %v8193_v11 = vld [vmem:[#allocation6 + $0xc] ss:$24 sps:$4 sm:$0xff]   ;;  %v7318_v12 = vld [vmem:[#allocation8 + $0x600] ss:$48 sps:$4 sm:$0xff]  }
 0x2c4   :  { %v8175_v13 = vpop.f32.mrb[4].mxu0  ;;  %v8177_v14 = vpop.f32.mrb[4].mxu1 }
 0x2c5   :  { %v8179_v15 = vpop.f32.mrb[5].mxu0  ;;  %v8181_v17 = vpop.f32.mrb[5].mxu1 }
 0x2c6   :  { %v8183_v18 = vpop.f32.mrb[6].mxu0  ;;  %v8185_v20 = vpop.f32.mrb[6].mxu1  ;;  %4530 = vmatpush1.bf16.msra.mxu0 %v7274_v22  ;;  %4659 = vmatpush1.bf16.msra.mxu1 %v7275_v23  ;;  %v7319_v22 = vld [vmem:[#allocation8 + $0x608] ss:$48 sps:$4 sm:$0xff]   ;;  %v7320_v23 = vld [vmem:[#allocation8 + $0x664] ss:$48 sps:$4 sm:$0xff]  }
 0x2c7   :  { %v8187_v24 = vpop.f32.mrb[7].mxu0  ;;  %v8189_v25 = vpop.f32.mrb[7].mxu1  ;;  %4531 = vmatprep.subr.bf16.mxu0 %v7276_v26  ;;  %4660 = vmatprep.subr.bf16.mxu1 %v7277_v27  ;;  %v7321_v26 = vld [vmem:[#allocation8 + $0x66c] ss:$48 sps:$4 sm:$0xff]   ;;  %v7322_v27 = vld [vmem:[#allocation8 + $0x660] ss:$48 sps:$4 sm:$0xff]  }
 0x2ca   :  { %4532 = vmatpush1.bf16.msra.mxu0 %v7278_v28  ;;  %4661 = vmatpush1.bf16.msra.mxu1 %v7279_v29  ;;  %v7323_v28 = vld [vmem:[#allocation8 + $0x668] ss:$48 sps:$4 sm:$0xff]   ;;  %v7324_v29 = vld [vmem:[#allocation8 + $0x6c4] ss:$48 sps:$4 sm:$0xff]  }
 0x2cb   :  { %4533 = vmatprep.subr.bf16.mxu0 %v7280_v30  ;;  %4662 = vmatprep.subr.bf16.mxu1 %v7281_v31  ;;  %v7325_v30 = vld [vmem:[#allocation8 + $0x6cc] ss:$48 sps:$4 sm:$0xff]   ;;  %v7326_v31 = vld [vmem:[#allocation8 + $0x6c0] ss:$48 sps:$4 sm:$0xff]  }
 0x2ce   :  { %4534 = vmatpush1.bf16.msra.mxu0 %v7282_v32  ;;  %4663 = vmatpush1.bf16.msra.mxu1 %v7283_v33  ;;  %v7327_v32 = vld [vmem:[#allocation8 + $0x6c8] ss:$48 sps:$4 sm:$0xff]   ;;  %v7328_v33 = vld [vmem:[#allocation8 + $0x724] ss:$48 sps:$4 sm:$0xff]  }
 0x2cf   :  { %4535 = vmatprep.subr.bf16.mxu0 %v7284_v34  ;;  %4664 = vmatprep.subr.bf16.mxu1 %v7285_v35  ;;  %v7329_v34 = vld [vmem:[#allocation8 + $0x72c] ss:$48 sps:$4 sm:$0xff]   ;;  %v7330_v35 = vld [vmem:[#allocation8 + $0x720] ss:$48 sps:$4 sm:$0xff]  }
 0x2d2   :  { %4536 = vmatpush1.bf16.msra.mxu0 %v7286_v36  ;;  %4665 = vmatpush1.bf16.msra.mxu1 %v7287_v37  ;;  %v7331_v36 = vld [vmem:[#allocation8 + $0x728] ss:$48 sps:$4 sm:$0xff]   ;;  %v7332_v37 = vld [vmem:[#allocation8 + $0x784] ss:$48 sps:$4 sm:$0xff]  }
 0x2d3   :  { %4537 = vmatprep.subr.bf16.mxu0 %v7288_v38  ;;  %4666 = vmatprep.subr.bf16.mxu1 %v7289_v39  ;;  %v7333_v38 = vld [vmem:[#allocation8 + $0x78c] ss:$48 sps:$4 sm:$0xff]   ;;  %v7334_v39 = vld [vmem:[#allocation8 + $0x780] ss:$48 sps:$4 sm:$0xff]  }
 0x2d6   :  { %4538 = vmatpush1.bf16.msra.mxu0 %v7290_v40  ;;  %4667 = vmatpush1.bf16.msra.mxu1 %v7291_v41  ;;  %v7335_v40 = vld [vmem:[#allocation8 + $0x788] ss:$48 sps:$4 sm:$0xff]   ;;  %v7336_v41 = vld [vmem:[#allocation8 + $0x7e4] ss:$48 sps:$4 sm:$0xff]  }
 0x2d7   :  { %4539 = vmatprep.subr.bf16.mxu0 %v7292_v48  ;;  %4668 = vmatprep.subr.bf16.mxu1 %v7293_v49  ;;  %v7337_v48 = vld [vmem:[#allocation8 + $0x7ec] ss:$48 sps:$4 sm:$0xff]   ;;  %v7338_v49 = vld [vmem:[#allocation8 + $0x7e0] ss:$48 sps:$4 sm:$0xff]  }
 0x2da   :  { %4540 = vmatpush1.bf16.msra.mxu0 %v7294_v52  ;;  %4669 = vmatpush1.bf16.msra.mxu1 %v7295_v53  ;;  %v7339_v52 = vld [vmem:[#allocation8 + $0x7e8] ss:$48 sps:$4 sm:$0xff]   ;;  %v7340_v53 = vld [vmem:[#allocation8 + $0x844] ss:$48 sps:$4 sm:$0xff]  }
 0x2db   :  { %4541 = vmatprep.subr.bf16.mxu0 %v7296_v54  ;;  %4670 = vmatprep.subr.bf16.mxu1 %v7297_v55  ;;  %v7341_v54 = vld [vmem:[#allocation8 + $0x84c] ss:$48 sps:$4 sm:$0xff]   ;;  %v7342_v55 = vld [vmem:[#allocation8 + $0x840] ss:$48 sps:$4 sm:$0xff]  }
 0x2de   :  { %4542 = vmatpush1.bf16.msra.mxu0 %v7298_v56  ;;  %4671 = vmatpush1.bf16.msra.mxu1 %v7299_v57  ;;  %v7343_v56 = vld [vmem:[#allocation8 + $0x848] ss:$48 sps:$4 sm:$0xff]   ;;  %v7344_v57 = vld [vmem:[#allocation8 + $0x8a4] ss:$48 sps:$4 sm:$0xff]  }
 0x2df   :  { %4543 = vmatprep.subr.bf16.mxu0 %v7300_v58  ;;  %4672 = vmatprep.subr.bf16.mxu1 %v7301_v60  ;;  %v7345_v58 = vld [vmem:[#allocation8 + $0x8ac] ss:$48 sps:$4 sm:$0xff]   ;;  %v7346_v60 = vld [vmem:[#allocation8 + $0x8a0] ss:$48 sps:$4 sm:$0xff]  }
 0x2e2   :  { %4544 = vmatpush1.bf16.msra.mxu0 %v7302_v16  ;;  %4673 = vmatpush1.bf16.msra.mxu1 %v7303_v61  ;;  %v7347_v16 = vld [vmem:[#allocation8 + $0x8a8] ss:$48 sps:$4 sm:$0xff]   ;;  %v7348_v61 = vld [vmem:[#allocation8 + $0x904] ss:$48 sps:$4 sm:$0xff]  }
 0x2e3   :  { %4545 = vmatprep.subr.bf16.mxu0 %v7304_v62  ;;  %4674 = vmatprep.subr.bf16.mxu1 %v7305_v63  ;;  %v7349_v62 = vld [vmem:[#allocation8 + $0x90c] ss:$48 sps:$4 sm:$0xff]   ;;  %v7350_v63 = vld [vmem:[#allocation8 + $0x900] ss:$48 sps:$4 sm:$0xff]  }
 0x2e6   :  { %4546 = vmatpush1.bf16.msra.mxu0 %v7306_v0  ;;  %4675 = vmatpush1.bf16.msra.mxu1 %v7307_v1  ;;  %v7351_v0 = vld [vmem:[#allocation8 + $0x908] ss:$48 sps:$4 sm:$0xff]   ;;  %v7352_v1 = vld [vmem:[#allocation8 + $0x964] ss:$48 sps:$4 sm:$0xff]  }
 0x2e7   :  { %4547 = vmatprep.subr.bf16.mxu0 %v7308_v21  ;;  %4676 = vmatprep.subr.bf16.mxu1 %v7309_v19  ;;  %v7353_v21 = vld [vmem:[#allocation8 + $0x96c] ss:$48 sps:$4 sm:$0xff]   ;;  %v7354_v19 = vld [vmem:[#allocation8 + $0x960] ss:$48 sps:$4 sm:$0xff]  }
 0x2ea   :  { %4548 = vmatpush1.bf16.msra.mxu0 %v7310_v2  ;;  %4677 = vmatpush1.bf16.msra.mxu1 %v7311_v3  ;;  %v7355_v2 = vld [vmem:[#allocation8 + $0x968] ss:$48 sps:$4 sm:$0xff]   ;;  %v7356_v3 = vld [vmem:[#allocation8 + $0x9c4] ss:$48 sps:$4 sm:$0xff]  }
 0x2eb   :  { %4549 = vmatprep.subr.bf16.mxu0 %v7312_v4  ;;  %4678 = vmatprep.subr.bf16.mxu1 %v7313_v5  ;;  %v7357_v4 = vld [vmem:[#allocation8 + $0x9cc] ss:$48 sps:$4 sm:$0xff]   ;;  %v7358_v5 = vld [vmem:[#allocation8 + $0x9c0] ss:$48 sps:$4 sm:$0xff]  }
 0x2ee   :  { %4550 = vmatpush1.bf16.msra.mxu0 %v7314_v7  ;;  %4679 = vmatpush1.bf16.msra.mxu1 %v7315_v8  ;;  %v7359_v7 = vld [vmem:[#allocation8 + $0x9c8] ss:$48 sps:$4 sm:$0xff]   ;;  %v7360_v8 = vld [vmem:[#allocation8 + $0xa24] ss:$48 sps:$4 sm:$0xff]  }
 0x2ef   :  { %4562 = vmatprep.subr.bf16.mxu0 %v7316_v9  ;;  %4691 = vmatprep.subr.bf16.mxu1 %v7317_v10  ;;  %v7361_v9 = vld [vmem:[#allocation8 + $0xa2c] ss:$48 sps:$4 sm:$0xff]   ;;  %v7362_v10 = vld [vmem:[#allocation8 + $0xa20] ss:$48 sps:$4 sm:$0xff]  }
 0x2f1   :  { %4552 = vmatmul.mubr.bf16.vlgmr.msra.gmra.mrb[12].mxu0 %v8191_v6  ;;  %4681 = vmatmul.mubr.bf16.vlgmr.msra.gmra.mrb[12].mxu1 %v8191_v6 }
 0x2f2   :  { %4563 = vmatpush1.bf16.msra.mxu0 %v7318_v12  ;;  %4692 = vmatpush1.bf16.msra.mxu1 %v7319_v22  ;;  %v7363_v12 = vld [vmem:[#allocation8 + $0xa28] ss:$48 sps:$4 sm:$0xff]   ;;  %v7364_v22 = vld [vmem:[#allocation8 + $0xa84] ss:$48 sps:$4 sm:$0xff]  }
 0x2f3   :  { %4564 = vmatprep.subr.bf16.mxu0 %v7320_v23  ;;  %4693 = vmatprep.subr.bf16.mxu1 %v7321_v26  ;;  %v7365_v23 = vld [vmem:[#allocation8 + $0xa8c] ss:$48 sps:$4 sm:$0xff]   ;;  %v7366_v26 = vld [vmem:[#allocation8 + $0xa80] ss:$48 sps:$4 sm:$0xff]  }
 0x2f4   :  { %4594 = vmatprep.mubr.bf16.mxu0 %v8193_v11  ;;  %4723 = vmatprep.mubr.bf16.mxu1 %v8193_v11 }
 0x2f6   :  { %4565 = vmatpush1.bf16.msra.mxu0 %v7322_v27  ;;  %4694 = vmatpush1.bf16.msra.mxu1 %v7323_v28  ;;  %v7367_v27 = vld [vmem:[#allocation8 + $0xa88] ss:$48 sps:$4 sm:$0xff]   ;;  %v7368_v28 = vld [vmem:[#allocation8 + $0xae4] ss:$48 sps:$4 sm:$0xff]  }
 0x2f7   :  { %4566 = vmatprep.subr.bf16.mxu0 %v7324_v29  ;;  %4695 = vmatprep.subr.bf16.mxu1 %v7325_v30  ;;  %v7369_v29 = vld [vmem:[#allocation8 + $0xaec] ss:$48 sps:$4 sm:$0xff]   ;;  %v7370_v30 = vld [vmem:[#allocation8 + $0xae0] ss:$48 sps:$4 sm:$0xff]  }
 0x2fa   :  { %4567 = vmatpush1.bf16.msra.mxu0 %v7326_v31  ;;  %4696 = vmatpush1.bf16.msra.mxu1 %v7327_v32  ;;  %v7371_v31 = vld [vmem:[#allocation8 + $0xae8] ss:$48 sps:$4 sm:$0xff]   ;;  %v7372_v32 = vld [vmem:[#allocation8 + $0xb44] ss:$48 sps:$4 sm:$0xff]  }
 0x2fb   :  { %4568 = vmatprep.subr.bf16.mxu0 %v7328_v33  ;;  %4697 = vmatprep.subr.bf16.mxu1 %v7329_v34  ;;  %v7373_v33 = vld [vmem:[#allocation8 + $0xb4c] ss:$48 sps:$4 sm:$0xff]   ;;  %v7374_v34 = vld [vmem:[#allocation8 + $0xb40] ss:$48 sps:$4 sm:$0xff]  }
 0x2fe   :  { %4569 = vmatpush1.bf16.msra.mxu0 %v7330_v35  ;;  %4698 = vmatpush1.bf16.msra.mxu1 %v7331_v36  ;;  %v7375_v35 = vld [vmem:[#allocation8 + $0xb48] ss:$48 sps:$4 sm:$0xff]   ;;  %v7376_v36 = vld [vmem:[#allocation8 + $0xba4] ss:$48 sps:$4 sm:$0xff]  }
 0x2ff   :  { %4570 = vmatprep.subr.bf16.mxu0 %v7332_v37  ;;  %4699 = vmatprep.subr.bf16.mxu1 %v7333_v38  ;;  %v7377_v37 = vld [vmem:[#allocation8 + $0xbac] ss:$48 sps:$4 sm:$0xff]   ;;  %v8199_v38 = vld [vmem:[#allocation6 + $0x8] ss:$24 sps:$4 sm:$0xff]  }
 0x302   :  { %4571 = vmatpush1.bf16.msra.mxu0 %v7334_v39  ;;  %4700 = vmatpush1.bf16.msra.mxu1 %v7335_v40  ;;  %v7378_v39 = vld [vmem:[#allocation8 + $0xba0] ss:$48 sps:$4 sm:$0xff]   ;;  %v7379_v40 = vld [vmem:[#allocation8 + $0xba8] ss:$48 sps:$4 sm:$0xff]  }
 0x303   :  { %4572 = vmatprep.subr.bf16.mxu0 %v7336_v41  ;;  %4701 = vmatprep.subr.bf16.mxu1 %v7337_v48  ;;  %v7380_v41 = vld [vmem:[#allocation8 + $0xc04] ss:$48 sps:$4 sm:$0xff]   ;;  %v7381_v48 = vld [vmem:[#allocation8 + $0xc0c] ss:$48 sps:$4 sm:$0xff]  }
 0x306   :  { %4573 = vmatpush1.bf16.msra.mxu0 %v7338_v49  ;;  %4702 = vmatpush1.bf16.msra.mxu1 %v7339_v52  ;;  %v8201_v49 = vld [vmem:[#allocation6 + $0x14] ss:$24 sps:$4 sm:$0xff]   ;;  %v7382_v52 = vld [vmem:[#allocation8 + $0xc00] ss:$48 sps:$4 sm:$0xff]  }
 0x307   :  { %4574 = vmatprep.subr.bf16.mxu0 %v7340_v53  ;;  %4703 = vmatprep.subr.bf16.mxu1 %v7341_v54  ;;  %v7383_v53 = vld [vmem:[#allocation8 + $0xc08] ss:$48 sps:$4 sm:$0xff]   ;;  %v7384_v54 = vld [vmem:[#allocation8 + $0xc64] ss:$48 sps:$4 sm:$0xff]  }
 0x30a   :  { %4575 = vmatpush1.bf16.msra.mxu0 %v7342_v55  ;;  %4704 = vmatpush1.bf16.msra.mxu1 %v7343_v56  ;;  %v7385_v55 = vld [vmem:[#allocation8 + $0xc6c] ss:$48 sps:$4 sm:$0xff]   ;;  %v7386_v56 = vld [vmem:[#allocation8 + $0xc60] ss:$48 sps:$4 sm:$0xff]  }
 0x30b   :  { %4576 = vmatprep.subr.bf16.mxu0 %v7344_v57  ;;  %4705 = vmatprep.subr.bf16.mxu1 %v7345_v58  ;;  %v7387_v57 = vld [vmem:[#allocation8 + $0xc68] ss:$48 sps:$4 sm:$0xff]   ;;  %v7388_v58 = vld [vmem:[#allocation8 + $0xcc4] ss:$48 sps:$4 sm:$0xff]  }
 0x30e   :  { %4577 = vmatpush1.bf16.msra.mxu0 %v7346_v60  ;;  %4706 = vmatpush1.bf16.msra.mxu1 %v7347_v16  ;;  %v7389_v60 = vld [vmem:[#allocation8 + $0xccc] ss:$48 sps:$4 sm:$0xff]   ;;  %v7390_v16 = vld [vmem:[#allocation8 + $0xcc0] ss:$48 sps:$4 sm:$0xff]  }
 0x30f   :  { %4578 = vmatprep.subr.bf16.mxu0 %v7348_v61  ;;  %4707 = vmatprep.subr.bf16.mxu1 %v7349_v62  ;;  %v7391_v61 = vld [vmem:[#allocation8 + $0xcc8] ss:$48 sps:$4 sm:$0xff]   ;;  %v7392_v62 = vld [vmem:[#allocation8 + $0xd24] ss:$48 sps:$4 sm:$0xff]  }
 0x312   :  { %4579 = vmatpush1.bf16.msra.mxu0 %v7350_v63  ;;  %4708 = vmatpush1.bf16.msra.mxu1 %v7351_v0  ;;  %v7393_v63 = vld [vmem:[#allocation8 + $0xd2c] ss:$48 sps:$4 sm:$0xff]   ;;  %v7394_v0 = vld [vmem:[#allocation8 + $0xd20] ss:$48 sps:$4 sm:$0xff]  }
 0x313   :  { %4580 = vmatprep.subr.bf16.mxu0 %v7352_v1  ;;  %4709 = vmatprep.subr.bf16.mxu1 %v7353_v21  ;;  %v7395_v1 = vld [vmem:[#allocation8 + $0xd28] ss:$48 sps:$4 sm:$0xff]   ;;  %v7396_v21 = vld [vmem:[#allocation8 + $0xd84] ss:$48 sps:$4 sm:$0xff]  }
 0x316   :  { %4581 = vmatpush1.bf16.msra.mxu0 %v7354_v19  ;;  %4710 = vmatpush1.bf16.msra.mxu1 %v7355_v2  ;;  %v7397_v19 = vld [vmem:[#allocation8 + $0xd8c] ss:$48 sps:$4 sm:$0xff]   ;;  %v7398_v2 = vld [vmem:[#allocation8 + $0xd80] ss:$48 sps:$4 sm:$0xff]  }
 0x317   :  { %4582 = vmatprep.subr.bf16.mxu0 %v7356_v3  ;;  %4711 = vmatprep.subr.bf16.mxu1 %v7357_v4  ;;  %v7399_v3 = vld [vmem:[#allocation8 + $0xd88] ss:$48 sps:$4 sm:$0xff]   ;;  %v7400_v4 = vld [vmem:[#allocation8 + $0xde4] ss:$48 sps:$4 sm:$0xff]  }
 0x31a   :  { %4583 = vmatpush1.bf16.msra.mxu0 %v7358_v5  ;;  %4712 = vmatpush1.bf16.msra.mxu1 %v7359_v7  ;;  %v7401_v5 = vld [vmem:[#allocation8 + $0xdec] ss:$48 sps:$4 sm:$0xff]   ;;  %v7402_v7 = vld [vmem:[#allocation8 + $0xde0] ss:$48 sps:$4 sm:$0xff]  }
 0x31b   :  { %4584 = vmatprep.subr.bf16.mxu0 %v7360_v8  ;;  %4713 = vmatprep.subr.bf16.mxu1 %v7361_v9  ;;  %v7403_v8 = vld [vmem:[#allocation8 + $0xde8] ss:$48 sps:$4 sm:$0xff]   ;;  %v7404_v9 = vld [vmem:[#allocation8 + $0xe44] ss:$48 sps:$4 sm:$0xff]  }
 0x31e   :  { %4585 = vmatpush1.bf16.msra.mxu0 %v7362_v10  ;;  %4714 = vmatpush1.bf16.msra.mxu1 %v7363_v12  ;;  %v7405_v10 = vld [vmem:[#allocation8 + $0xe4c] ss:$48 sps:$4 sm:$0xff]   ;;  %v7406_v12 = vld [vmem:[#allocation8 + $0xe40] ss:$48 sps:$4 sm:$0xff]  }
 0x31f   :  { %4586 = vmatprep.subr.bf16.mxu0 %v7364_v22  ;;  %4715 = vmatprep.subr.bf16.mxu1 %v7365_v23  ;;  %v7407_v22 = vld [vmem:[#allocation8 + $0xe48] ss:$48 sps:$4 sm:$0xff]   ;;  %v7408_v23 = vld [vmem:[#allocation8 + $0xea4] ss:$48 sps:$4 sm:$0xff]  }
 0x322   :  { %4587 = vmatpush1.bf16.msra.mxu0 %v7366_v26  ;;  %4716 = vmatpush1.bf16.msra.mxu1 %v7367_v27  ;;  %v7409_v26 = vld [vmem:[#allocation8 + $0xeac] ss:$48 sps:$4 sm:$0xff]   ;;  %v7410_v27 = vld [vmem:[#allocation8 + $0xea0] ss:$48 sps:$4 sm:$0xff]  }
 0x323   :  { %4588 = vmatprep.subr.bf16.mxu0 %v7368_v28  ;;  %4717 = vmatprep.subr.bf16.mxu1 %v7369_v29  ;;  %v7411_v28 = vld [vmem:[#allocation8 + $0xea8] ss:$48 sps:$4 sm:$0xff]   ;;  %v7412_v29 = vld [vmem:[#allocation8 + $0xf04] ss:$48 sps:$4 sm:$0xff]  }
 0x326   :  { %4589 = vmatpush1.bf16.msra.mxu0 %v7370_v30  ;;  %4718 = vmatpush1.bf16.msra.mxu1 %v7371_v31  ;;  %v7413_v30 = vld [vmem:[#allocation8 + $0xf0c] ss:$48 sps:$4 sm:$0xff]   ;;  %v7414_v31 = vld [vmem:[#allocation8 + $0xf00] ss:$48 sps:$4 sm:$0xff]  }
 0x327   :  { %4590 = vmatprep.subr.bf16.mxu0 %v7372_v32  ;;  %4719 = vmatprep.subr.bf16.mxu1 %v7373_v33  ;;  %v7415_v32 = vld [vmem:[#allocation8 + $0xf08] ss:$48 sps:$4 sm:$0xff]   ;;  %v7416_v33 = vld [vmem:[#allocation8 + $0xf64] ss:$48 sps:$4 sm:$0xff]  }
 0x32a   :  { %4591 = vmatpush1.bf16.msra.mxu0 %v7374_v34  ;;  %4720 = vmatpush1.bf16.msra.mxu1 %v7375_v35  ;;  %v7417_v34 = vld [vmem:[#allocation8 + $0xf6c] ss:$48 sps:$4 sm:$0xff]   ;;  %v7418_v35 = vld [vmem:[#allocation8 + $0xf60] ss:$48 sps:$4 sm:$0xff]  }
 0x32b   :  { %4592 = vmatprep.subr.bf16.mxu0 %v7376_v36  ;;  %4721 = vmatprep.subr.bf16.mxu1 %v7377_v37  ;;  %v7419_v36 = vld [vmem:[#allocation8 + $0xf68] ss:$48 sps:$4 sm:$0xff]   ;;  %v7420_v37 = vld [vmem:[#allocation8 + $0xfc4] ss:$48 sps:$4 sm:$0xff]  }
 0x32e   :  { %4593 = vmatpush1.bf16.msra.mxu0 %v7378_v39  ;;  %4722 = vmatpush1.bf16.msra.mxu1 %v7379_v40  ;;  %v7421_v39 = vld [vmem:[#allocation8 + $0xfcc] ss:$48 sps:$4 sm:$0xff]   ;;  %v7422_v40 = vld [vmem:[#allocation8 + $0xfc0] ss:$48 sps:$4 sm:$0xff]  }
 0x32f   :  { %4605 = vmatprep.subr.bf16.mxu0 %v7380_v41  ;;  %4734 = vmatprep.subr.bf16.mxu1 %v7381_v48  ;;  %v7423_v41 = vld [vmem:[#allocation8 + $0xfc8] ss:$48 sps:$4 sm:$0xff]   ;;  %v7424_v48 = vld [vmem:[#allocation8 + $0x1024] ss:$48 sps:$4 sm:$0xff]  }
 0x331   :  { %4595 = vmatmul.mubr.bf16.vlgmr.msra.gmra.mrb[12].mxu0 %v8199_v38  ;;  %4724 = vmatmul.mubr.bf16.vlgmr.msra.gmra.mrb[12].mxu1 %v8199_v38 }
 0x332   :  { %4606 = vmatpush1.bf16.msra.mxu0 %v7382_v52  ;;  %4735 = vmatpush1.bf16.msra.mxu1 %v7383_v53  ;;  %v7425_v52 = vld [vmem:[#allocation8 + $0x102c] ss:$48 sps:$4 sm:$0xff]   ;;  %v7426_v53 = vld [vmem:[#allocation8 + $0x1020] ss:$48 sps:$4 sm:$0xff]  }
 0x333   :  { %4607 = vmatprep.subr.bf16.mxu0 %v7384_v54  ;;  %4736 = vmatprep.subr.bf16.mxu1 %v7385_v55  ;;  %v7427_v54 = vld [vmem:[#allocation8 + $0x1028] ss:$48 sps:$4 sm:$0xff]   ;;  %v7428_v55 = vld [vmem:[#allocation8 + $0x1084] ss:$48 sps:$4 sm:$0xff]  }
 0x334   :  { %4637 = vmatprep.mubr.bf16.mxu0 %v8201_v49  ;;  %4766 = vmatprep.mubr.bf16.mxu1 %v8201_v49 }
 0x336   :  { %4608 = vmatpush1.bf16.msra.mxu0 %v7386_v56  ;;  %4737 = vmatpush1.bf16.msra.mxu1 %v7387_v57  ;;  %v7429_v56 = vld [vmem:[#allocation8 + $0x108c] ss:$48 sps:$4 sm:$0xff]   ;;  %v7430_v57 = vld [vmem:[#allocation8 + $0x1080] ss:$48 sps:$4 sm:$0xff]  }
 0x337   :  { %4609 = vmatprep.subr.bf16.mxu0 %v7388_v58  ;;  %4738 = vmatprep.subr.bf16.mxu1 %v7389_v60  ;;  %v7431_v58 = vld [vmem:[#allocation8 + $0x1088] ss:$48 sps:$4 sm:$0xff]   ;;  %v7432_v60 = vld [vmem:[#allocation8 + $0x10e4] ss:$48 sps:$4 sm:$0xff]  }
 0x33a   :  { %4610 = vmatpush1.bf16.msra.mxu0 %v7390_v16  ;;  %4739 = vmatpush1.bf16.msra.mxu1 %v7391_v61  ;;  %v7433_v16 = vld [vmem:[#allocation8 + $0x10ec] ss:$48 sps:$4 sm:$0xff]   ;;  %v7434_v61 = vld [vmem:[#allocation8 + $0x10e0] ss:$48 sps:$4 sm:$0xff]  }
 0x33b   :  { %4611 = vmatprep.subr.bf16.mxu0 %v7392_v62  ;;  %4740 = vmatprep.subr.bf16.mxu1 %v7393_v63  ;;  %v7435_v62 = vld [vmem:[#allocation8 + $0x10e8] ss:$48 sps:$4 sm:$0xff]   ;;  %v7436_v63 = vld [vmem:[#allocation8 + $0x1144] ss:$48 sps:$4 sm:$0xff]  }
 0x33e   :  { %4612 = vmatpush1.bf16.msra.mxu0 %v7394_v0  ;;  %4741 = vmatpush1.bf16.msra.mxu1 %v7395_v1  ;;  %v7437_v0 = vld [vmem:[#allocation8 + $0x114c] ss:$48 sps:$4 sm:$0xff]   ;;  %v7438_v1 = vld [vmem:[#allocation8 + $0x1140] ss:$48 sps:$4 sm:$0xff]  }
 0x33f   :  { %4613 = vmatprep.subr.bf16.mxu0 %v7396_v21  ;;  %4742 = vmatprep.subr.bf16.mxu1 %v7397_v19  ;;  %v7439_v21 = vld [vmem:[#allocation8 + $0x1148] ss:$48 sps:$4 sm:$0xff]   ;;  %v7440_v19 = vld [vmem:[#allocation8 + $0x11a4] ss:$48 sps:$4 sm:$0xff]  }
 0x342   :  { %4614 = vmatpush1.bf16.msra.mxu0 %v7398_v2  ;;  %4743 = vmatpush1.bf16.msra.mxu1 %v7399_v3  ;;  %v7441_v2 = vld [vmem:[#allocation8 + $0x11ac] ss:$48 sps:$4 sm:$0xff]   ;;  %v8207_v3 = vld [vmem:[#allocation6 + $0x10] ss:$24 sps:$4 sm:$0xff]  }
 0x343   :  { %4615 = vmatprep.subr.bf16.mxu0 %v7400_v4  ;;  %4744 = vmatprep.subr.bf16.mxu1 %v7401_v5  ;;  %v7442_v4 = vld [vmem:[#allocation8 + $0x11a0] ss:$48 sps:$4 sm:$0xff]   ;;  %v7443_v5 = vld [vmem:[#allocation8 + $0x11a8] ss:$48 sps:$4 sm:$0xff]  }
 0x346   :  { %4616 = vmatpush1.bf16.msra.mxu0 %v7402_v7  ;;  %4745 = vmatpush1.bf16.msra.mxu1 %v7403_v8  ;;  %v7444_v7 = vld [vmem:[#allocation8 + $0x14] ss:$48 sps:$4 sm:$0xff]   ;;  %v7445_v8 = vld [vmem:[#allocation8 + $0x1c] ss:$48 sps:$4 sm:$0xff]  }
 0x347   :  { %4617 = vmatprep.subr.bf16.mxu0 %v7404_v9  ;;  %4746 = vmatprep.subr.bf16.mxu1 %v7405_v10  ;;  %v7446_v9 = vld [vmem:[#allocation8 + $0x10] ss:$48 sps:$4 sm:$0xff]   ;;  %v7447_v10 = vld [vmem:[#allocation8 + $0x18] ss:$48 sps:$4 sm:$0xff]  }
 0x34a   :  { %4618 = vmatpush1.bf16.msra.mxu0 %v7406_v12  ;;  %4747 = vmatpush1.bf16.msra.mxu1 %v7407_v22  ;;  %v7448_v12 = vld [vmem:[#allocation8 + $0x74] ss:$48 sps:$4 sm:$0xff]   ;;  %v7449_v22 = vld [vmem:[#allocation8 + $0x7c] ss:$48 sps:$4 sm:$0xff]  }
 0x34b   :  { %4619 = vmatprep.subr.bf16.mxu0 %v7408_v23  ;;  %4748 = vmatprep.subr.bf16.mxu1 %v7409_v26  ;;  %v7450_v23 = vld [vmem:[#allocation8 + $0x70] ss:$48 sps:$4 sm:$0xff]   ;;  %v7451_v26 = vld [vmem:[#allocation8 + $0x78] ss:$48 sps:$4 sm:$0xff]  }
 0x34e   :  { %4620 = vmatpush1.bf16.msra.mxu0 %v7410_v27  ;;  %4749 = vmatpush1.bf16.msra.mxu1 %v7411_v28  ;;  %v7452_v27 = vld [vmem:[#allocation8 + $0xd4] ss:$48 sps:$4 sm:$0xff]   ;;  %v7453_v28 = vld [vmem:[#allocation8 + $0xdc] ss:$48 sps:$4 sm:$0xff]  }
 0x34f   :  { %4621 = vmatprep.subr.bf16.mxu0 %v7412_v29  ;;  %4750 = vmatprep.subr.bf16.mxu1 %v7413_v30  ;;  %v7454_v29 = vld [vmem:[#allocation8 + $0xd0] ss:$48 sps:$4 sm:$0xff]   ;;  %v7455_v30 = vld [vmem:[#allocation8 + $0xd8] ss:$48 sps:$4 sm:$0xff]  }
 0x352   :  { %4622 = vmatpush1.bf16.msra.mxu0 %v7414_v31  ;;  %4751 = vmatpush1.bf16.msra.mxu1 %v7415_v32  ;;  %v7456_v31 = vld [vmem:[#allocation8 + $0x134] ss:$48 sps:$4 sm:$0xff]   ;;  %v7457_v32 = vld [vmem:[#allocation8 + $0x13c] ss:$48 sps:$4 sm:$0xff]  }
 0x353   :  { %4623 = vmatprep.subr.bf16.mxu0 %v7416_v33  ;;  %4752 = vmatprep.subr.bf16.mxu1 %v7417_v34  ;;  %v7458_v33 = vld [vmem:[#allocation8 + $0x130] ss:$48 sps:$4 sm:$0xff]   ;;  %v7459_v34 = vld [vmem:[#allocation8 + $0x138] ss:$48 sps:$4 sm:$0xff]  }
 0x356   :  { %4624 = vmatpush1.bf16.msra.mxu0 %v7418_v35  ;;  %4753 = vmatpush1.bf16.msra.mxu1 %v7419_v36  ;;  %v7460_v35 = vld [vmem:[#allocation8 + $0x194] ss:$48 sps:$4 sm:$0xff]   ;;  %v7461_v36 = vld [vmem:[#allocation8 + $0x19c] ss:$48 sps:$4 sm:$0xff]  }
 0x357   :  { %4625 = vmatprep.subr.bf16.mxu0 %v7420_v37  ;;  %4754 = vmatprep.subr.bf16.mxu1 %v7421_v39  ;;  %v7462_v37 = vld [vmem:[#allocation8 + $0x190] ss:$48 sps:$4 sm:$0xff]   ;;  %v7463_v39 = vld [vmem:[#allocation8 + $0x198] ss:$48 sps:$4 sm:$0xff]  }
 0x35a   :  { %4626 = vmatpush1.bf16.msra.mxu0 %v7422_v40  ;;  %4755 = vmatpush1.bf16.msra.mxu1 %v7423_v41  ;;  %v7464_v40 = vld [vmem:[#allocation8 + $0x1f4] ss:$48 sps:$4 sm:$0xff]   ;;  %v7465_v41 = vld [vmem:[#allocation8 + $0x1fc] ss:$48 sps:$4 sm:$0xff]  }
 0x35b   :  { %4627 = vmatprep.subr.bf16.mxu0 %v7424_v48  ;;  %4756 = vmatprep.subr.bf16.mxu1 %v7425_v52 }
 0x35e   :  { %4628 = vmatpush1.bf16.msra.mxu0 %v7426_v53  ;;  %4757 = vmatpush1.bf16.msra.mxu1 %v7427_v54 }
 0x35f   :  { %4629 = vmatprep.subr.bf16.mxu0 %v7428_v55  ;;  %4758 = vmatprep.subr.bf16.mxu1 %v7429_v56 }
 0x362   :  { %4630 = vmatpush1.bf16.msra.mxu0 %v7430_v57  ;;  %4759 = vmatpush1.bf16.msra.mxu1 %v7431_v58  ;;  %v7466_v57 = vld [vmem:[#allocation8 + $0x1f0] ss:$48 sps:$4 sm:$0xff]   ;;  %v7467_v58 = vld [vmem:[#allocation8 + $0x1f8] ss:$48 sps:$4 sm:$0xff]  }
 0x363   :  { %4631 = vmatprep.subr.bf16.mxu0 %v7432_v60  ;;  %4760 = vmatprep.subr.bf16.mxu1 %v7433_v16 }
 0x366   :  { %4632 = vmatpush1.bf16.msra.mxu0 %v7434_v61  ;;  %4761 = vmatpush1.bf16.msra.mxu1 %v7435_v62  ;;  %v7468_v61 = vld [vmem:[#allocation8 + $0x254] ss:$48 sps:$4 sm:$0xff]   ;;  %v7469_v62 = vld [vmem:[#allocation8 + $0x25c] ss:$48 sps:$4 sm:$0xff]  }
 0x367   :  { %4633 = vmatprep.subr.bf16.mxu0 %v7436_v63  ;;  %4762 = vmatprep.subr.bf16.mxu1 %v7437_v0  ;;  %v7470_v63 = vld [vmem:[#allocation8 + $0x250] ss:$48 sps:$4 sm:$0xff]   ;;  %v7471_v0 = vld [vmem:[#allocation8 + $0x258] ss:$48 sps:$4 sm:$0xff]  }
 0x36a   :  { %4634 = vmatpush1.bf16.msra.mxu0 %v7438_v1  ;;  %4763 = vmatpush1.bf16.msra.mxu1 %v7439_v21  ;;  %v7472_v1 = vld [vmem:[#allocation8 + $0x2b4] ss:$48 sps:$4 sm:$0xff]   ;;  %v7473_v21 = vld [vmem:[#allocation8 + $0x2bc] ss:$48 sps:$4 sm:$0xff]  }
 0x36b   :  { %4635 = vmatprep.subr.bf16.mxu0 %v7440_v19  ;;  %4764 = vmatprep.subr.bf16.mxu1 %v7441_v2  ;;  %v7474_v19 = vld [vmem:[#allocation8 + $0x2b0] ss:$48 sps:$4 sm:$0xff]   ;;  %v7475_v2 = vld [vmem:[#allocation8 + $0x2b8] ss:$48 sps:$4 sm:$0xff]  }
 0x36e   :  { %4636 = vmatpush1.bf16.msra.mxu0 %v7442_v4  ;;  %4765 = vmatpush1.bf16.msra.mxu1 %v7443_v5  ;;  %v7476_v4 = vld [vmem:[#allocation8 + $0x314] ss:$48 sps:$4 sm:$0xff]   ;;  %v7477_v5 = vld [vmem:[#allocation8 + $0x31c] ss:$48 sps:$4 sm:$0xff]  }
 0x36f   :  { %4777 = vmatprep.subr.bf16.mxu0 %v7444_v7  ;;  %4906 = vmatprep.subr.bf16.mxu1 %v7445_v8  ;;  %v7478_v7 = vld [vmem:[#allocation8 + $0x310] ss:$48 sps:$4 sm:$0xff]   ;;  %v7479_v8 = vld [vmem:[#allocation8 + $0x318] ss:$48 sps:$4 sm:$0xff]  }
 0x371   :  { %4638 = vmatmul.mubr.bf16.vlgmr.msra.gmra.mrb[12].mxu0 %v8207_v3  ;;  %4767 = vmatmul.mubr.bf16.vlgmr.msra.gmra.mrb[12].mxu1 %v8207_v3 }
 0x372   :  { %4778 = vmatpush1.bf16.msra.mxu0 %v7446_v9  ;;  %4907 = vmatpush1.bf16.msra.mxu1 %v7447_v10  ;;  %v7480_v9 = vld [vmem:[#allocation8 + $0x374] ss:$48 sps:$4 sm:$0xff]   ;;  %v7481_v10 = vld [vmem:[#allocation8 + $0x37c] ss:$48 sps:$4 sm:$0xff]  }
 0x373   :  { %4779 = vmatprep.subr.bf16.mxu0 %v7448_v12  ;;  %4908 = vmatprep.subr.bf16.mxu1 %v7449_v22  ;;  %v7482_v12 = vld [vmem:[#allocation8 + $0x370] ss:$48 sps:$4 sm:$0xff]   ;;  %v7483_v22 = vld [vmem:[#allocation8 + $0x378] ss:$48 sps:$4 sm:$0xff]  }
 0x374   :  { %4809 = vmatprep.mubr.bf16.mxu0 %v8169_v59  ;;  %4938 = vmatprep.mubr.bf16.mxu1 %v8169_v59 }
 0x376   :  { %4780 = vmatpush1.bf16.msra.mxu0 %v7450_v23  ;;  %4909 = vmatpush1.bf16.msra.mxu1 %v7451_v26  ;;  %v7484_v23 = vld [vmem:[#allocation8 + $0x3d4] ss:$48 sps:$4 sm:$0xff]   ;;  %v7485_v26 = vld [vmem:[#allocation8 + $0x3dc] ss:$48 sps:$4 sm:$0xff]  }
 0x377   :  { %4781 = vmatprep.subr.bf16.mxu0 %v7452_v27  ;;  %4910 = vmatprep.subr.bf16.mxu1 %v7453_v28  ;;  %v7486_v27 = vld [vmem:[#allocation8 + $0x3d0] ss:$48 sps:$4 sm:$0xff]   ;;  %v7487_v28 = vld [vmem:[#allocation8 + $0x3d8] ss:$48 sps:$4 sm:$0xff]  }
 0x37a   :  { %4782 = vmatpush1.bf16.msra.mxu0 %v7454_v29  ;;  %4911 = vmatpush1.bf16.msra.mxu1 %v7455_v30  ;;  %v7488_v29 = vld [vmem:[#allocation8 + $0x434] ss:$48 sps:$4 sm:$0xff]   ;;  %v7489_v30 = vld [vmem:[#allocation8 + $0x43c] ss:$48 sps:$4 sm:$0xff]  }
 0x37b   :  { %4783 = vmatprep.subr.bf16.mxu0 %v7456_v31  ;;  %4912 = vmatprep.subr.bf16.mxu1 %v7457_v32  ;;  %v7490_v31 = vld [vmem:[#allocation8 + $0x430] ss:$48 sps:$4 sm:$0xff]   ;;  %v7491_v32 = vld [vmem:[#allocation8 + $0x438] ss:$48 sps:$4 sm:$0xff]  }
 0x37e   :  { %4784 = vmatpush1.bf16.msra.mxu0 %v7458_v33  ;;  %4913 = vmatpush1.bf16.msra.mxu1 %v7459_v34  ;;  %v7492_v33 = vld [vmem:[#allocation8 + $0x494] ss:$48 sps:$4 sm:$0xff]   ;;  %v7493_v34 = vld [vmem:[#allocation8 + $0x49c] ss:$48 sps:$4 sm:$0xff]  }
 0x37f   :  { %4785 = vmatprep.subr.bf16.mxu0 %v7460_v35  ;;  %4914 = vmatprep.subr.bf16.mxu1 %v7461_v36  ;;  %v7494_v35 = vld [vmem:[#allocation8 + $0x490] ss:$48 sps:$4 sm:$0xff]   ;;  %v7495_v36 = vld [vmem:[#allocation8 + $0x498] ss:$48 sps:$4 sm:$0xff]  }
 0x382   :  { %4786 = vmatpush1.bf16.msra.mxu0 %v7462_v37  ;;  %4915 = vmatpush1.bf16.msra.mxu1 %v7463_v39  ;;  %v7496_v37 = vld [vmem:[#allocation8 + $0x4f4] ss:$48 sps:$4 sm:$0xff]   ;;  %v7497_v39 = vld [vmem:[#allocation8 + $0x4fc] ss:$48 sps:$4 sm:$0xff]  }
 0x383   :  { %4787 = vmatprep.subr.bf16.mxu0 %v7464_v40  ;;  %4916 = vmatprep.subr.bf16.mxu1 %v7465_v41  ;;  %v7498_v40 = vld [vmem:[#allocation8 + $0x4f0] ss:$48 sps:$4 sm:$0xff]   ;;  %v7499_v41 = vld [vmem:[#allocation8 + $0x4f8] ss:$48 sps:$4 sm:$0xff]  }
 0x384   :  { %v8213_v48 = vpop.f32.mrb[8].mxu0  ;;  %v8215_v52 = vpop.f32.mrb[8].mxu1 }
 0x385   :  { %v8217_v53 = vpop.f32.mrb[9].mxu0  ;;  %v8219_v54 = vpop.f32.mrb[9].mxu1 }
 0x386   :  { %v8221_v55 = vpop.f32.mrb[10].mxu0  ;;  %v8223_v56 = vpop.f32.mrb[10].mxu1  ;;  %4788 = vmatpush1.bf16.msra.mxu0 %v7466_v57  ;;  %4917 = vmatpush1.bf16.msra.mxu1 %v7467_v58  ;;  %v7500_v57 = vld [vmem:[#allocation8 + $0x554] ss:$48 sps:$4 sm:$0xff]   ;;  %v7501_v58 = vld [vmem:[#allocation8 + $0x55c] ss:$48 sps:$4 sm:$0xff]  }
 0x387   :  { %v8225_v60 = vpop.f32.mrb[11].mxu0  ;;  %v8227_v16 = vpop.f32.mrb[11].mxu1  ;;  %4789 = vmatprep.subr.bf16.mxu0 %v7468_v61  ;;  %4918 = vmatprep.subr.bf16.mxu1 %v7469_v62  ;;  %v7502_v61 = vld [vmem:[#allocation8 + $0x550] ss:$48 sps:$4 sm:$0xff]   ;;  %v7503_v62 = vld [vmem:[#allocation8 + $0x558] ss:$48 sps:$4 sm:$0xff]  }
 0x38a   :  { %4790 = vmatpush1.bf16.msra.mxu0 %v7470_v63  ;;  %4919 = vmatpush1.bf16.msra.mxu1 %v7471_v0  ;;  %v7504_v63 = vld [vmem:[#allocation8 + $0x5b4] ss:$48 sps:$4 sm:$0xff]   ;;  %v7505_v0 = vld [vmem:[#allocation8 + $0x5bc] ss:$48 sps:$4 sm:$0xff]  }
 0x38b   :  { %4791 = vmatprep.subr.bf16.mxu0 %v7472_v1  ;;  %4920 = vmatprep.subr.bf16.mxu1 %v7473_v21  ;;  %v7506_v1 = vld [vmem:[#allocation8 + $0x5b0] ss:$48 sps:$4 sm:$0xff]   ;;  %v7507_v21 = vld [vmem:[#allocation8 + $0x5b8] ss:$48 sps:$4 sm:$0xff]  }
 0x38e   :  { %4792 = vmatpush1.bf16.msra.mxu0 %v7474_v19  ;;  %4921 = vmatpush1.bf16.msra.mxu1 %v7475_v2  ;;  %v7508_v19 = vld [vmem:[#allocation8 + $0x614] ss:$48 sps:$4 sm:$0xff]   ;;  %v7509_v2 = vld [vmem:[#allocation8 + $0x61c] ss:$48 sps:$4 sm:$0xff]  }
 0x38f   :  { %4793 = vmatprep.subr.bf16.mxu0 %v7476_v4  ;;  %4922 = vmatprep.subr.bf16.mxu1 %v7477_v5  ;;  %v7510_v4 = vld [vmem:[#allocation8 + $0x610] ss:$48 sps:$4 sm:$0xff]   ;;  %v7511_v5 = vld [vmem:[#allocation8 + $0x618] ss:$48 sps:$4 sm:$0xff]  }
 0x392   :  { %4794 = vmatpush1.bf16.msra.mxu0 %v7478_v7  ;;  %4923 = vmatpush1.bf16.msra.mxu1 %v7479_v8  ;;  %v7512_v7 = vld [vmem:[#allocation8 + $0x674] ss:$48 sps:$4 sm:$0xff]   ;;  %v7513_v8 = vld [vmem:[#allocation8 + $0x67c] ss:$48 sps:$4 sm:$0xff]  }
 0x393   :  { %4795 = vmatprep.subr.bf16.mxu0 %v7480_v9  ;;  %4924 = vmatprep.subr.bf16.mxu1 %v7481_v10  ;;  %v7514_v9 = vld [vmem:[#allocation8 + $0x670] ss:$48 sps:$4 sm:$0xff]   ;;  %v7515_v10 = vld [vmem:[#allocation8 + $0x678] ss:$48 sps:$4 sm:$0xff]  }
 0x396   :  { %4796 = vmatpush1.bf16.msra.mxu0 %v7482_v12  ;;  %4925 = vmatpush1.bf16.msra.mxu1 %v7483_v22  ;;  %v7516_v12 = vld [vmem:[#allocation8 + $0x6d4] ss:$48 sps:$4 sm:$0xff]   ;;  %v7517_v22 = vld [vmem:[#allocation8 + $0x6dc] ss:$48 sps:$4 sm:$0xff]  }
 0x397   :  { %4797 = vmatprep.subr.bf16.mxu0 %v7484_v23  ;;  %4926 = vmatprep.subr.bf16.mxu1 %v7485_v26  ;;  %v7519_v23 = vld [vmem:[#allocation8 + $0x6d8] ss:$48 sps:$4 sm:$0xff]   ;;  %v7520_v26 = vld [vmem:[#allocation8 + $0x734] ss:$48 sps:$4 sm:$0xff]  }
 0x39a   :  { %4798 = vmatpush1.bf16.msra.mxu0 %v7486_v27  ;;  %4927 = vmatpush1.bf16.msra.mxu1 %v7487_v28  ;;  %v7521_v27 = vld [vmem:[#allocation8 + $0x73c] ss:$48 sps:$4 sm:$0xff]   ;;  %v7522_v28 = vld [vmem:[#allocation8 + $0x730] ss:$48 sps:$4 sm:$0xff]  }
 0x39b   :  { %4799 = vmatprep.subr.bf16.mxu0 %v7488_v29  ;;  %4928 = vmatprep.subr.bf16.mxu1 %v7489_v30  ;;  %v7523_v29 = vld [vmem:[#allocation8 + $0x738] ss:$48 sps:$4 sm:$0xff]   ;;  %v7525_v30 = vld [vmem:[#allocation8 + $0x79c] ss:$48 sps:$4 sm:$0xff]  }
 0x39e   :  { %4800 = vmatpush1.bf16.msra.mxu0 %v7490_v31  ;;  %4929 = vmatpush1.bf16.msra.mxu1 %v7491_v32  ;;  %v7526_v31 = vld [vmem:[#allocation8 + $0x790] ss:$48 sps:$4 sm:$0xff]   ;;  %v7527_v32 = vld [vmem:[#allocation8 + $0x798] ss:$48 sps:$4 sm:$0xff]  }
 0x39f   :  { %4801 = vmatprep.subr.bf16.mxu0 %v7492_v33  ;;  %4930 = vmatprep.subr.bf16.mxu1 %v7493_v34  ;;  %v7528_v33 = vld [vmem:[#allocation8 + $0x7f4] ss:$48 sps:$4 sm:$0xff]   ;;  %v7529_v34 = vld [vmem:[#allocation8 + $0x7fc] ss:$48 sps:$4 sm:$0xff]  }
 0x3a2   :  { %4802 = vmatpush1.bf16.msra.mxu0 %v7494_v35  ;;  %4931 = vmatpush1.bf16.msra.mxu1 %v7495_v36  ;;  %v7530_v35 = vld [vmem:[#allocation8 + $0x7f0] ss:$48 sps:$4 sm:$0xff]   ;;  %v7531_v36 = vld [vmem:[#allocation8 + $0x7f8] ss:$48 sps:$4 sm:$0xff]  }
 0x3a3   :  { %4803 = vmatprep.subr.bf16.mxu0 %v7496_v37  ;;  %4932 = vmatprep.subr.bf16.mxu1 %v7497_v39  ;;  %v7532_v37 = vld [vmem:[#allocation8 + $0x854] ss:$48 sps:$4 sm:$0xff]   ;;  %v7533_v39 = vld [vmem:[#allocation8 + $0x85c] ss:$48 sps:$4 sm:$0xff]  }
 0x3a6   :  { %4804 = vmatpush1.bf16.msra.mxu0 %v7498_v40  ;;  %4933 = vmatpush1.bf16.msra.mxu1 %v7499_v41  ;;  %v7534_v40 = vld [vmem:[#allocation8 + $0x850] ss:$48 sps:$4 sm:$0xff]   ;;  %v7535_v41 = vld [vmem:[#allocation8 + $0x858] ss:$48 sps:$4 sm:$0xff]  }
 0x3a7   :  { %4805 = vmatprep.subr.bf16.mxu0 %v7500_v57  ;;  %4934 = vmatprep.subr.bf16.mxu1 %v7501_v58  ;;  %v7536_v57 = vld [vmem:[#allocation8 + $0x8b4] ss:$48 sps:$4 sm:$0xff]   ;;  %v7537_v58 = vld [vmem:[#allocation8 + $0x8bc] ss:$48 sps:$4 sm:$0xff]  }
 0x3aa   :  { %4806 = vmatpush1.bf16.msra.mxu0 %v7502_v61  ;;  %4935 = vmatpush1.bf16.msra.mxu1 %v7503_v62  ;;  %v7538_v61 = vld [vmem:[#allocation8 + $0x8b0] ss:$48 sps:$4 sm:$0xff]   ;;  %v7539_v62 = vld [vmem:[#allocation8 + $0x8b8] ss:$48 sps:$4 sm:$0xff]  }
 0x3ab   :  { %4807 = vmatprep.subr.bf16.mxu0 %v7504_v63  ;;  %4936 = vmatprep.subr.bf16.mxu1 %v7505_v0  ;;  %v7540_v63 = vld [vmem:[#allocation8 + $0x914] ss:$48 sps:$4 sm:$0xff]   ;;  %v7541_v0 = vld [vmem:[#allocation8 + $0x91c] ss:$48 sps:$4 sm:$0xff]  }
 0x3ae   :  { %4808 = vmatpush1.bf16.msra.mxu0 %v7506_v1  ;;  %4937 = vmatpush1.bf16.msra.mxu1 %v7507_v21  ;;  %v7542_v1 = vld [vmem:[#allocation8 + $0x910] ss:$48 sps:$4 sm:$0xff]   ;;  %v7543_v21 = vld [vmem:[#allocation8 + $0x918] ss:$48 sps:$4 sm:$0xff]  }
 0x3af   :  { %4820 = vmatprep.subr.bf16.mxu0 %v7508_v19  ;;  %4949 = vmatprep.subr.bf16.mxu1 %v7509_v2  ;;  %v7544_v19 = vld [vmem:[#allocation8 + $0x974] ss:$48 sps:$4 sm:$0xff]   ;;  %v7545_v2 = vld [vmem:[#allocation8 + $0x97c] ss:$48 sps:$4 sm:$0xff]  }
 0x3b1   :  { %4810 = vmatmul.mubr.bf16.vlgmr.msra.gmra.mrb[16].mxu0 %v8191_v6  ;;  %4939 = vmatmul.mubr.bf16.vlgmr.msra.gmra.mrb[16].mxu1 %v8191_v6  ;;  %v7518_v6 = vld [vmem:[#allocation8 + $0x6d0] ss:$48 sps:$4 sm:$0xff]  }
 0x3b2   :  { %4821 = vmatpush1.bf16.msra.mxu0 %v7510_v4  ;;  %4950 = vmatpush1.bf16.msra.mxu1 %v7511_v5  ;;  %v7546_v4 = vld [vmem:[#allocation8 + $0x970] ss:$48 sps:$4 sm:$0xff]   ;;  %v7547_v5 = vld [vmem:[#allocation8 + $0x978] ss:$48 sps:$4 sm:$0xff]  }
 0x3b3   :  { %4822 = vmatprep.subr.bf16.mxu0 %v7512_v7  ;;  %4951 = vmatprep.subr.bf16.mxu1 %v7513_v8  ;;  %v7548_v7 = vld [vmem:[#allocation8 + $0x9d4] ss:$48 sps:$4 sm:$0xff]   ;;  %v7549_v8 = vld [vmem:[#allocation8 + $0x9dc] ss:$48 sps:$4 sm:$0xff]  }
 0x3b4   :  { %4852 = vmatprep.mubr.bf16.mxu0 %v8193_v11  ;;  %4981 = vmatprep.mubr.bf16.mxu1 %v8193_v11  ;;  %v7524_v11 = vld [vmem:[#allocation8 + $0x794] ss:$48 sps:$4 sm:$0xff]  }
 0x3b6   :  { %4823 = vmatpush1.bf16.msra.mxu0 %v7514_v9  ;;  %4952 = vmatpush1.bf16.msra.mxu1 %v7515_v10  ;;  %v7550_v9 = vld [vmem:[#allocation8 + $0x9d0] ss:$48 sps:$4 sm:$0xff]   ;;  %v7551_v10 = vld [vmem:[#allocation8 + $0x9d8] ss:$48 sps:$4 sm:$0xff]  }
 0x3b7   :  { %4824 = vmatprep.subr.bf16.mxu0 %v7516_v12  ;;  %4953 = vmatprep.subr.bf16.mxu1 %v7517_v22  ;;  %v7552_v12 = vld [vmem:[#allocation8 + $0xa34] ss:$48 sps:$4 sm:$0xff]   ;;  %v7553_v22 = vld [vmem:[#allocation8 + $0xa3c] ss:$48 sps:$4 sm:$0xff]  }
 0x3ba   :  { %4825 = vmatpush1.bf16.msra.mxu0 %v7518_v6  ;;  %4954 = vmatpush1.bf16.msra.mxu1 %v7519_v23  ;;  %v7554_v6 = vld [vmem:[#allocation8 + $0xa30] ss:$48 sps:$4 sm:$0xff]   ;;  %v7555_v23 = vld [vmem:[#allocation8 + $0xa38] ss:$48 sps:$4 sm:$0xff]  }
 0x3bb   :  { %4826 = vmatprep.subr.bf16.mxu0 %v7520_v26  ;;  %4955 = vmatprep.subr.bf16.mxu1 %v7521_v27  ;;  %v7556_v26 = vld [vmem:[#allocation8 + $0xa94] ss:$48 sps:$4 sm:$0xff]   ;;  %v7557_v27 = vld [vmem:[#allocation8 + $0xa9c] ss:$48 sps:$4 sm:$0xff]  }
 0x3be   :  { %4827 = vmatpush1.bf16.msra.mxu0 %v7522_v28  ;;  %4956 = vmatpush1.bf16.msra.mxu1 %v7523_v29  ;;  %v7558_v28 = vld [vmem:[#allocation8 + $0xa90] ss:$48 sps:$4 sm:$0xff]   ;;  %v7559_v29 = vld [vmem:[#allocation8 + $0xa98] ss:$48 sps:$4 sm:$0xff]  }
 0x3bf   :  { %4828 = vmatprep.subr.bf16.mxu0 %v7524_v11  ;;  %4957 = vmatprep.subr.bf16.mxu1 %v7525_v30  ;;  %v7560_v11 = vld [vmem:[#allocation8 + $0xaf4] ss:$48 sps:$4 sm:$0xff]   ;;  %v7561_v30 = vld [vmem:[#allocation8 + $0xafc] ss:$48 sps:$4 sm:$0xff]  }
 0x3c2   :  { %4829 = vmatpush1.bf16.msra.mxu0 %v7526_v31  ;;  %4958 = vmatpush1.bf16.msra.mxu1 %v7527_v32  ;;  %v7562_v31 = vld [vmem:[#allocation8 + $0xaf0] ss:$48 sps:$4 sm:$0xff]   ;;  %v7563_v32 = vld [vmem:[#allocation8 + $0xaf8] ss:$48 sps:$4 sm:$0xff]  }
 0x3c3   :  { %4830 = vmatprep.subr.bf16.mxu0 %v7528_v33  ;;  %4959 = vmatprep.subr.bf16.mxu1 %v7529_v34  ;;  %v7564_v33 = vld [vmem:[#allocation8 + $0xb54] ss:$48 sps:$4 sm:$0xff]   ;;  %v7565_v34 = vld [vmem:[#allocation8 + $0xb5c] ss:$48 sps:$4 sm:$0xff]  }
 0x3c6   :  { %4831 = vmatpush1.bf16.msra.mxu0 %v7530_v35  ;;  %4960 = vmatpush1.bf16.msra.mxu1 %v7531_v36  ;;  %v7566_v35 = vld [vmem:[#allocation8 + $0xb50] ss:$48 sps:$4 sm:$0xff]   ;;  %v7567_v36 = vld [vmem:[#allocation8 + $0xb58] ss:$48 sps:$4 sm:$0xff]  }
 0x3c7   :  { %4832 = vmatprep.subr.bf16.mxu0 %v7532_v37  ;;  %4961 = vmatprep.subr.bf16.mxu1 %v7533_v39  ;;  %v7568_v37 = vld [vmem:[#allocation8 + $0xbb4] ss:$48 sps:$4 sm:$0xff]   ;;  %v7569_v39 = vld [vmem:[#allocation8 + $0xbbc] ss:$48 sps:$4 sm:$0xff]  }
 0x3ca   :  { %4833 = vmatpush1.bf16.msra.mxu0 %v7534_v40  ;;  %4962 = vmatpush1.bf16.msra.mxu1 %v7535_v41  ;;  %v7570_v40 = vld [vmem:[#allocation8 + $0xbb0] ss:$48 sps:$4 sm:$0xff]   ;;  %v7571_v41 = vld [vmem:[#allocation8 + $0xbb8] ss:$48 sps:$4 sm:$0xff]  }
 0x3cb   :  { %4834 = vmatprep.subr.bf16.mxu0 %v7536_v57  ;;  %4963 = vmatprep.subr.bf16.mxu1 %v7537_v58  ;;  %v7572_v57 = vld [vmem:[#allocation8 + $0xc14] ss:$48 sps:$4 sm:$0xff]   ;;  %v7573_v58 = vld [vmem:[#allocation8 + $0xc1c] ss:$48 sps:$4 sm:$0xff]  }
 0x3ce   :  { %4835 = vmatpush1.bf16.msra.mxu0 %v7538_v61  ;;  %4964 = vmatpush1.bf16.msra.mxu1 %v7539_v62  ;;  %v7574_v61 = vld [vmem:[#allocation8 + $0xc10] ss:$48 sps:$4 sm:$0xff]   ;;  %v7575_v62 = vld [vmem:[#allocation8 + $0xc18] ss:$48 sps:$4 sm:$0xff]  }
 0x3cf   :  { %4836 = vmatprep.subr.bf16.mxu0 %v7540_v63  ;;  %4965 = vmatprep.subr.bf16.mxu1 %v7541_v0  ;;  %v7576_v63 = vld [vmem:[#allocation8 + $0xc74] ss:$48 sps:$4 sm:$0xff]   ;;  %v7577_v0 = vld [vmem:[#allocation8 + $0xc7c] ss:$48 sps:$4 sm:$0xff]  }
 0x3d2   :  { %4837 = vmatpush1.bf16.msra.mxu0 %v7542_v1  ;;  %4966 = vmatpush1.bf16.msra.mxu1 %v7543_v21  ;;  %v7578_v1 = vld [vmem:[#allocation8 + $0xc70] ss:$48 sps:$4 sm:$0xff]   ;;  %v7579_v21 = vld [vmem:[#allocation8 + $0xc78] ss:$48 sps:$4 sm:$0xff]  }
 0x3d3   :  { %4838 = vmatprep.subr.bf16.mxu0 %v7544_v19  ;;  %4967 = vmatprep.subr.bf16.mxu1 %v7545_v2  ;;  %v7580_v19 = vld [vmem:[#allocation8 + $0xcd4] ss:$48 sps:$4 sm:$0xff]   ;;  %v7581_v2 = vld [vmem:[#allocation8 + $0xcdc] ss:$48 sps:$4 sm:$0xff]  }
 0x3d6   :  { %4839 = vmatpush1.bf16.msra.mxu0 %v7546_v4  ;;  %4968 = vmatpush1.bf16.msra.mxu1 %v7547_v5  ;;  %v7583_v4 = vld [vmem:[#allocation8 + $0xcd8] ss:$48 sps:$4 sm:$0xff]   ;;  %v7584_v5 = vld [vmem:[#allocation8 + $0xd34] ss:$48 sps:$4 sm:$0xff]  }
 0x3d7   :  { %4840 = vmatprep.subr.bf16.mxu0 %v7548_v7  ;;  %4969 = vmatprep.subr.bf16.mxu1 %v7549_v8  ;;  %v7585_v7 = vld [vmem:[#allocation8 + $0xd3c] ss:$48 sps:$4 sm:$0xff]   ;;  %v7586_v8 = vld [vmem:[#allocation8 + $0xd30] ss:$48 sps:$4 sm:$0xff]  }
 0x3da   :  { %4841 = vmatpush1.bf16.msra.mxu0 %v7550_v9  ;;  %4970 = vmatpush1.bf16.msra.mxu1 %v7551_v10  ;;  %v7587_v9 = vld [vmem:[#allocation8 + $0xd38] ss:$48 sps:$4 sm:$0xff]   ;;  %v7589_v10 = vld [vmem:[#allocation8 + $0xd9c] ss:$48 sps:$4 sm:$0xff]  }
 0x3db   :  { %4842 = vmatprep.subr.bf16.mxu0 %v7552_v12  ;;  %4971 = vmatprep.subr.bf16.mxu1 %v7553_v22  ;;  %v7590_v12 = vld [vmem:[#allocation8 + $0xd90] ss:$48 sps:$4 sm:$0xff]   ;;  %v7591_v22 = vld [vmem:[#allocation8 + $0xd98] ss:$48 sps:$4 sm:$0xff]  }
 0x3de   :  { %4843 = vmatpush1.bf16.msra.mxu0 %v7554_v6  ;;  %4972 = vmatpush1.bf16.msra.mxu1 %v7555_v23  ;;  %v7592_v6 = vld [vmem:[#allocation8 + $0xdf4] ss:$48 sps:$4 sm:$0xff]   ;;  %v7593_v23 = vld [vmem:[#allocation8 + $0xdfc] ss:$48 sps:$4 sm:$0xff]  }
 0x3df   :  { %4844 = vmatprep.subr.bf16.mxu0 %v7556_v26  ;;  %4973 = vmatprep.subr.bf16.mxu1 %v7557_v27  ;;  %v7594_v26 = vld [vmem:[#allocation8 + $0xdf0] ss:$48 sps:$4 sm:$0xff]   ;;  %v7595_v27 = vld [vmem:[#allocation8 + $0xdf8] ss:$48 sps:$4 sm:$0xff]  }
 0x3e2   :  { %4845 = vmatpush1.bf16.msra.mxu0 %v7558_v28  ;;  %4974 = vmatpush1.bf16.msra.mxu1 %v7559_v29  ;;  %v7596_v28 = vld [vmem:[#allocation8 + $0xe54] ss:$48 sps:$4 sm:$0xff]   ;;  %v7597_v29 = vld [vmem:[#allocation8 + $0xe5c] ss:$48 sps:$4 sm:$0xff]  }
 0x3e3   :  { %4846 = vmatprep.subr.bf16.mxu0 %v7560_v11  ;;  %4975 = vmatprep.subr.bf16.mxu1 %v7561_v30  ;;  %v7598_v11 = vld [vmem:[#allocation8 + $0xe50] ss:$48 sps:$4 sm:$0xff]   ;;  %v7599_v30 = vld [vmem:[#allocation8 + $0xe58] ss:$48 sps:$4 sm:$0xff]  }
 0x3e6   :  { %4847 = vmatpush1.bf16.msra.mxu0 %v7562_v31  ;;  %4976 = vmatpush1.bf16.msra.mxu1 %v7563_v32  ;;  %v7600_v31 = vld [vmem:[#allocation8 + $0xeb4] ss:$48 sps:$4 sm:$0xff]   ;;  %v7601_v32 = vld [vmem:[#allocation8 + $0xebc] ss:$48 sps:$4 sm:$0xff]  }
 0x3e7   :  { %4848 = vmatprep.subr.bf16.mxu0 %v7564_v33  ;;  %4977 = vmatprep.subr.bf16.mxu1 %v7565_v34  ;;  %v7602_v33 = vld [vmem:[#allocation8 + $0xeb0] ss:$48 sps:$4 sm:$0xff]   ;;  %v7603_v34 = vld [vmem:[#allocation8 + $0xeb8] ss:$48 sps:$4 sm:$0xff]  }
 0x3ea   :  { %4849 = vmatpush1.bf16.msra.mxu0 %v7566_v35  ;;  %4978 = vmatpush1.bf16.msra.mxu1 %v7567_v36  ;;  %v7604_v35 = vld [vmem:[#allocation8 + $0xf14] ss:$48 sps:$4 sm:$0xff]   ;;  %v7605_v36 = vld [vmem:[#allocation8 + $0xf1c] ss:$48 sps:$4 sm:$0xff]  }
 0x3eb   :  { %4850 = vmatprep.subr.bf16.mxu0 %v7568_v37  ;;  %4979 = vmatprep.subr.bf16.mxu1 %v7569_v39  ;;  %v7606_v37 = vld [vmem:[#allocation8 + $0xf10] ss:$48 sps:$4 sm:$0xff]   ;;  %v7607_v39 = vld [vmem:[#allocation8 + $0xf18] ss:$48 sps:$4 sm:$0xff]  }
 0x3ee   :  { %4851 = vmatpush1.bf16.msra.mxu0 %v7570_v40  ;;  %4980 = vmatpush1.bf16.msra.mxu1 %v7571_v41  ;;  %v7608_v40 = vld [vmem:[#allocation8 + $0xf74] ss:$48 sps:$4 sm:$0xff]   ;;  %v7609_v41 = vld [vmem:[#allocation8 + $0xf7c] ss:$48 sps:$4 sm:$0xff]  }
 0x3ef   :  { %4863 = vmatprep.subr.bf16.mxu0 %v7572_v57  ;;  %4992 = vmatprep.subr.bf16.mxu1 %v7573_v58  ;;  %v7610_v57 = vld [vmem:[#allocation8 + $0xf70] ss:$48 sps:$4 sm:$0xff]   ;;  %v7611_v58 = vld [vmem:[#allocation8 + $0xf78] ss:$48 sps:$4 sm:$0xff]  }
 0x3f1   :  { %4853 = vmatmul.mubr.bf16.vlgmr.msra.gmra.mrb[16].mxu0 %v8199_v38  ;;  %4982 = vmatmul.mubr.bf16.vlgmr.msra.gmra.mrb[16].mxu1 %v8199_v38  ;;  %v7582_v38 = vld [vmem:[#allocation8 + $0xcd0] ss:$48 sps:$4 sm:$0xff]  }
 0x3f2   :  { %4864 = vmatpush1.bf16.msra.mxu0 %v7574_v61  ;;  %4993 = vmatpush1.bf16.msra.mxu1 %v7575_v62  ;;  %v7612_v61 = vld [vmem:[#allocation8 + $0xfd4] ss:$48 sps:$4 sm:$0xff]   ;;  %v7613_v62 = vld [vmem:[#allocation8 + $0xfdc] ss:$48 sps:$4 sm:$0xff]  }
 0x3f3   :  { %4865 = vmatprep.subr.bf16.mxu0 %v7576_v63  ;;  %4994 = vmatprep.subr.bf16.mxu1 %v7577_v0  ;;  %v7614_v63 = vld [vmem:[#allocation8 + $0xfd0] ss:$48 sps:$4 sm:$0xff]   ;;  %v7615_v0 = vld [vmem:[#allocation8 + $0xfd8] ss:$48 sps:$4 sm:$0xff]  }
 0x3f4   :  { %4895 = vmatprep.mubr.bf16.mxu0 %v8201_v49  ;;  %5024 = vmatprep.mubr.bf16.mxu1 %v8201_v49  ;;  %v7588_v49 = vld [vmem:[#allocation8 + $0xd94] ss:$48 sps:$4 sm:$0xff]  }
 0x3f6   :  { %4866 = vmatpush1.bf16.msra.mxu0 %v7578_v1  ;;  %4995 = vmatpush1.bf16.msra.mxu1 %v7579_v21  ;;  %v7616_v1 = vld [vmem:[#allocation8 + $0x1034] ss:$48 sps:$4 sm:$0xff]   ;;  %v7617_v21 = vld [vmem:[#allocation8 + $0x103c] ss:$48 sps:$4 sm:$0xff]  }
 0x3f7   :  { %4867 = vmatprep.subr.bf16.mxu0 %v7580_v19  ;;  %4996 = vmatprep.subr.bf16.mxu1 %v7581_v2  ;;  %v7618_v19 = vld [vmem:[#allocation8 + $0x1030] ss:$48 sps:$4 sm:$0xff]   ;;  %v7619_v2 = vld [vmem:[#allocation8 + $0x1038] ss:$48 sps:$4 sm:$0xff]  }
 0x3fa   :  { %4868 = vmatpush1.bf16.msra.mxu0 %v7582_v38  ;;  %4997 = vmatpush1.bf16.msra.mxu1 %v7583_v4  ;;  %v7620_v38 = vld [vmem:[#allocation8 + $0x1094] ss:$48 sps:$4 sm:$0xff]   ;;  %v7621_v4 = vld [vmem:[#allocation8 + $0x109c] ss:$48 sps:$4 sm:$0xff]  }
 0x3fb   :  { %4869 = vmatprep.subr.bf16.mxu0 %v7584_v5  ;;  %4998 = vmatprep.subr.bf16.mxu1 %v7585_v7  ;;  %v7622_v5 = vld [vmem:[#allocation8 + $0x1090] ss:$48 sps:$4 sm:$0xff]   ;;  %v7623_v7 = vld [vmem:[#allocation8 + $0x1098] ss:$48 sps:$4 sm:$0xff]  }
 0x3fe   :  { %4870 = vmatpush1.bf16.msra.mxu0 %v7586_v8  ;;  %4999 = vmatpush1.bf16.msra.mxu1 %v7587_v9  ;;  %v7624_v8 = vld [vmem:[#allocation8 + $0x10f4] ss:$48 sps:$4 sm:$0xff]   ;;  %v7625_v9 = vld [vmem:[#allocation8 + $0x10fc] ss:$48 sps:$4 sm:$0xff]  }
 0x3ff   :  { %4871 = vmatprep.subr.bf16.mxu0 %v7588_v49  ;;  %5000 = vmatprep.subr.bf16.mxu1 %v7589_v10  ;;  %v691_v49 = vlaneseq  ;;  %v7626_v10 = vld [vmem:[#allocation8 + $0x10f0] ss:$48 sps:$4 sm:$0xff]  }
 0x402   :  { %4872 = vmatpush1.bf16.msra.mxu0 %v7590_v12  ;;  %5001 = vmatpush1.bf16.msra.mxu1 %v7591_v22  ;;  %v7627_v12 = vld [vmem:[#allocation8 + $0x10f8] ss:$48 sps:$4 sm:$0xff]   ;;  %v7628_v22 = vld [vmem:[#allocation8 + $0x1154] ss:$48 sps:$4 sm:$0xff]  }
 0x403   :  { %4873 = vmatprep.subr.bf16.mxu0 %v7592_v6  ;;  %5002 = vmatprep.subr.bf16.mxu1 %v7593_v23  ;;  %v7629_v6 = vld [vmem:[#allocation8 + $0x115c] ss:$48 sps:$4 sm:$0xff]   ;;  %v8238_v23 = vshrl.u32 %v691_v49, 7 }
 0x406   :  { %4874 = vmatpush1.bf16.msra.mxu0 %v7594_v26  ;;  %5003 = vmatpush1.bf16.msra.mxu1 %v7595_v27  ;;  %v7630_v26 = vld [vmem:[#allocation8 + $0x1150] ss:$48 sps:$4 sm:$0xff]   ;;  %v7631_v27 = vld [vmem:[#allocation8 + $0x1158] ss:$48 sps:$4 sm:$0xff]  }
 0x407   :  { %4875 = vmatprep.subr.bf16.mxu0 %v7596_v28  ;;  %5004 = vmatprep.subr.bf16.mxu1 %v7597_v29  ;;  %v7632_v28 = vld [vmem:[#allocation8 + $0x11b4] ss:$48 sps:$4 sm:$0xff]   ;;  %v7633_v29 = vld [vmem:[#allocation8 + $0x11bc] ss:$48 sps:$4 sm:$0xff]  }
 0x40a   :  { %4876 = vmatpush1.bf16.msra.mxu0 %v7598_v11  ;;  %5005 = vmatpush1.bf16.msra.mxu1 %v7599_v30  ;;  %v8241_v11 = vsub.s32 0, %v8238_v23  ;;  %v8244_v30 = vsub.s32 2, %v8238_v23 }
 0x40b   :  { %4877 = vmatprep.subr.bf16.mxu0 %v7600_v31  ;;  %5006 = vmatprep.subr.bf16.mxu1 %v7601_v32  ;;  %v7634_v31 = vld [vmem:[#allocation8 + $0x11b0] ss:$48 sps:$4 sm:$0xff]   ;;  %v7635_v32 = vld [vmem:[#allocation8 + $0x11b8] ss:$48 sps:$4 sm:$0xff]  }
 0x40e   :  { %4878 = vmatpush1.bf16.msra.mxu0 %v7602_v33  ;;  %5007 = vmatpush1.bf16.msra.mxu1 %v7603_v34  ;;  %v8246_v33 = vld [vmem:[#allocation9] sm:$0xff]  ;;  %v8249_v34 = vsub.s32 1, %v8238_v23 }
 0x40f   :  { %4879 = vmatprep.subr.bf16.mxu0 %v7604_v35  ;;  %5008 = vmatprep.subr.bf16.mxu1 %v7605_v36  ;;  %v8252_v35 = vsub.s32 3, %v8238_v23  ;;  %v7636_v36 = vld [vmem:[#allocation8 + $0x24] ss:$48 sps:$4 sm:$0xff]  }
 0x412   :  { %4880 = vmatpush1.bf16.msra.mxu0 %v7606_v37  ;;  %5009 = vmatpush1.bf16.msra.mxu1 %v7607_v39  ;;  %v7637_v37 = vld [vmem:[#allocation8 + $0x2c] ss:$48 sps:$4 sm:$0xff]   ;;  %v8258_v39 = vrot.slane %v8246_v33, %v8241_v11 }
 0x413   :  { %4881 = vmatprep.subr.bf16.mxu0 %v7608_v40  ;;  %5010 = vmatprep.subr.bf16.mxu1 %v7609_v41  ;;  %v8262_v40 = vrot.slane %v8246_v33, %v8244_v30  ;;  %v7638_v41 = vld [vmem:[#allocation8 + $0x20] ss:$48 sps:$4 sm:$0xff]  }
 0x416   :  { %4882 = vmatpush1.bf16.msra.mxu0 %v7610_v57  ;;  %5011 = vmatpush1.bf16.msra.mxu1 %v7611_v58  ;;  %v7639_v57 = vld [vmem:[#allocation8 + $0x28] ss:$48 sps:$4 sm:$0xff]   ;;  %v8266_v58 = vrot.slane %v8246_v33, %v8249_v34 }
 0x417   :  { %4883 = vmatprep.subr.bf16.mxu0 %v7612_v61  ;;  %5012 = vmatprep.subr.bf16.mxu1 %v7613_v62  ;;  %v8270_v61 = vrot.slane %v8246_v33, %v8252_v35  ;;  %v7641_v62 = vld [vmem:[#allocation8 + $0x8c] ss:$48 sps:$4 sm:$0xff]  }
 0x41a   :  { %4884 = vmatpush1.bf16.msra.mxu0 %v7614_v63  ;;  %5013 = vmatpush1.bf16.msra.mxu1 %v7615_v0  ;;  %v6203_v63 = vadd.f32 %v8149_v42, %v8258_v39  ;;  %v6207_v0 = vadd.f32 %v8151_v43, %v8262_v40  ;;  %v6209_v42 = vadd.f32 %v8159_v47, %v8262_v40  ;;  %v7649_v47 = vld [vmem:[#allocation8 + $0x14c] ss:$48 sps:$4 sm:$0xff]  }
 0x41b   :  { %4885 = vmatprep.subr.bf16.mxu0 %v7616_v1  ;;  %5014 = vmatprep.subr.bf16.mxu1 %v7617_v21  ;;  %v7642_v1 = vld [vmem:[#allocation8 + $0x80] ss:$48 sps:$4 sm:$0xff]   ;;  %v7643_v21 = vld [vmem:[#allocation8 + $0x88] ss:$48 sps:$4 sm:$0xff]   ;;  %v6206_v43 = vadd.f32 %v8161_v50, %v8266_v58 }
 0x41d   :  { %v4448_v50 = vmax.f32 %v6206_v43, 0.0 }
 0x41e   :  { %4886 = vmatpush1.bf16.msra.mxu0 %v7618_v19  ;;  %5015 = vmatpush1.bf16.msra.mxu1 %v7619_v2  ;;  %v6204_v19 = vadd.f32 %v8153_v44, %v8266_v58  ;;  %v6208_v2 = vadd.f32 %v8155_v45, %v8270_v61  ;;  %v4435_v44 = vmax.f32 %v6203_v63, 0.0  ;;  %v4437_v45 = vmax.f32 %v6207_v0, 0.0  ;;  %v7653_v63 = vld [vmem:[#allocation8 + $0x1ac] ss:$48 sps:$4 sm:$0xff]  }
 0x41f   :  { %4887 = vmatprep.subr.bf16.mxu0 %v7620_v38  ;;  %5016 = vmatprep.subr.bf16.mxu1 %v7621_v4  ;;  %v6205_v38 = vadd.f32 %v8157_v46, %v8258_v39  ;;  %v7645_v4 = vld [vmem:[#allocation8 + $0xec] ss:$48 sps:$4 sm:$0xff]   ;;  %v7647_v46 = vld [vmem:[#allocation8 + $0xe8] ss:$48 sps:$4 sm:$0xff]  }
 0x422   :  { %4888 = vmatpush1.bf16.msra.mxu0 %v7622_v5  ;;  %5017 = vmatpush1.bf16.msra.mxu1 %v7623_v7  ;;  %v6210_v5 = vadd.f32 %v8163_v51, %v8270_v61  ;;  %v8290_v7 = vld [vmem:[#allocation11] sm:$0xff] }
 0x423   :  { %4889 = vmatprep.subr.bf16.mxu0 %v7624_v8  ;;  %5018 = vmatprep.subr.bf16.mxu1 %v7625_v9  ;;  %v7646_v8 = vld [vmem:[#allocation8 + $0xe0] ss:$48 sps:$4 sm:$0xff]   ;;  %v4436_v9 = vmax.f32 %v6204_v19, 0.0  ;;  %v5348_v51 = vrot.slane %v8290_v7, %v8241_v11  ;;  %v8300_v19 = vld [vmem:[#allocation12] sm:$0xff] }
 0x426   :  { %4890 = vmatpush1.bf16.msra.mxu0 %v7626_v10  ;;  %5019 = vmatpush1.bf16.msra.mxu1 %v7627_v12  ;;  %v4438_v10 = vmax.f32 %v6208_v2, 0.0  ;;  %v4447_v12 = vmax.f32 %v6205_v38, 0.0 }
 0x427   :  { %4891 = vmatprep.subr.bf16.mxu0 %v7628_v22  ;;  %5020 = vmatprep.subr.bf16.mxu1 %v7629_v6  ;;  %v7648_v22 = vld [vmem:[#allocation8 + $0x144] ss:$48 sps:$4 sm:$0xff]   ;;  %v4449_v6 = vmax.f32 %v6209_v42, 0.0 }
 0x429   :  { %v4473_v0 = vmin.f32 %v4449_v6, 127.0 }
 0x42a   :  { %4892 = vmatpush1.bf16.msra.mxu0 %v7630_v26  ;;  %5021 = vmatpush1.bf16.msra.mxu1 %v7631_v27  ;;  %v4450_v26 = vmax.f32 %v6210_v5, 0.0  ;;  %v4459_v27 = vmin.f32 %v4435_v44, 127.0  ;;  %v7656_v44 = vld [vmem:[#allocation8 + $0x204] ss:$48 sps:$4 sm:$0xff]  }
 0x42b   :  { %4893 = vmatprep.subr.bf16.mxu0 %v7632_v28  ;;  %5022 = vmatprep.subr.bf16.mxu1 %v7633_v29  ;;  %v4461_v28 = vmin.f32 %v4437_v45, 127.0  ;;  %v5356_v29 = vrot.slane %v8290_v7, %v8244_v30  ;;  %v7657_v45 = vld [vmem:[#allocation8 + $0x20c] ss:$48 sps:$4 sm:$0xff]  }
 0x42c   :  { %v8302_v2 = vmul.f32 %v5348_v51, %v4459_v27 }
 0x42d   :  { %v8304_v38 = vmul.f32 %v5356_v29, %v4461_v28 }
 0x42e   :  { %4894 = vmatpush1.bf16.msra.mxu0 %v7634_v31  ;;  %5023 = vmatpush1.bf16.msra.mxu1 %v7635_v32  ;;  %v5352_v31 = vrot.slane %v8290_v7, %v8249_v34  ;;  %v7650_v32 = vld [vmem:[#allocation8 + $0x140] ss:$48 sps:$4 sm:$0xff]  }
 0x42f   :  { %5035 = vmatprep.subr.bf16.mxu0 %v7636_v36  ;;  %5164 = vmatprep.subr.bf16.mxu1 %v7637_v37  ;;  %v7651_v36 = vld [vmem:[#allocation8 + $0x148] ss:$48 sps:$4 sm:$0xff]   ;;  %v4460_v37 = vmin.f32 %v4436_v9, 127.0 }
 0x431   :  { %4896 = vmatmul.mubr.bf16.vlgmr.msra.gmra.mrb[16].mxu0 %v8207_v3  ;;  %5025 = vmatmul.mubr.bf16.vlgmr.msra.gmra.mrb[16].mxu1 %v8207_v3  ;;  %v7640_v3 = vld [vmem:[#allocation8 + $0x84] ss:$48 sps:$4 sm:$0xff]   ;;  %v8306_v42 = vmul.f32 %v5352_v31, %v4460_v37  ;;  %v7658_v37 = vld [vmem:[#allocation8 + $0x200] ss:$48 sps:$4 sm:$0xff]  }
 0x432   :  { %5036 = vmatpush1.bf16.msra.mxu0 %v7638_v41  ;;  %5165 = vmatpush1.bf16.msra.mxu1 %v7639_v57  ;;  %v4462_v41 = vmin.f32 %v4438_v10, 127.0  ;;  %v5360_v57 = vrot.slane %v8290_v7, %v8252_v35 }
 0x433   :  { %5037 = vmatprep.subr.bf16.mxu0 %v7640_v3  ;;  %5166 = vmatprep.subr.bf16.mxu1 %v7641_v62  ;;  %v4471_v3 = vmin.f32 %v4447_v12, 127.0  ;;  %v7652_v62 = vld [vmem:[#allocation8 + $0x1a4] ss:$48 sps:$4 sm:$0xff]   ;;  %v5436_v12 = vrot.slane %v8300_v19, %v8241_v11 }
 0x434   :  { %5067 = vmatprep.mubr.bf16.mxu0 %v8169_v59  ;;  %5196 = vmatprep.mubr.bf16.mxu1 %v8169_v59  ;;  %v7644_v59 = vld [vmem:[#allocation8 + $0xe4] ss:$48 sps:$4 sm:$0xff]   ;;  %v8308_v43 = vmul.f32 %v5360_v57, %v4462_v41  ;;  %v7659_v41 = vld [vmem:[#allocation8 + $0x208] ss:$48 sps:$4 sm:$0xff]  }
 0x435   :  { %v8310_v5 = vmul.f32 %v5348_v51, %v4471_v3  ;;  %v5440_v51 = vrot.slane %v8300_v19, %v8249_v34 }
 0x436   :  { %5038 = vmatpush1.bf16.msra.mxu0 %v7642_v1  ;;  %5167 = vmatpush1.bf16.msra.mxu1 %v7643_v21  ;;  %v4472_v1 = vmin.f32 %v4448_v50, 127.0  ;;  %v4474_v21 = vmin.f32 %v4450_v26, 127.0  ;;  %v5444_v50 = vrot.slane %v8300_v19, %v8244_v30 }
 0x437   :  { %5039 = vmatprep.subr.bf16.mxu0 %v7644_v59  ;;  %5168 = vmatprep.subr.bf16.mxu1 %v7645_v4  ;;  %v7654_v59 = vld [vmem:[#allocation8 + $0x1a0] ss:$48 sps:$4 sm:$0xff]   ;;  %v7655_v4 = vld [vmem:[#allocation8 + $0x1a8] ss:$48 sps:$4 sm:$0xff]  }
 0x438   :  { %v8316_v9 = vmul.f32 %v5360_v57, %v4474_v21  ;;  %v7660_v21 = vld [vmem:[#allocation8 + $0x264] ss:$48 sps:$4 sm:$0xff]  }
 0x43a   :  { %5040 = vmatpush1.bf16.msra.mxu0 %v7646_v8  ;;  %5169 = vmatpush1.bf16.msra.mxu1 %v7647_v46  ;;  %v8312_v8 = vmul.f32 %v5356_v29, %v4473_v0  ;;  %v8314_v46 = vmul.f32 %v5352_v31, %v4472_v1  ;;  %v5448_v31 = vrot.slane %v8300_v19, %v8252_v35 }
 0x43b   :  { %5041 = vmatprep.subr.bf16.mxu0 %v7648_v22  ;;  %5170 = vmatprep.subr.bf16.mxu1 %v7649_v47 }
 0x43e   :  { %5042 = vmatpush1.bf16.msra.mxu0 %v7650_v32  ;;  %5171 = vmatpush1.bf16.msra.mxu1 %v7651_v36 }
 0x43f   :  { %5043 = vmatprep.subr.bf16.mxu0 %v7652_v62  ;;  %5172 = vmatprep.subr.bf16.mxu1 %v7653_v63 }
 0x442   :  { %5044 = vmatpush1.bf16.msra.mxu0 %v7654_v59  ;;  %5173 = vmatpush1.bf16.msra.mxu1 %v7655_v4  ;;  %v7661_v59 = vld [vmem:[#allocation8 + $0x26c] ss:$48 sps:$4 sm:$0xff]  }
 0x443   :  { %5045 = vmatprep.subr.bf16.mxu0 %v7656_v44  ;;  %5174 = vmatprep.subr.bf16.mxu1 %v7657_v45 }
 0x444   :  { %v4639_v10 = vpop.f32.mrb[12].mxu0  ;;  %v4768_v22 = vpop.f32.mrb[12].mxu1 }
 0x445   :  { %v6227_v47 = vadd.f32 %v4639_v10, %v8258_v39  ;;  %v6231_v6 = vadd.f32 %v4768_v22, %v8262_v40  ;;  %v4641_v26 = vpop.f32.mrb[13].mxu0  ;;  %v4770_v27 = vpop.f32.mrb[13].mxu1 }
 0x446   :  { %v6228_v28 = vadd.f32 %v4641_v26, %v8266_v58  ;;  %v6232_v29 = vadd.f32 %v4770_v27, %v8270_v61  ;;  %v4643_v32 = vpop.f32.mrb[14].mxu0  ;;  %v4772_v36 = vpop.f32.mrb[14].mxu1  ;;  %5046 = vmatpush1.bf16.msra.mxu0 %v7658_v37  ;;  %5175 = vmatpush1.bf16.msra.mxu1 %v7659_v41  ;;  %v7663_v37 = vld [vmem:[#allocation8 + $0x268] ss:$48 sps:$4 sm:$0xff]  }
 0x447   :  { %v5293_v57 = vmax.f32 %v6227_v47, 0.0  ;;  %v5295_v3 = vmax.f32 %v6231_v6, 0.0  ;;  %v6229_v62 = vadd.f32 %v4643_v32, %v8258_v39  ;;  %v6233_v63 = vadd.f32 %v4772_v36, %v8262_v40  ;;  %v4645_v0 = vpop.f32.mrb[15].mxu0  ;;  %v4774_v1 = vpop.f32.mrb[15].mxu1  ;;  %5047 = vmatprep.subr.bf16.mxu0 %v7660_v21  ;;  %5176 = vmatprep.subr.bf16.mxu1 %v7661_v59  ;;  %v7662_v36 = vld [vmem:[#allocation8 + $0x260] ss:$48 sps:$4 sm:$0xff]  }
 0x448   :  { %v5294_v4 = vmax.f32 %v6228_v28, 0.0  ;;  %v5296_v44 = vmax.f32 %v6232_v29, 0.0  ;;  %v6230_v45 = vadd.f32 %v4645_v0, %v8266_v58  ;;  %v6234_v10 = vadd.f32 %v4774_v1, %v8270_v61  ;;  %v7664_v59 = vld [vmem:[#allocation8 + $0x2c4] ss:$48 sps:$4 sm:$0xff]   ;;  %v7665_v58 = vld [vmem:[#allocation8 + $0x2cc] ss:$48 sps:$4 sm:$0xff]  }
 0x449   :  { %v5317_v22 = vmin.f32 %v5293_v57, 127.0  ;;  %v5319_v26 = vmin.f32 %v5295_v3, 127.0  ;;  %v5305_v47 = vmax.f32 %v6229_v62, 0.0  ;;  %v5307_v6 = vmax.f32 %v6233_v63, 0.0 }
 0x44a   :  { %v5318_v27 = vmin.f32 %v5294_v4, 127.0  ;;  %v5320_v39 = vmin.f32 %v5296_v44, 127.0  ;;  %v5306_v32 = vmax.f32 %v6230_v45, 0.0  ;;  %v5308_v40 = vmax.f32 %v6234_v10, 0.0  ;;  %5048 = vmatpush1.bf16.msra.mxu0 %v7662_v36  ;;  %5177 = vmatpush1.bf16.msra.mxu1 %v7663_v37  ;;  %v7676_v37 = vld [vmem:[#allocation8 + $0x3e4] ss:$48 sps:$4 sm:$0xff]  }
 0x44b   :  { %v5493_v41 = vmul.f32 %v5436_v12, %v5317_v22  ;;  %v5495_v21 = vmul.f32 %v5444_v50, %v5319_v26  ;;  %v5329_v28 = vmin.f32 %v5305_v47, 127.0  ;;  %v5331_v29 = vmin.f32 %v5307_v6, 127.0  ;;  %5049 = vmatprep.subr.bf16.mxu0 %v7664_v59  ;;  %5178 = vmatprep.subr.bf16.mxu1 %v7665_v58  ;;  %v7666_v26 = vld [vmem:[#allocation8 + $0x2c0] ss:$48 sps:$4 sm:$0xff]   ;;  %v7681_v59 = vld [vmem:[#allocation8 + $0x44c] ss:$48 sps:$4 sm:$0xff]  }
 0x44c   :  { %v5494_v61 = vmul.f32 %v5440_v51, %v5318_v27  ;;  %v5496_v57 = vmul.f32 %v5448_v31, %v5320_v39  ;;  %v5330_v3 = vmin.f32 %v5306_v32, 127.0  ;;  %v5332_v62 = vmin.f32 %v5308_v40, 127.0  ;;  %v7667_v27 = vld [vmem:[#allocation8 + $0x2c8] ss:$48 sps:$4 sm:$0xff]   ;;  %v7668_v39 = vld [vmem:[#allocation8 + $0x324] ss:$48 sps:$4 sm:$0xff]  }
 0x44d   :  { %v5517_v63 = vadd.f32 %v5493_v41, %v8302_v2  ;;  %v5519_v0 = vadd.f32 %v5495_v21, %v8304_v38  ;;  %v5505_v1 = vmul.f32 %v5436_v12, %v5329_v28  ;;  %v5507_v4 = vmul.f32 %v5444_v50, %v5331_v29  ;;  %v7673_v40 = vld [vmem:[#allocation8 + $0x38c] ss:$48 sps:$4 sm:$0xff]   ;;  %v7678_v21 = vld [vmem:[#allocation8 + $0x3e0] ss:$48 sps:$4 sm:$0xff]   ;;  %v7679_v28 = vld [vmem:[#allocation8 + $0x3e8] ss:$48 sps:$4 sm:$0xff]  }
 0x44e   :  { %v5518_v44 = vadd.f32 %v5494_v61, %v8306_v42  ;;  %v5520_v45 = vadd.f32 %v5496_v57, %v8308_v43  ;;  %v5506_v10 = vmul.f32 %v5440_v51, %v5330_v3  ;;  %v5508_v22 = vmul.f32 %v5448_v31, %v5332_v62  ;;  %5050 = vmatpush1.bf16.msra.mxu0 %v7666_v26  ;;  %v7669_v42 = vld [vmem:[#allocation8 + $0x32c] ss:$48 sps:$4 sm:$0xff]   ;;  %v7670_v51 = vld [vmem:[#allocation8 + $0x320] ss:$48 sps:$4 sm:$0xff]   ;;  %v7671_v31 = vld [vmem:[#allocation8 + $0x328] ss:$48 sps:$4 sm:$0xff]  }
 0x44f   :  { %v5529_v47 = vadd.f32 %v5505_v1, %v8310_v5  ;;  %v5531_v6 = vadd.f32 %v5507_v4, %v8312_v8  ;;  %5179 = vmatpush1.bf16.msra.mxu1 %v7667_v27  ;;  %5051 = vmatprep.subr.bf16.mxu0 %v7668_v39  ;;  %v7672_v5 = vld [vmem:[#allocation8 + $0x384] ss:$48 sps:$4 sm:$0xff]   ;;  %v7677_v41 = vld [vmem:[#allocation8 + $0x3ec] ss:$48 sps:$4 sm:$0xff]   ;;  %v7682_v58 = vld [vmem:[#allocation8 + $0x440] ss:$48 sps:$4 sm:$0xff]  }
 0x450   :  { %v5541_v2 = vadd.f32 %v5518_v44, %v5517_v63  ;;  %v5530_v38 = vadd.f32 %v5506_v10, %v8314_v46  ;;  %v5532_v12 = vadd.f32 %v5508_v22, %v8316_v9  ;;  %5180 = vmatprep.subr.bf16.mxu1 %v7669_v42  ;;  %v7674_v46 = vld [vmem:[#allocation8 + $0x380] ss:$48 sps:$4 sm:$0xff]   ;;  %v7675_v9 = vld [vmem:[#allocation8 + $0x388] ss:$48 sps:$4 sm:$0xff]   ;;  %v7680_v29 = vld [vmem:[#allocation8 + $0x444] ss:$48 sps:$4 sm:$0xff]  }
 0x451   :  { %v7683_v61 = vld [vmem:[#allocation8 + $0x448] ss:$48 sps:$4 sm:$0xff]   ;;  %v7684_v57 = vld [vmem:[#allocation8 + $0x4a4] ss:$48 sps:$4 sm:$0xff]   ;;  %v7685_v3 = vld [vmem:[#allocation8 + $0x4ac] ss:$48 sps:$4 sm:$0xff]  }
 0x452   :  { %v5542_v43 = vadd.f32 %v5541_v2, %v5519_v0  ;;  %v5554_v50 = vadd.f32 %v5530_v38, %v5529_v47  ;;  %5052 = vmatpush1.bf16.msra.mxu0 %v7670_v51  ;;  %v7686_v62 = vld [vmem:[#allocation8 + $0x4a0] ss:$48 sps:$4 sm:$0xff]   ;;  %v7687_v63 = vld [vmem:[#allocation8 + $0x4a8] ss:$48 sps:$4 sm:$0xff]   ;;  %v7688_v0 = vld [vmem:[#allocation8 + $0x504] ss:$48 sps:$4 sm:$0xff]  }
 0x453   :  { %5181 = vmatpush1.bf16.msra.mxu1 %v7671_v31  ;;  %5053 = vmatprep.subr.bf16.mxu0 %v7672_v5  ;;  %v7689_v1 = vld [vmem:[#allocation8 + $0x50c] ss:$48 sps:$4 sm:$0xff]   ;;  %v7690_v4 = vld [vmem:[#allocation8 + $0x500] ss:$48 sps:$4 sm:$0xff]   ;;  %v7691_v44 = vld [vmem:[#allocation8 + $0x508] ss:$48 sps:$4 sm:$0xff]  }
 0x454   :  { %v8342_v8 = vadd.f32 %v5542_v43, %v5520_v45  ;;  %v5555_v32 = vadd.f32 %v5554_v50, %v5531_v6  ;;  %5182 = vmatprep.subr.bf16.mxu1 %v7673_v40  ;;  %v7692_v45 = vld [vmem:[#allocation8 + $0x564] ss:$48 sps:$4 sm:$0xff]   ;;  %v7693_v10 = vld [vmem:[#allocation8 + $0x56c] ss:$48 sps:$4 sm:$0xff]   ;;  %v7694_v22 = vld [vmem:[#allocation8 + $0x560] ss:$48 sps:$4 sm:$0xff]  }
 0x455   :  { %v7695_v26 = vld [vmem:[#allocation8 + $0x568] ss:$48 sps:$4 sm:$0xff]   ;;  %v7696_v47 = vld [vmem:[#allocation8 + $0x5c4] ss:$48 sps:$4 sm:$0xff]   ;;  %v7697_v6 = vld [vmem:[#allocation8 + $0x5cc] ss:$48 sps:$4 sm:$0xff]  }
 0x456   :  { %v8344_v36 = vadd.f32 %v5555_v32, %v5532_v12  ;;  %5054 = vmatpush1.bf16.msra.mxu0 %v7674_v46  ;;  %v7698_v27 = vld [vmem:[#allocation8 + $0x5c0] ss:$48 sps:$4 sm:$0xff]   ;;  %v7699_v39 = vld [vmem:[#allocation8 + $0x5c8] ss:$48 sps:$4 sm:$0xff]   ;;  %v7700_v2 = vld [vmem:[#allocation8 + $0x624] ss:$48 sps:$4 sm:$0xff]  }
 0x457   :  { %5183 = vmatpush1.bf16.msra.mxu1 %v7675_v9  ;;  %5055 = vmatprep.subr.bf16.mxu0 %v7676_v37  ;;  %v7701_v38 = vld [vmem:[#allocation8 + $0x62c] ss:$48 sps:$4 sm:$0xff]   ;;  %v7702_v12 = vld [vmem:[#allocation6] ss:$24 sps:$4 sm:$0xff]   ;;  %v7705_v50 = vld [vmem:[#allocation8 + $0x684] ss:$48 sps:$4 sm:$0xff]  }
 0x458   :  { %5184 = vmatprep.subr.bf16.mxu1 %v7677_v41  ;;  %v7703_v42 = vld [vmem:[#allocation8 + $0x620] ss:$48 sps:$4 sm:$0xff]   ;;  %v7704_v43 = vld [vmem:[#allocation8 + $0x628] ss:$48 sps:$4 sm:$0xff]   ;;  %v7706_v51 = vld [vmem:[#allocation8 + $0x68c] ss:$48 sps:$4 sm:$0xff]  }
 0x459   :  { %v7707_v31 = vld [vmem:[#allocation6 + $0xc] ss:$24 sps:$4 sm:$0xff]   ;;  %v7708_v5 = vld [vmem:[#allocation8 + $0x680] ss:$48 sps:$4 sm:$0xff]   ;;  %v7709_v32 = vld [vmem:[#allocation8 + $0x688] ss:$48 sps:$4 sm:$0xff]  }
 0x45a   :  { %5056 = vmatpush1.bf16.msra.mxu0 %v7678_v21  ;;  %v7710_v40 = vld [vmem:[#allocation8 + $0x6e4] ss:$48 sps:$4 sm:$0xff]   ;;  %v7711_v46 = vld [vmem:[#allocation8 + $0x6ec] ss:$48 sps:$4 sm:$0xff]   ;;  %v7712_v9 = vld [vmem:[#allocation8 + $0x6e0] ss:$48 sps:$4 sm:$0xff]  }
 0x45b   :  { %5185 = vmatpush1.bf16.msra.mxu1 %v7679_v28  ;;  %5057 = vmatprep.subr.bf16.mxu0 %v7680_v29  ;;  %v7713_v37 = vld [vmem:[#allocation8 + $0x6e8] ss:$48 sps:$4 sm:$0xff]   ;;  %v7714_v41 = vld [vmem:[#allocation8 + $0x744] ss:$48 sps:$4 sm:$0xff]   ;;  %v7715_v21 = vld [vmem:[#allocation8 + $0x74c] ss:$48 sps:$4 sm:$0xff]  }
 0x45c   :  { %5186 = vmatprep.subr.bf16.mxu1 %v7681_v59  ;;  %v7716_v28 = vld [vmem:[#allocation8 + $0x740] ss:$48 sps:$4 sm:$0xff]   ;;  %v7717_v29 = vld [vmem:[#allocation8 + $0x748] ss:$48 sps:$4 sm:$0xff]   ;;  %v7718_v59 = vld [vmem:[#allocation8 + $0x7a4] ss:$48 sps:$4 sm:$0xff]  }
 0x45e   :  { %5058 = vmatpush1.bf16.msra.mxu0 %v7682_v58  ;;  %v7719_v58 = vld [vmem:[#allocation8 + $0x7ac] ss:$48 sps:$4 sm:$0xff]  }
 0x45f   :  { %5187 = vmatpush1.bf16.msra.mxu1 %v7683_v61  ;;  %5059 = vmatprep.subr.bf16.mxu0 %v7684_v57  ;;  %v7720_v61 = vld [vmem:[#allocation8 + $0x7a0] ss:$48 sps:$4 sm:$0xff]   ;;  %v7721_v57 = vld [vmem:[#allocation8 + $0x7a8] ss:$48 sps:$4 sm:$0xff]  }
 0x460   :  { %5188 = vmatprep.subr.bf16.mxu1 %v7685_v3  ;;  %v7722_v3 = vld [vmem:[#allocation8 + $0x804] ss:$48 sps:$4 sm:$0xff]  }
 0x462   :  { %5060 = vmatpush1.bf16.msra.mxu0 %v7686_v62  ;;  %v7723_v62 = vld [vmem:[#allocation8 + $0x80c] ss:$48 sps:$4 sm:$0xff]  }
 0x463   :  { %5189 = vmatpush1.bf16.msra.mxu1 %v7687_v63  ;;  %5061 = vmatprep.subr.bf16.mxu0 %v7688_v0  ;;  %v7724_v63 = vld [vmem:[#allocation8 + $0x800] ss:$48 sps:$4 sm:$0xff]   ;;  %v7725_v0 = vld [vmem:[#allocation8 + $0x808] ss:$48 sps:$4 sm:$0xff]  }
 0x464   :  { %5190 = vmatprep.subr.bf16.mxu1 %v7689_v1  ;;  %v7726_v1 = vld [vmem:[#allocation8 + $0x864] ss:$48 sps:$4 sm:$0xff]  }
 0x466   :  { %5062 = vmatpush1.bf16.msra.mxu0 %v7690_v4  ;;  %v7727_v4 = vld [vmem:[#allocation8 + $0x86c] ss:$48 sps:$4 sm:$0xff]  }
 0x467   :  { %5191 = vmatpush1.bf16.msra.mxu1 %v7691_v44  ;;  %5063 = vmatprep.subr.bf16.mxu0 %v7692_v45  ;;  %v7728_v44 = vld [vmem:[#allocation8 + $0x860] ss:$48 sps:$4 sm:$0xff]   ;;  %v7729_v45 = vld [vmem:[#allocation8 + $0x868] ss:$48 sps:$4 sm:$0xff]  }
 0x468   :  { %5192 = vmatprep.subr.bf16.mxu1 %v7693_v10  ;;  %v7730_v10 = vld [vmem:[#allocation8 + $0x8c4] ss:$48 sps:$4 sm:$0xff]  }
 0x46a   :  { %5064 = vmatpush1.bf16.msra.mxu0 %v7694_v22  ;;  %v7731_v22 = vld [vmem:[#allocation8 + $0x8cc] ss:$48 sps:$4 sm:$0xff]  }
 0x46b   :  { %5193 = vmatpush1.bf16.msra.mxu1 %v7695_v26  ;;  %5065 = vmatprep.subr.bf16.mxu0 %v7696_v47  ;;  %v7732_v26 = vld [vmem:[#allocation8 + $0x8c0] ss:$48 sps:$4 sm:$0xff]   ;;  %v7733_v47 = vld [vmem:[#allocation8 + $0x8c8] ss:$48 sps:$4 sm:$0xff]  }
 0x46c   :  { %5194 = vmatprep.subr.bf16.mxu1 %v7697_v6  ;;  %v7734_v6 = vld [vmem:[#allocation8 + $0x924] ss:$48 sps:$4 sm:$0xff]  }
 0x46e   :  { %5066 = vmatpush1.bf16.msra.mxu0 %v7698_v27  ;;  %v7735_v27 = vld [vmem:[#allocation8 + $0x92c] ss:$48 sps:$4 sm:$0xff]  }
 0x46f   :  { %5195 = vmatpush1.bf16.msra.mxu1 %v7699_v39  ;;  %5078 = vmatprep.subr.bf16.mxu0 %v7700_v2  ;;  %v7736_v39 = vld [vmem:[#allocation8 + $0x920] ss:$48 sps:$4 sm:$0xff]   ;;  %v7737_v2 = vld [vmem:[#allocation8 + $0x928] ss:$48 sps:$4 sm:$0xff]  }
 0x470   :  { %5207 = vmatprep.subr.bf16.mxu1 %v7701_v38  ;;  %v7738_v38 = vld [vmem:[#allocation8 + $0x984] ss:$48 sps:$4 sm:$0xff]  }
 0x471   :  { %5068 = vmatmul.mubr.bf16.vlgmr.msra.gmra.mrb[20].mxu0 %v7702_v12 }
 0x472   :  { %5079 = vmatpush1.bf16.msra.mxu0 %v7703_v42  ;;  %5197 = vmatmul.mubr.bf16.vlgmr.msra.gmra.mrb[20].mxu1 %v7702_v12  ;;  %v7739_v12 = vld [vmem:[#allocation8 + $0x98c] ss:$48 sps:$4 sm:$0xff]   ;;  %v7740_v42 = vld [vmem:[#allocation8 + $0x980] ss:$48 sps:$4 sm:$0xff]  }
 0x473   :  { %5208 = vmatpush1.bf16.msra.mxu1 %v7704_v43  ;;  %5080 = vmatprep.subr.bf16.mxu0 %v7705_v50  ;;  %v7741_v43 = vld [vmem:[#allocation8 + $0x988] ss:$48 sps:$4 sm:$0xff]   ;;  %v7742_v50 = vld [vmem:[#allocation8 + $0x9e4] ss:$48 sps:$4 sm:$0xff]  }
 0x474   :  { %5209 = vmatprep.subr.bf16.mxu1 %v7706_v51  ;;  %5110 = vmatprep.mubr.bf16.mxu0 %v7707_v31  ;;  %v7743_v51 = vld [vmem:[#allocation8 + $0x9ec] ss:$48 sps:$4 sm:$0xff]  }
 0x475   :  { %5239 = vmatprep.mubr.bf16.mxu1 %v7707_v31  ;;  %v7744_v31 = vld [vmem:[#allocation8 + $0x9e0] ss:$48 sps:$4 sm:$0xff]  }
 0x476   :  { %5081 = vmatpush1.bf16.msra.mxu0 %v7708_v5  ;;  %v7745_v5 = vld [vmem:[#allocation8 + $0x9e8] ss:$48 sps:$4 sm:$0xff]  }
 0x477   :  { %5210 = vmatpush1.bf16.msra.mxu1 %v7709_v32  ;;  %5082 = vmatprep.subr.bf16.mxu0 %v7710_v40  ;;  %v7746_v32 = vld [vmem:[#allocation8 + $0xa44] ss:$48 sps:$4 sm:$0xff]   ;;  %v7747_v40 = vld [vmem:[#allocation8 + $0xa4c] ss:$48 sps:$4 sm:$0xff]  }
 0x478   :  { %5211 = vmatprep.subr.bf16.mxu1 %v7711_v46  ;;  %v7748_v46 = vld [vmem:[#allocation8 + $0xa40] ss:$48 sps:$4 sm:$0xff]  }
 0x47a   :  { %5083 = vmatpush1.bf16.msra.mxu0 %v7712_v9  ;;  %v7749_v9 = vld [vmem:[#allocation8 + $0xa48] ss:$48 sps:$4 sm:$0xff]  }
 0x47b   :  { %5212 = vmatpush1.bf16.msra.mxu1 %v7713_v37  ;;  %5084 = vmatprep.subr.bf16.mxu0 %v7714_v41  ;;  %v7750_v37 = vld [vmem:[#allocation8 + $0xaa4] ss:$48 sps:$4 sm:$0xff]   ;;  %v7751_v41 = vld [vmem:[#allocation8 + $0xaac] ss:$48 sps:$4 sm:$0xff]  }
 0x47c   :  { %5213 = vmatprep.subr.bf16.mxu1 %v7715_v21  ;;  %v7752_v21 = vld [vmem:[#allocation8 + $0xaa0] ss:$48 sps:$4 sm:$0xff]  }
 0x47e   :  { %5085 = vmatpush1.bf16.msra.mxu0 %v7716_v28  ;;  %v7753_v28 = vld [vmem:[#allocation8 + $0xaa8] ss:$48 sps:$4 sm:$0xff]  }
 0x47f   :  { %5214 = vmatpush1.bf16.msra.mxu1 %v7717_v29  ;;  %5086 = vmatprep.subr.bf16.mxu0 %v7718_v59  ;;  %v7754_v29 = vld [vmem:[#allocation8 + $0xb04] ss:$48 sps:$4 sm:$0xff]   ;;  %v7755_v59 = vld [vmem:[#allocation8 + $0xb0c] ss:$48 sps:$4 sm:$0xff]  }
 0x480   :  { %5215 = vmatprep.subr.bf16.mxu1 %v7719_v58  ;;  %v7756_v58 = vld [vmem:[#allocation8 + $0xb00] ss:$48 sps:$4 sm:$0xff]  }
 0x482   :  { %5087 = vmatpush1.bf16.msra.mxu0 %v7720_v61  ;;  %v7757_v61 = vld [vmem:[#allocation8 + $0xb08] ss:$48 sps:$4 sm:$0xff]  }
 0x483   :  { %5216 = vmatpush1.bf16.msra.mxu1 %v7721_v57  ;;  %5088 = vmatprep.subr.bf16.mxu0 %v7722_v3  ;;  %v7758_v57 = vld [vmem:[#allocation8 + $0xb64] ss:$48 sps:$4 sm:$0xff]   ;;  %v7759_v3 = vld [vmem:[#allocation8 + $0xb6c] ss:$48 sps:$4 sm:$0xff]  }
 0x484   :  { %5217 = vmatprep.subr.bf16.mxu1 %v7723_v62  ;;  %v7760_v62 = vld [vmem:[#allocation8 + $0xb60] ss:$48 sps:$4 sm:$0xff]  }
 0x486   :  { %5089 = vmatpush1.bf16.msra.mxu0 %v7724_v63  ;;  %v7761_v63 = vld [vmem:[#allocation8 + $0xb68] ss:$48 sps:$4 sm:$0xff]  }
 0x487   :  { %5218 = vmatpush1.bf16.msra.mxu1 %v7725_v0  ;;  %5090 = vmatprep.subr.bf16.mxu0 %v7726_v1  ;;  %v7762_v0 = vld [vmem:[#allocation8 + $0xbc4] ss:$48 sps:$4 sm:$0xff]   ;;  %v7763_v1 = vld [vmem:[#allocation8 + $0xbcc] ss:$48 sps:$4 sm:$0xff]  }
 0x488   :  { %5219 = vmatprep.subr.bf16.mxu1 %v7727_v4  ;;  %v7764_v4 = vld [vmem:[#allocation8 + $0xbc0] ss:$48 sps:$4 sm:$0xff]  }
 0x48a   :  { %5091 = vmatpush1.bf16.msra.mxu0 %v7728_v44  ;;  %v7765_v44 = vld [vmem:[#allocation8 + $0xbc8] ss:$48 sps:$4 sm:$0xff]  }
 0x48b   :  { %5220 = vmatpush1.bf16.msra.mxu1 %v7729_v45  ;;  %5092 = vmatprep.subr.bf16.mxu0 %v7730_v10  ;;  %v7766_v45 = vld [vmem:[#allocation8 + $0xc24] ss:$48 sps:$4 sm:$0xff]   ;;  %v7767_v10 = vld [vmem:[#allocation8 + $0xc2c] ss:$48 sps:$4 sm:$0xff]  }
 0x48c   :  { %5221 = vmatprep.subr.bf16.mxu1 %v7731_v22  ;;  %v7768_v22 = vld [vmem:[#allocation6 + $0x8] ss:$24 sps:$4 sm:$0xff]  }
 0x48e   :  { %5093 = vmatpush1.bf16.msra.mxu0 %v7732_v26  ;;  %v7769_v26 = vld [vmem:[#allocation8 + $0xc20] ss:$48 sps:$4 sm:$0xff]  }
 0x48f   :  { %5222 = vmatpush1.bf16.msra.mxu1 %v7733_v47  ;;  %5094 = vmatprep.subr.bf16.mxu0 %v7734_v6  ;;  %v7770_v47 = vld [vmem:[#allocation8 + $0xc28] ss:$48 sps:$4 sm:$0xff]   ;;  %v7771_v6 = vld [vmem:[#allocation8 + $0xc84] ss:$48 sps:$4 sm:$0xff]  }
 0x490   :  { %5223 = vmatprep.subr.bf16.mxu1 %v7735_v27  ;;  %v7772_v27 = vld [vmem:[#allocation8 + $0xc8c] ss:$48 sps:$4 sm:$0xff]  }
 0x492   :  { %5095 = vmatpush1.bf16.msra.mxu0 %v7736_v39  ;;  %v7773_v39 = vld [vmem:[#allocation6 + $0x14] ss:$24 sps:$4 sm:$0xff]  }
 0x493   :  { %5224 = vmatpush1.bf16.msra.mxu1 %v7737_v2  ;;  %5096 = vmatprep.subr.bf16.mxu0 %v7738_v38  ;;  %v7774_v2 = vld [vmem:[#allocation8 + $0xc80] ss:$48 sps:$4 sm:$0xff]   ;;  %v7775_v38 = vld [vmem:[#allocation8 + $0xc88] ss:$48 sps:$4 sm:$0xff]  }
 0x494   :  { %5225 = vmatprep.subr.bf16.mxu1 %v7739_v12  ;;  %v7776_v12 = vld [vmem:[#allocation8 + $0xce4] ss:$48 sps:$4 sm:$0xff]  }
 0x496   :  { %5097 = vmatpush1.bf16.msra.mxu0 %v7740_v42  ;;  %v7777_v42 = vld [vmem:[#allocation8 + $0xcec] ss:$48 sps:$4 sm:$0xff]  }
 0x497   :  { %5226 = vmatpush1.bf16.msra.mxu1 %v7741_v43  ;;  %5098 = vmatprep.subr.bf16.mxu0 %v7742_v50  ;;  %v7778_v43 = vld [vmem:[#allocation8 + $0xce0] ss:$48 sps:$4 sm:$0xff]   ;;  %v7779_v50 = vld [vmem:[#allocation8 + $0xce8] ss:$48 sps:$4 sm:$0xff]  }
 0x498   :  { %5227 = vmatprep.subr.bf16.mxu1 %v7743_v51  ;;  %v7780_v51 = vld [vmem:[#allocation8 + $0xd44] ss:$48 sps:$4 sm:$0xff]  }
 0x49a   :  { %5099 = vmatpush1.bf16.msra.mxu0 %v7744_v31  ;;  %v7781_v31 = vld [vmem:[#allocation8 + $0xd4c] ss:$48 sps:$4 sm:$0xff]  }
 0x49b   :  { %5228 = vmatpush1.bf16.msra.mxu1 %v7745_v5  ;;  %5100 = vmatprep.subr.bf16.mxu0 %v7746_v32  ;;  %v7782_v5 = vld [vmem:[#allocation8 + $0xd40] ss:$48 sps:$4 sm:$0xff]   ;;  %v7783_v32 = vld [vmem:[#allocation8 + $0xd48] ss:$48 sps:$4 sm:$0xff]  }
 0x49c   :  { %5229 = vmatprep.subr.bf16.mxu1 %v7747_v40  ;;  %v7784_v40 = vld [vmem:[#allocation8 + $0xda4] ss:$48 sps:$4 sm:$0xff]  }
 0x49e   :  { %5101 = vmatpush1.bf16.msra.mxu0 %v7748_v46  ;;  %v7785_v46 = vld [vmem:[#allocation8 + $0xdac] ss:$48 sps:$4 sm:$0xff]  }
 0x49f   :  { %5230 = vmatpush1.bf16.msra.mxu1 %v7749_v9  ;;  %5102 = vmatprep.subr.bf16.mxu0 %v7750_v37  ;;  %v7786_v9 = vld [vmem:[#allocation8 + $0xda0] ss:$48 sps:$4 sm:$0xff]   ;;  %v7787_v37 = vld [vmem:[#allocation8 + $0xda8] ss:$48 sps:$4 sm:$0xff]  }
 0x4a0   :  { %5231 = vmatprep.subr.bf16.mxu1 %v7751_v41  ;;  %v7788_v41 = vld [vmem:[#allocation8 + $0xe04] ss:$48 sps:$4 sm:$0xff]  }
 0x4a2   :  { %5103 = vmatpush1.bf16.msra.mxu0 %v7752_v21  ;;  %v7789_v21 = vld [vmem:[#allocation8 + $0xe0c] ss:$48 sps:$4 sm:$0xff]  }
 0x4a3   :  { %5232 = vmatpush1.bf16.msra.mxu1 %v7753_v28  ;;  %5104 = vmatprep.subr.bf16.mxu0 %v7754_v29  ;;  %v7790_v28 = vld [vmem:[#allocation8 + $0xe00] ss:$48 sps:$4 sm:$0xff]   ;;  %v7791_v29 = vld [vmem:[#allocation8 + $0xe08] ss:$48 sps:$4 sm:$0xff]  }
 0x4a4   :  { %5233 = vmatprep.subr.bf16.mxu1 %v7755_v59  ;;  %v7792_v59 = vld [vmem:[#allocation8 + $0xe64] ss:$48 sps:$4 sm:$0xff]  }
 0x4a6   :  { %5105 = vmatpush1.bf16.msra.mxu0 %v7756_v58  ;;  %v7793_v58 = vld [vmem:[#allocation8 + $0xe6c] ss:$48 sps:$4 sm:$0xff]  }
 0x4a7   :  { %5234 = vmatpush1.bf16.msra.mxu1 %v7757_v61  ;;  %5106 = vmatprep.subr.bf16.mxu0 %v7758_v57  ;;  %v7794_v61 = vld [vmem:[#allocation8 + $0xe60] ss:$48 sps:$4 sm:$0xff]   ;;  %v7795_v57 = vld [vmem:[#allocation8 + $0xe68] ss:$48 sps:$4 sm:$0xff]  }
 0x4a8   :  { %5235 = vmatprep.subr.bf16.mxu1 %v7759_v3  ;;  %v7796_v3 = vld [vmem:[#allocation8 + $0xec4] ss:$48 sps:$4 sm:$0xff]  }
 0x4aa   :  { %5107 = vmatpush1.bf16.msra.mxu0 %v7760_v62  ;;  %v7797_v62 = vld [vmem:[#allocation8 + $0xecc] ss:$48 sps:$4 sm:$0xff]  }
 0x4ab   :  { %5236 = vmatpush1.bf16.msra.mxu1 %v7761_v63  ;;  %5108 = vmatprep.subr.bf16.mxu0 %v7762_v0  ;;  %v7798_v63 = vld [vmem:[#allocation8 + $0xec0] ss:$48 sps:$4 sm:$0xff]   ;;  %v7799_v0 = vld [vmem:[#allocation8 + $0xec8] ss:$48 sps:$4 sm:$0xff]  }
 0x4ac   :  { %5237 = vmatprep.subr.bf16.mxu1 %v7763_v1  ;;  %v7800_v1 = vld [vmem:[#allocation8 + $0xf24] ss:$48 sps:$4 sm:$0xff]  }
 0x4ae   :  { %5109 = vmatpush1.bf16.msra.mxu0 %v7764_v4  ;;  %v7801_v4 = vld [vmem:[#allocation8 + $0xf2c] ss:$48 sps:$4 sm:$0xff]  }
 0x4af   :  { %5238 = vmatpush1.bf16.msra.mxu1 %v7765_v44  ;;  %5121 = vmatprep.subr.bf16.mxu0 %v7766_v45  ;;  %v7802_v44 = vld [vmem:[#allocation8 + $0xf20] ss:$48 sps:$4 sm:$0xff]   ;;  %v7803_v45 = vld [vmem:[#allocation8 + $0xf28] ss:$48 sps:$4 sm:$0xff]  }
 0x4b0   :  { %5250 = vmatprep.subr.bf16.mxu1 %v7767_v10  ;;  %v7804_v10 = vld [vmem:[#allocation8 + $0xf84] ss:$48 sps:$4 sm:$0xff]  }
 0x4b1   :  { %5111 = vmatmul.mubr.bf16.vlgmr.msra.gmra.mrb[20].mxu0 %v7768_v22 }
 0x4b2   :  { %5122 = vmatpush1.bf16.msra.mxu0 %v7769_v26  ;;  %5240 = vmatmul.mubr.bf16.vlgmr.msra.gmra.mrb[20].mxu1 %v7768_v22  ;;  %v7805_v22 = vld [vmem:[#allocation8 + $0xf8c] ss:$48 sps:$4 sm:$0xff]   ;;  %v7806_v26 = vld [vmem:[#allocation8 + $0xf80] ss:$48 sps:$4 sm:$0xff]  }
 0x4b3   :  { %5251 = vmatpush1.bf16.msra.mxu1 %v7770_v47  ;;  %5123 = vmatprep.subr.bf16.mxu0 %v7771_v6  ;;  %v7807_v47 = vld [vmem:[#allocation8 + $0xf88] ss:$48 sps:$4 sm:$0xff]   ;;  %v7808_v6 = vld [vmem:[#allocation8 + $0xfe4] ss:$48 sps:$4 sm:$0xff]  }
 0x4b4   :  { %5252 = vmatprep.subr.bf16.mxu1 %v7772_v27  ;;  %5153 = vmatprep.mubr.bf16.mxu0 %v7773_v39  ;;  %v7809_v27 = vld [vmem:[#allocation8 + $0xfec] ss:$48 sps:$4 sm:$0xff]  }
 0x4b5   :  { %5282 = vmatprep.mubr.bf16.mxu1 %v7773_v39  ;;  %v7810_v39 = vld [vmem:[#allocation8 + $0xfe0] ss:$48 sps:$4 sm:$0xff]  }
 0x4b6   :  { %5124 = vmatpush1.bf16.msra.mxu0 %v7774_v2  ;;  %v7811_v2 = vld [vmem:[#allocation8 + $0xfe8] ss:$48 sps:$4 sm:$0xff]  }
 0x4b7   :  { %5253 = vmatpush1.bf16.msra.mxu1 %v7775_v38  ;;  %5125 = vmatprep.subr.bf16.mxu0 %v7776_v12  ;;  %v7812_v38 = vld [vmem:[#allocation8 + $0x1044] ss:$48 sps:$4 sm:$0xff]   ;;  %v7813_v12 = vld [vmem:[#allocation8 + $0x104c] ss:$48 sps:$4 sm:$0xff]  }
 0x4b8   :  { %5254 = vmatprep.subr.bf16.mxu1 %v7777_v42  ;;  %v7814_v42 = vld [vmem:[#allocation8 + $0x1040] ss:$48 sps:$4 sm:$0xff]  }
 0x4ba   :  { %5126 = vmatpush1.bf16.msra.mxu0 %v7778_v43  ;;  %v7815_v43 = vld [vmem:[#allocation8 + $0x1048] ss:$48 sps:$4 sm:$0xff]  }
 0x4bb   :  { %5255 = vmatpush1.bf16.msra.mxu1 %v7779_v50  ;;  %5127 = vmatprep.subr.bf16.mxu0 %v7780_v51  ;;  %v7816_v50 = vld [vmem:[#allocation8 + $0x10a4] ss:$48 sps:$4 sm:$0xff]   ;;  %v7817_v51 = vld [vmem:[#allocation8 + $0x10ac] ss:$48 sps:$4 sm:$0xff]  }
 0x4bc   :  { %5256 = vmatprep.subr.bf16.mxu1 %v7781_v31  ;;  %v7818_v31 = vld [vmem:[#allocation8 + $0x10a0] ss:$48 sps:$4 sm:$0xff]  }
 0x4be   :  { %5128 = vmatpush1.bf16.msra.mxu0 %v7782_v5  ;;  %v7819_v5 = vld [vmem:[#allocation8 + $0x10a8] ss:$48 sps:$4 sm:$0xff]  }
 0x4bf   :  { %5257 = vmatpush1.bf16.msra.mxu1 %v7783_v32  ;;  %5129 = vmatprep.subr.bf16.mxu0 %v7784_v40  ;;  %v7820_v32 = vld [vmem:[#allocation8 + $0x1104] ss:$48 sps:$4 sm:$0xff]   ;;  %v7821_v40 = vld [vmem:[#allocation8 + $0x110c] ss:$48 sps:$4 sm:$0xff]  }
 0x4c0   :  { %5258 = vmatprep.subr.bf16.mxu1 %v7785_v46  ;;  %v7822_v46 = vld [vmem:[#allocation8 + $0x1100] ss:$48 sps:$4 sm:$0xff]  }
 0x4c2   :  { %5130 = vmatpush1.bf16.msra.mxu0 %v7786_v9  ;;  %v7823_v9 = vld [vmem:[#allocation8 + $0x1108] ss:$48 sps:$4 sm:$0xff]  }
 0x4c3   :  { %5259 = vmatpush1.bf16.msra.mxu1 %v7787_v37  ;;  %5131 = vmatprep.subr.bf16.mxu0 %v7788_v41  ;;  %v7824_v37 = vld [vmem:[#allocation8 + $0x1164] ss:$48 sps:$4 sm:$0xff]   ;;  %v7825_v41 = vld [vmem:[#allocation8 + $0x116c] ss:$48 sps:$4 sm:$0xff]  }
 0x4c4   :  { %5260 = vmatprep.subr.bf16.mxu1 %v7789_v21  ;;  %v7826_v21 = vld [vmem:[#allocation8 + $0x1160] ss:$48 sps:$4 sm:$0xff]  }
 0x4c6   :  { %5132 = vmatpush1.bf16.msra.mxu0 %v7790_v28  ;;  %v7827_v28 = vld [vmem:[#allocation8 + $0x1168] ss:$48 sps:$4 sm:$0xff]  }
 0x4c7   :  { %5261 = vmatpush1.bf16.msra.mxu1 %v7791_v29  ;;  %5133 = vmatprep.subr.bf16.mxu0 %v7792_v59  ;;  %v7828_v29 = vld [vmem:[#allocation8 + $0x11c4] ss:$48 sps:$4 sm:$0xff]   ;;  %v7829_v59 = vld [vmem:[#allocation8 + $0x11cc] ss:$48 sps:$4 sm:$0xff]  }
 0x4c8   :  { %5262 = vmatprep.subr.bf16.mxu1 %v7793_v58  ;;  %v7830_v58 = vld [vmem:[#allocation8 + $0x11c0] ss:$48 sps:$4 sm:$0xff]  }
 0x4ca   :  { %5134 = vmatpush1.bf16.msra.mxu0 %v7794_v61  ;;  %v709_v61 = vsub.s32 4, %v8238_v23 }
 0x4cb   :  { %5263 = vmatpush1.bf16.msra.mxu1 %v7795_v57  ;;  %5135 = vmatprep.subr.bf16.mxu0 %v7796_v3  ;;  %v717_v57 = vsub.s32 6, %v8238_v23  ;;  %v713_v3 = vsub.s32 5, %v8238_v23 }
 0x4cc   :  { %5264 = vmatprep.subr.bf16.mxu1 %v7797_v62  ;;  %v721_v62 = vsub.s32 7, %v8238_v23 }
 0x4ce   :  { %5136 = vmatpush1.bf16.msra.mxu0 %v7798_v63  ;;  %v7831_v63 = vld [vmem:[#allocation8 + $0x11c8] ss:$48 sps:$4 sm:$0xff]  }
 0x4cf   :  { %5265 = vmatpush1.bf16.msra.mxu1 %v7799_v0  ;;  %5137 = vmatprep.subr.bf16.mxu0 %v7800_v1  ;;  %v7832_v0 = vld [vmem:[#allocation6 + $0x10] ss:$24 sps:$4 sm:$0xff]   ;;  %v710_v1 = vrot.slane %v8246_v33, %v709_v61 }
 0x4d0   :  { %5266 = vmatprep.subr.bf16.mxu1 %v7801_v4  ;;  %v718_v4 = vrot.slane %v8246_v33, %v717_v57 }
 0x4d2   :  { %5138 = vmatpush1.bf16.msra.mxu0 %v7802_v44  ;;  %v714_v44 = vrot.slane %v8246_v33, %v713_v3 }
 0x4d3   :  { %5267 = vmatpush1.bf16.msra.mxu1 %v7803_v45  ;;  %5139 = vmatprep.subr.bf16.mxu0 %v7804_v10  ;;  %v722_v45 = vrot.slane %v8246_v33, %v721_v62  ;;  %v6211_v10 = vadd.f32 %v8175_v13, %v710_v1 }
 0x4d4   :  { %5268 = vmatprep.subr.bf16.mxu1 %v7805_v22  ;;  %v6215_v22 = vadd.f32 %v8177_v14, %v718_v4 }
 0x4d6   :  { %5140 = vmatpush1.bf16.msra.mxu0 %v7806_v26  ;;  %v6212_v26 = vadd.f32 %v8179_v15, %v714_v44  ;;  %v5364_v15 = vrot.slane %v8290_v7, %v709_v61 }
 0x4d7   :  { %5269 = vmatpush1.bf16.msra.mxu1 %v7807_v47  ;;  %5141 = vmatprep.subr.bf16.mxu0 %v7808_v6  ;;  %v6216_v47 = vadd.f32 %v8181_v17, %v722_v45  ;;  %v6213_v6 = vadd.f32 %v8183_v18, %v710_v1  ;;  %v5372_v17 = vrot.slane %v8290_v7, %v717_v57 }
 0x4d8   :  { %5270 = vmatprep.subr.bf16.mxu1 %v7809_v27  ;;  %v6217_v27 = vadd.f32 %v8185_v20, %v718_v4  ;;  %v5368_v18 = vrot.slane %v8290_v7, %v713_v3  ;;  %v5376_v20 = vrot.slane %v8290_v7, %v721_v62  ;;  %v5452_v7 = vrot.slane %v8300_v19, %v709_v61 }
 0x4d9   :  { %v4442_v33 = vmax.f32 %v6216_v47, 0.0 }
 0x4da   :  { %5142 = vmatpush1.bf16.msra.mxu0 %v7810_v39  ;;  %v6214_v39 = vadd.f32 %v8187_v24, %v714_v44  ;;  %v4453_v13 = vmax.f32 %v6217_v27, 0.0 }
 0x4db   :  { %5271 = vmatpush1.bf16.msra.mxu1 %v7811_v2  ;;  %5143 = vmatprep.subr.bf16.mxu0 %v7812_v38  ;;  %v6218_v2 = vadd.f32 %v8189_v25, %v722_v45  ;;  %v4439_v38 = vmax.f32 %v6211_v10, 0.0  ;;  %v4466_v25 = vmin.f32 %v4442_v33, 127.0 }
 0x4dc   :  { %5272 = vmatprep.subr.bf16.mxu1 %v7813_v12  ;;  %v4441_v12 = vmax.f32 %v6215_v22, 0.0 }
 0x4dd   :  { %v4454_v14 = vmax.f32 %v6218_v2, 0.0 }
 0x4de   :  { %5144 = vmatpush1.bf16.msra.mxu0 %v7814_v42  ;;  %v4440_v42 = vmax.f32 %v6212_v26, 0.0  ;;  %v4465_v24 = vmin.f32 %v4441_v12, 127.0  ;;  %v5460_v26 = vrot.slane %v8300_v19, %v717_v57 }
 0x4df   :  { %5273 = vmatpush1.bf16.msra.mxu1 %v7815_v43  ;;  %5145 = vmatprep.subr.bf16.mxu0 %v7816_v50  ;;  %v4451_v43 = vmax.f32 %v6213_v6, 0.0  ;;  %v4452_v50 = vmax.f32 %v6214_v39, 0.0  ;;  %v5456_v39 = vrot.slane %v8300_v19, %v713_v3 }
 0x4e0   :  { %5274 = vmatprep.subr.bf16.mxu1 %v7817_v51  ;;  %v4463_v51 = vmin.f32 %v4439_v38, 127.0  ;;  %v5464_v38 = vrot.slane %v8300_v19, %v721_v62 }
 0x4e2   :  { %5146 = vmatpush1.bf16.msra.mxu0 %v7818_v31  ;;  %v4464_v31 = vmin.f32 %v4440_v42, 127.0 }
 0x4e3   :  { %5275 = vmatpush1.bf16.msra.mxu1 %v7819_v5  ;;  %5147 = vmatprep.subr.bf16.mxu0 %v7820_v32  ;;  %v4475_v5 = vmin.f32 %v4451_v43, 127.0  ;;  %v4477_v32 = vmin.f32 %v4453_v13, 127.0 }
 0x4e4   :  { %5276 = vmatprep.subr.bf16.mxu1 %v7821_v40  ;;  %v4476_v40 = vmin.f32 %v4452_v50, 127.0 }
 0x4e6   :  { %5148 = vmatpush1.bf16.msra.mxu0 %v7822_v46  ;;  %v4478_v46 = vmin.f32 %v4454_v14, 127.0 }
 0x4e7   :  { %5277 = vmatpush1.bf16.msra.mxu1 %v7823_v9  ;;  %5149 = vmatprep.subr.bf16.mxu0 %v7824_v37  ;;  %v5409_v9 = vmul.f32 %v5364_v15, %v4463_v51  ;;  %v5411_v37 = vmul.f32 %v5372_v17, %v4465_v24 }
 0x4e8   :  { %5278 = vmatprep.subr.bf16.mxu1 %v7825_v41  ;;  %v5410_v41 = vmul.f32 %v5368_v18, %v4464_v31 }
 0x4ea   :  { %5150 = vmatpush1.bf16.msra.mxu0 %v7826_v21  ;;  %v5412_v21 = vmul.f32 %v5376_v20, %v4466_v25 }
 0x4eb   :  { %5279 = vmatpush1.bf16.msra.mxu1 %v7827_v28  ;;  %5151 = vmatprep.subr.bf16.mxu0 %v7828_v29  ;;  %v5421_v28 = vmul.f32 %v5364_v15, %v4475_v5  ;;  %v5423_v29 = vmul.f32 %v5372_v17, %v4477_v32 }
 0x4ec   :  { %5280 = vmatprep.subr.bf16.mxu1 %v7829_v59  ;;  %v5422_v59 = vmul.f32 %v5368_v18, %v4476_v40 }
 0x4ee   :  { %5152 = vmatpush1.bf16.msra.mxu0 %v7830_v58  ;;  %v5424_v58 = vmul.f32 %v5376_v20, %v4478_v46 }
 0x4ef   :  { %5281 = vmatpush1.bf16.msra.mxu1 %v7831_v63 }
 0x4f1   :  { %5154 = vmatmul.mubr.bf16.vlgmr.msra.gmra.mrb[20].mxu0 %v7832_v0 }
 0x4f2   :  { %5283 = vmatmul.mubr.bf16.vlgmr.msra.gmra.mrb[20].mxu1 %v7832_v0 }
 0x504   :  { %v4897_v63 = vpop.f32.mrb[16].mxu0  ;;  %v5026_v0 = vpop.f32.mrb[16].mxu1 }
 0x505   :  { %v6235_v10 = vadd.f32 %v4897_v63, %v710_v1  ;;  %v6239_v22 = vadd.f32 %v5026_v0, %v718_v4  ;;  %v4899_v47 = vpop.f32.mrb[17].mxu0  ;;  %v5028_v6 = vpop.f32.mrb[17].mxu1 }
 0x506   :  { %v6236_v27 = vadd.f32 %v4899_v47, %v714_v44  ;;  %v6240_v2 = vadd.f32 %v5028_v6, %v722_v45  ;;  %v4901_v12 = vpop.f32.mrb[18].mxu0  ;;  %v5030_v42 = vpop.f32.mrb[18].mxu1 }
 0x507   :  { %v5297_v33 = vmax.f32 %v6235_v10, 0.0  ;;  %v5299_v43 = vmax.f32 %v6239_v22, 0.0  ;;  %v6237_v13 = vadd.f32 %v4901_v12, %v710_v1  ;;  %v6241_v50 = vadd.f32 %v5030_v42, %v718_v4  ;;  %v4903_v14 = vpop.f32.mrb[19].mxu0  ;;  %v5032_v15 = vpop.f32.mrb[19].mxu1 }
 0x508   :  { %v5298_v61 = vmax.f32 %v6236_v27, 0.0  ;;  %v5300_v17 = vmax.f32 %v6240_v2, 0.0  ;;  %v6238_v18 = vadd.f32 %v4903_v14, %v714_v44  ;;  %v6242_v57 = vadd.f32 %v5032_v15, %v722_v45 }
 0x509   :  { %v5321_v20 = vmin.f32 %v5297_v33, 127.0  ;;  %v5323_v51 = vmin.f32 %v5299_v43, 127.0  ;;  %v5309_v24 = vmax.f32 %v6237_v13, 0.0  ;;  %v5311_v31 = vmax.f32 %v6241_v50, 0.0 }
 0x50a   :  { %v5322_v3 = vmin.f32 %v5298_v61, 127.0  ;;  %v5324_v25 = vmin.f32 %v5300_v17, 127.0  ;;  %v5310_v5 = vmax.f32 %v6238_v18, 0.0  ;;  %v5312_v19 = vmax.f32 %v6242_v57, 0.0 }
 0x50b   :  { %v5497_v62 = vmul.f32 %v5452_v7, %v5321_v20  ;;  %v5499_v32 = vmul.f32 %v5460_v26, %v5323_v51  ;;  %v5333_v40 = vmin.f32 %v5309_v24, 127.0  ;;  %v5335_v46 = vmin.f32 %v5311_v31, 127.0  ;;  %v5342_v24 = vld [vmem:[#allocation11 + $0x8] sm:$0xf] }
 0x50c   :  { %v5498_v1 = vmul.f32 %v5456_v39, %v5322_v3  ;;  %v5500_v4 = vmul.f32 %v5464_v38, %v5324_v25  ;;  %v5334_v63 = vmin.f32 %v5310_v5, 127.0  ;;  %v5336_v0 = vmin.f32 %v5312_v19, 127.0 }
 0x50d   :  { %v5521_v10 = vadd.f32 %v5497_v62, %v5409_v9  ;;  %v5523_v22 = vadd.f32 %v5499_v32, %v5411_v37  ;;  %v5509_v44 = vmul.f32 %v5452_v7, %v5333_v40  ;;  %v5511_v45 = vmul.f32 %v5460_v26, %v5335_v46 }
 0x50e   :  { %v5522_v47 = vadd.f32 %v5498_v1, %v5410_v41  ;;  %v5524_v6 = vadd.f32 %v5500_v4, %v5412_v21  ;;  %v5510_v27 = vmul.f32 %v5456_v39, %v5334_v63  ;;  %v5512_v2 = vmul.f32 %v5464_v38, %v5336_v0  ;;  %v5567_v41 = vld [vmem:[#allocation2] sm:$0x1]  ;;  %v5430_v63 = vld [vmem:[#allocation12 + $0x8] sm:$0xf] }
 0x50f   :  { %v5544_v12 = vadd.f32 %v8342_v8, %v5521_v10  ;;  %v5533_v42 = vadd.f32 %v5509_v44, %v5421_v28  ;;  %v5535_v33 = vadd.f32 %v5511_v45, %v5423_v29  ;;  %v8007_v21 = vmov 0   ;;  %v682_v8 = vld [vmem:[#allocation9 + $0x8] sm:$0xf] }
 0x510   :  { %v5534_v43 = vadd.f32 %v5510_v27, %v5422_v59  ;;  %v5536_v13 = vadd.f32 %v5512_v2, %v5424_v58  ;;  %6359 = vset.pattern.permute.xlu1 %v8007_v21  ;;  %6360 = vset.pattern.permute.xlu0 %v8007_v21  ;;  %v726_v28 = vrot.slane %v682_v8, %v8241_v11 }
 0x511   :  { %v5545_v50 = vadd.f32 %v5544_v12, %v5522_v47  ;;  %v5557_v14 = vadd.f32 %v8344_v36, %v5533_v42  ;;  %5570 = vperm.xlu1 %6359, %v5567_v41   ;;  %v734_v29 = vrot.slane %v682_v8, %v8244_v30  ;;  %v730_v59 = vrot.slane %v682_v8, %v8249_v34 }
 0x512   :  { %v8380_v36 = vrot.slane %v682_v8, %v8252_v35  ;;  %v6219_v58 = vadd.f32 %v8213_v48, %v726_v28  ;;  %v6221_v38 = vadd.f32 %v8221_v55, %v726_v28  ;;  %v5388_v55 = vrot.slane %v5342_v24, %v8244_v30 }
 0x513   :  { %v5546_v15 = vadd.f32 %v5545_v50, %v5523_v22  ;;  %v5558_v61 = vadd.f32 %v5557_v14, %v5534_v43  ;;  %v6223_v7 = vadd.f32 %v8215_v52, %v734_v29  ;;  %v6220_v26 = vadd.f32 %v8217_v53, %v730_v59 }
 0x514   :  { %v6224_v39 = vadd.f32 %v8219_v54, %v8380_v36  ;;  %v6225_v18 = vadd.f32 %v8223_v56, %v734_v29  ;;  %v6222_v57 = vadd.f32 %v8225_v60, %v730_v59  ;;  %v6226_v20 = vadd.f32 %v8227_v16, %v8380_v36 }
 0x515   :  { %v8372_v17 = vadd.f32 %v5546_v15, %v5524_v6  ;;  %v5559_v9 = vadd.f32 %v5558_v61, %v5535_v33  ;;  %v4443_v51 = vmax.f32 %v6219_v58, 0.0  ;;  %v4445_v31 = vmax.f32 %v6223_v7, 0.0 }
 0x516   :  { %v4444_v48 = vmax.f32 %v6220_v26, 0.0  ;;  %v4446_v3 = vmax.f32 %v6224_v39, 0.0  ;;  %v4455_v52 = vmax.f32 %v6221_v38, 0.0  ;;  %v4457_v25 = vmax.f32 %v6225_v18, 0.0 }
 0x517   :  { %v8374_v37 = vadd.f32 %v5559_v9, %v5536_v13  ;;  %v4456_v53 = vmax.f32 %v6222_v57, 0.0  ;;  %v4458_v5 = vmax.f32 %v6226_v20, 0.0  ;;  %v5380_v54 = vrot.slane %v5342_v24, %v8241_v11 }
 0x518   :  { %v4467_v19 = vmin.f32 %v4443_v51, 127.0  ;;  %v4469_v56 = vmin.f32 %v4445_v31, 127.0  ;;  %v5384_v60 = vrot.slane %v5342_v24, %v8249_v34  ;;  %v5392_v62 = vrot.slane %v5342_v24, %v8252_v35 }
 0x519   :  { %v4468_v16 = vmin.f32 %v4444_v48, 127.0  ;;  %v4470_v32 = vmin.f32 %v4446_v3, 127.0  ;;  %v4479_v40 = vmin.f32 %v4455_v52, 127.0  ;;  %v4481_v46 = vmin.f32 %v4457_v25, 127.0 }
 0x51a   :  { %v4480_v1 = vmin.f32 %v4456_v53, 127.0  ;;  %v4482_v4 = vmin.f32 %v4458_v5, 127.0  ;;  %v5413_v0 = vmul.f32 %v5380_v54, %v4467_v19  ;;  %v5415_v10 = vmul.f32 %v5388_v55, %v4469_v56 }
 0x51b   :  { %v5414_v22 = vmul.f32 %v5384_v60, %v4468_v16  ;;  %v5416_v44 = vmul.f32 %v5392_v62, %v4470_v32  ;;  %v5425_v45 = vmul.f32 %v5380_v54, %v4479_v40  ;;  %v5427_v47 = vmul.f32 %v5388_v55, %v4481_v46 }
 0x51c   :  { %v5426_v27 = vmul.f32 %v5384_v60, %v4480_v1  ;;  %v5428_v2 = vmul.f32 %v5392_v62, %v4482_v4  ;;  %v5468_v42 = vrot.slane %v5430_v63, %v8241_v11  ;;  %v5476_v50 = vrot.slane %v5430_v63, %v8244_v30 }
 0x51d   :  { %v5472_v15 = vrot.slane %v5430_v63, %v8249_v34  ;;  %v5480_v8 = vrot.slane %v5430_v63, %v8252_v35 }
 0x5c4   :  { %v5155_v6 = vpop.f32.mrb[20].mxu0 }
 0x5c5   :  { %v6243_v12 = vadd.f32 %v5155_v6, %v726_v28  ;;  %v5284_v33 = vpop.f32.mrb[20].mxu1  ;;  %v5157_v43 = vpop.f32.mrb[21].mxu0 }
 0x5c6   :  { %v6247_v13 = vadd.f32 %v5284_v33, %v734_v29  ;;  %v6244_v14 = vadd.f32 %v5157_v43, %v730_v59  ;;  %v5286_v61 = vpop.f32.mrb[21].mxu1  ;;  %v5159_v9 = vpop.f32.mrb[22].mxu0 }
 0x5c7   :  { %v5301_v41 = vmax.f32 %v6243_v12, 0.0  ;;  %v6248_v21 = vadd.f32 %v5286_v61, %v8380_v36  ;;  %v6245_v58 = vadd.f32 %v5159_v9, %v726_v28  ;;  %v5288_v7 = vpop.f32.mrb[22].mxu1  ;;  %v5161_v26 = vpop.f32.mrb[23].mxu0 }
 0x5c8   :  { %v5303_v39 = vmax.f32 %v6247_v13, 0.0  ;;  %v5302_v38 = vmax.f32 %v6244_v14, 0.0  ;;  %v6249_v18 = vadd.f32 %v5288_v7, %v734_v29  ;;  %v6246_v57 = vadd.f32 %v5161_v26, %v730_v59  ;;  %v5290_v20 = vpop.f32.mrb[23].mxu1 }
 0x5c9   :  { %v5325_v51 = vmin.f32 %v5301_v41, 127.0  ;;  %v5304_v30 = vmax.f32 %v6248_v21, 0.0  ;;  %v5313_v24 = vmax.f32 %v6245_v58, 0.0  ;;  %v6250_v34 = vadd.f32 %v5290_v20, %v8380_v36 }
 0x5ca   :  { %v5327_v31 = vmin.f32 %v5303_v39, 127.0  ;;  %v5326_v48 = vmin.f32 %v5302_v38, 127.0  ;;  %v5315_v3 = vmax.f32 %v6249_v18, 0.0  ;;  %v5314_v52 = vmax.f32 %v6246_v57, 0.0 }
 0x5cb   :  { %v5501_v25 = vmul.f32 %v5468_v42, %v5325_v51  ;;  %v5328_v53 = vmin.f32 %v5304_v30, 127.0  ;;  %v5337_v35 = vmin.f32 %v5313_v24, 127.0  ;;  %v5316_v28 = vmax.f32 %v6250_v34, 0.0 }
 0x5cc   :  { %v5503_v5 = vmul.f32 %v5476_v50, %v5327_v31  ;;  %v5502_v54 = vmul.f32 %v5472_v15, %v5326_v48  ;;  %v5339_v55 = vmin.f32 %v5315_v3, 127.0  ;;  %v5338_v19 = vmin.f32 %v5314_v52, 127.0 }
 0x5cd   :  { %v5525_v29 = vadd.f32 %v5501_v25, %v5413_v0  ;;  %v5504_v59 = vmul.f32 %v5480_v8, %v5328_v53  ;;  %v5513_v56 = vmul.f32 %v5468_v42, %v5337_v35  ;;  %v5340_v60 = vmin.f32 %v5316_v28, 127.0 }
 0x5ce   :  { %v5526_v62 = vadd.f32 %v5502_v54, %v5414_v22  ;;  %v5515_v16 = vmul.f32 %v5476_v50, %v5339_v55  ;;  %v5514_v32 = vmul.f32 %v5472_v15, %v5338_v19  ;;  %v5527_v36 = vadd.f32 %v5503_v5, %v5415_v10  ;;  %v5571_v50 = vpop.permute.xlu1 %5570 }
 0x5cf   :  { %v5537_v40 = vadd.f32 %v5513_v56, %v5425_v45  ;;  %v5516_v46 = vmul.f32 %v5480_v8, %v5340_v60  ;;  %v5528_v1 = vadd.f32 %v5504_v59, %v5416_v44  ;;  %v5548_v4 = vadd.f32 %v8372_v17, %v5525_v29 }
 0x5d0   :  { %v5538_v63 = vadd.f32 %v5514_v32, %v5426_v27  ;;  %v5539_v6 = vadd.f32 %v5515_v16, %v5427_v47  ;;  %v5582_v10 = vand.u32 127, %v691_v49  ;;  %v5576_v44 = vrot.slane %v5571_v50, %v8241_v11 }
 0x5d1   :  { %v5549_v12 = vadd.f32 %v5548_v4, %v5526_v62  ;;  %v5540_v33 = vadd.f32 %v5516_v46, %v5428_v2  ;;  %v5561_v43 = vadd.f32 %v8374_v37, %v5537_v40 }
 0x5d2   :  { %v5587_v45 = vadd.s32 4294967288, %v5582_v10  ;;  %v5585_v47 = vsub.s32 %v5582_v10, %v8238_v23 }
 0x5d3   :  { %v5550_v13 = vadd.f32 %v5549_v12, %v5527_v36  ;;  %v5562_v0 = vadd.f32 %v5561_v43, %v5538_v63 }
 0x5d4   :  { %v5590_v2 = vsub.s32 %v5587_v45, %v8238_v23 }
 0x5d5   :  { %v5551_v14 = vadd.f32 %v5550_v13, %v5528_v1  ;;  %v5563_v42 = vadd.f32 %v5562_v0, %v5539_v6 }
 0x5d7   :  { %5552 = vadd.xlane.f32.xlu0 %v5551_v14  ;;  %v5564_v22 = vadd.f32 %v5563_v42, %v5540_v33 }
 0x5db   :  { %5565 = vadd.xlane.f32.xlu0 %v5564_v22 }
 0x664   :  { %v5553_v17 = vpop.xlane.xlu0 %5552 }
 0x665   :  { %v5577_v27 = vadd.f32 %v5576_v44, %v5553_v17 }
 0x667   :  { %v5586_v61 = vrot.slane %v5577_v27, %v5585_v47 }
 0x668   :  { %v5566_v37 = vpop.xlane.xlu0 %5565 }
 0x669   :  { %v5578_v15 = vadd.f32 %v5576_v44, %v5566_v37 }
 0x66b   :  { %v5591_v9 = vrot.slane %v5578_v15, %v5590_v2 }
 0x66d   :  { %v5593_v41 = vsel %vm5592_vm0, %v5591_v9, %v5586_v61 }
 0x66e   :  { %5596 = vst.msk [vmem:[#allocation14] sm:$0x1] %vm5595_vm1, %v5593_v41 }
 0x66f   :  { %7976 = shalt.err (!%p7973_p10)
}
 0x670   :  { %s7977_s26 = scalar_lea.hbm %s8427_s7, 16 }
 0x671   :  { %p7978_p11 = scmp.ne.s32.totalorder %s8427_s7, %s7977_s26  ;;  %p7981_p12 = scmp.lt.u32.totalorder %s7977_s26, %s8427_s7 }
 0x673   :  { %p7983_p13 = pnand %p7981_p12, %p7978_p11 }
 0x675   :  { %7986 = shalt.err (!%p7983_p13)
}
 0x676   :  { %5606 = dma.vmem_to_hbm [thread:$0]  %s5604_s25, 16, %s8427_s7, [#allocation5]  }
 0x677   :  { %7995 = dma.done.wait [#allocation5], 16  }
 0x678   :  { %7996 = vsyncadd [#allocation5], 4294967280 }
 0x679   :  { %5610 = vsyncpa [#allocation4], 1 }
 0x67a   :  { %5611 = vsyncpa [#allocation7], 1 }
 0x67b   :  { %5612 = vsyncpa [#allocation10], 1 }
 0x67c   :  { %5613 = vsyncpa [#allocation13], 1 }
 0x67d   :  { %5614 = vsyncpa [#allocation5], 1 }

</bundles_post_ra>
